<compile_context>
chip_gen: v7x
topology: tpu7x:2x2x1
jax: 0.10.0
libtpu: 0.0.40
codegen_flags: <defaults>
</compile_context>

<pallas_src>
import math
from functools import partial

import numpy as np
import jax
import jax.numpy as jnp
from jax.experimental import pallas as pl
from jax.experimental.pallas import tpu as pltpu


# ----------------------------------------------------------------------------
# helpers
# ----------------------------------------------------------------------------
def _layernorm(x, g, b, eps=1e-5):
    mu = jnp.mean(x, axis=-1, keepdims=True)
    var = jnp.mean((x - mu) ** 2, axis=-1, keepdims=True)
    return (x - mu) * jax.lax.rsqrt(var + eps) * g + b


def _gelu_erf(x, approx_recip):
    """PyTorch nn.GELU() (exact erf) via the A&S 7.1.26 polynomial
    (|err| < 1.5e-7).  The 1/(1+p|z|) runs on the EUP (approx reciprocal on the
    bf16 perf path; exact on the f32 validation path)."""
    a1, a2, a3, a4, a5 = (0.254829592, -0.284496736, 1.421413741,
                          -1.453152027, 1.061405429)
    pc = 0.3275911
    z = x * 0.7071067811865476
    az = jnp.abs(z)
    t = pl.reciprocal(1.0 + pc * az, approx=approx_recip)
    poly = ((((a5 * t + a4) * t + a3) * t + a2) * t + a1) * t
    erf = jnp.where(z >= 0.0, 1.0, -1.0) * (1.0 - poly * jnp.exp(-az * az))
    return 0.5 * x * (1.0 + erf)


# ----------------------------------------------------------------------------
# Pallas kernels
# ----------------------------------------------------------------------------
def _win_attn_ln_res_kernel(x_ref, wqkv_ref, bqkv_ref, wproj_ref, vec_ref,
                            bias_ref, *rest, num_heads, wb, nw, n_tok):
    """One grid step = `wb` whole images (wb*nw windows).

    SwinV2 cosine window attention with batched heads, fused with the
    post-norm (norm1) + first residual:  y = x + LN1( attn(x) ).
    Matmul operands are cast to wqkv_ref.dtype (bf16 on the perf path);
    accumulation and all normalization math stay f32."""
    if len(rest) == 2:
        mask_ref, o_ref = rest
    else:
        mask_ref = None
        (o_ref,) = rest

    f32 = jnp.float32
    mdt = wqkv_ref.dtype                      # matmul operand dtype
    is_bf16 = jnp.dtype(mdt) != jnp.dtype(jnp.float32)
    nh = num_heads
    Wt = wb * nw
    N = n_tok
    M, C = x_ref.shape
    hd = C // nh

    x = x_ref[...].astype(f32)                                       # (M, C)

    # fused QKV projection: one (M,C)x(C,3C) MXU matmul (k-bias pre-zeroed).
    qkv = jnp.dot(x.astype(mdt), wqkv_ref[...],
                  preferred_element_type=f32) + bqkv_ref[...].astype(f32)
    q3 = qkv[:, :C].reshape(Wt, N, C)
    k3 = qkv[:, C:2 * C].reshape(Wt, N, C)
    v3 = qkv[:, 2 * C:].reshape(Wt, N, C)

    vecs = vec_ref[...].astype(f32)                                  # (8, C)
    scale_row = vecs[0]    # exp(clamp(logit_scale)) broadcast per head channel
    bproj = vecs[1]
    g1 = vecs[2]
    b1 = vecs[3]

    # cosine attention: L2-normalize q,k per (window, token, head) with an EUP
    # rsqrt; the per-head logit scale is folded into the q factor.  The static
    # per-head loop only emits lane slices + elementwise ops (no matmuls);
    # heads are then packed once into a leading batch dim.
    qh_l, kh_l, vh_l = [], [], []
    for h in range(nh):
        sl = slice(h * hd, (h + 1) * hd)
        qh = q3[:, :, sl]
        kh = k3[:, :, sl]
        qh = qh * (scale_row[sl] * jax.lax.rsqrt(
            jnp.maximum(jnp.sum(qh * qh, axis=-1, keepdims=True), 1e-24)))
        kh = kh * jax.lax.rsqrt(
            jnp.maximum(jnp.sum(kh * kh, axis=-1, keepdims=True), 1e-24))
        qh_l.append(qh.astype(mdt))
        kh_l.append(kh.astype(mdt))
        vh_l.append(v3[:, :, sl].astype(mdt))

    qb = jnp.stack(qh_l, axis=1).reshape(Wt * nh, N, hd)
    kb = jnp.stack(kh_l, axis=1).reshape(Wt * nh, N, hd)
    vb = jnp.stack(vh_l, axis=1).reshape(Wt * nh, N, hd)

    # batched score matmul for all windows x heads at once.
    s = jnp.einsum('bnd,bmd->bnm', qb, kb,
                   preferred_element_type=f32)               # (Wt*nh, N, N)

    # relative-position bias (per head) + shift mask (per window), broadcast
    # from their compact VMEM-resident forms (no tiled copies in HBM).
    s = s.reshape(wb, nw, nh, N, N) + bias_ref[...].astype(f32)[None, None]
    if mask_ref is not None:
        s = s + mask_ref[...].astype(f32)[None, :, None]
    s = s.reshape(Wt * nh, N, N)

    # open-coded softmax (f32); 1/l deferred to after PV.
    s_max = jnp.max(s, axis=-1, keepdims=True)
    p = jnp.exp(s - s_max)
    l = jnp.sum(p, axis=-1, keepdims=True)

    ob = jnp.einsum('bnm,bmd->bnd', p.astype(mdt), vb,
                    preferred_element_type=f32)              # (Wt*nh, N, hd)
    # EUP reciprocal on the bf16 perf path; exact on the f32 validation path so
    # the strict rtol=1e-3 check stays independent of the EUP approximation.
    ob = ob * pl.reciprocal(l, approx=bool(is_bf16))

    # heads back to contiguous channels, ONE (M,C)x(C,C) output projection.
    ob4 = ob.reshape(Wt, nh, N, hd)
    ctx = jnp.concatenate([ob4[:, h].reshape(M, hd) for h in range(nh)],
                          axis=-1)
    attn = jnp.dot(ctx.astype(mdt), wproj_ref[...],
                   preferred_element_type=f32) + bproj

    # SwinV2 post-norm + first residual (token-wise, so it commutes with the
    # roll / window partition done in the wrapper; padding is cropped there).
    o_ref[...] = (x + _layernorm(attn, g1, b1)).astype(o_ref.dtype)


def _mlp_ln_res_kernel(x_ref, w1_ref, b1_ref, w2_ref, vec_ref, o_ref):
    """Fused  y = x + norm2( GELU(x @ W1 + b1) @ W2 + b2 )  (SwinV2 post-norm)."""
    f32 = jnp.float32
    mdt = w1_ref.dtype
    is_bf16 = jnp.dtype(mdt) != jnp.dtype(jnp.float32)

    x = x_ref[...].astype(f32)
    vecs = vec_ref[...].astype(f32)                                  # (8, C)
    h = jnp.dot(x.astype(mdt), w1_ref[...],
                preferred_element_type=f32) + b1_ref[...].astype(f32)
    h = _gelu_erf(h, approx_recip=bool(is_bf16))
    m = jnp.dot(h.astype(mdt), w2_ref[...],
                preferred_element_type=f32) + vecs[0]
    o_ref[...] = (x + _layernorm(m, vecs[1], vecs[2])).astype(o_ref.dtype)


# ----------------------------------------------------------------------------
# tile pickers / compiler params
# ----------------------------------------------------------------------------
def _pick_images_per_tile(B, nW, N, target_rows=256, max_rows=2048):
    """Whole images per attention grid step.  Aim for >= target_rows MXU rows
    per step (amortize the ~0.35us/step overhead, fill the v6e 256-wide MXU),
    but keep the grid >= 2 steps when B >= 2 so both v7x TensorCores get work,
    and cap the row count so activation tiles stay bounded on v7x (64 MiB)."""
    per_image = nW * N
    want = max(1, -(-target_rows // per_image))
    want = min(want, max(1, max_rows // per_image))
    if B >= 2:
        want = min(want, B // 2)
    wb = 1
    for d in range(1, B + 1):
        if B % d == 0 and d <= want:
            wb = d
    return wb


def _pick_row_tile(rows, max_tile=1024):
    """Largest divisor of `rows` <= max_tile, preferring >= 2 grid steps (v7x).
    TODO(synk): pad `rows` + masked tail instead of shrinking the tile when the
    row count has no convenient divisors."""
    cap = max_tile
    if rows >= 16:
        cap = min(cap, rows // 2)
    best = 1
    for d in range(1, rows + 1):
        if rows % d == 0 and d <= cap:
            best = d
    return max(best, 1)


def _compiler_params(resident_bytes):
    """Raise the scoped-VMEM cap only when the resident estimate needs it
    (default scoped limit: 16 MiB on v5e, 32 MiB on v6e/v7x)."""
    if resident_bytes > 12 * 2**20:
        return pltpu.CompilerParams(
            dimension_semantics=("parallel",),
            vmem_limit_bytes=int(min(resident_bytes * 2, 100 * 2**20)))
    return pltpu.CompilerParams(dimension_semantics=("parallel",))


# ----------------------------------------------------------------------------
# Pallas wrappers
# ----------------------------------------------------------------------------
def window_attention_block_pallas(xw2, wqkv_t, bqkv, wproj_t, vec_pack,
                                  rel_bias, mask, num_heads, wb, nw, n_tok):
    R, C = xw2.shape
    Mt = wb * nw * n_tok
    grid = (R // Mt,)

    in_specs = [
        pl.BlockSpec((Mt, C), lambda i: (i, 0)),                    # x rows
        pl.BlockSpec((C, 3 * C), lambda i: (0, 0)),                 # Wqkv^T
        pl.BlockSpec((1, 3 * C), lambda i: (0, 0)),                 # qkv bias
        pl.BlockSpec((C, C), lambda i: (0, 0)),                     # Wproj^T
        pl.BlockSpec((8, C), lambda i: (0, 0)),                     # packed vecs
        pl.BlockSpec((num_heads, n_tok, n_tok), lambda i: (0, 0, 0)),  # rel bias
    ]
    args = [xw2, wqkv_t, bqkv, wproj_t, vec_pack, rel_bias]
    if mask is not None:
        in_specs.append(pl.BlockSpec((nw, n_tok, n_tok), lambda i: (0, 0, 0)))
        args.append(mask)

    wsize = jnp.dtype(wqkv_t.dtype).itemsize
    resident = ((wqkv_t.size + wproj_t.size) * wsize
                + (bqkv.size + vec_pack.size + rel_bias.size) * 4
                + (0 if mask is None else mask.size * 4)
                + 4 * Mt * C * 4                 # double-buffered in/out tiles
                + 3 * Mt * 3 * C * 4)            # in-kernel intermediates

    return pl.pallas_call(
        partial(_win_attn_ln_res_kernel, num_heads=num_heads, wb=wb, nw=nw,
                n_tok=n_tok),
        out_shape=jax.ShapeDtypeStruct((R, C), xw2.dtype),
        grid=grid,
        in_specs=in_specs,
        out_specs=pl.BlockSpec((Mt, C), lambda i: (i, 0)),
        compiler_params=_compiler_params(resident),
    )(*args)


def mlp_block_pallas(x2d, w1_t, b1, w2_t, vec_pack):
    rows, C = x2d.shape
    hidden = w1_t.shape[1]
    tile = _pick_row_tile(rows)
    grid = (rows // tile,)

    wsize = jnp.dtype(w1_t.dtype).itemsize
    resident = ((w1_t.size + w2_t.size) * wsize
                + (b1.size + vec_pack.size) * 4
                + 4 * tile * C * 4 + 2 * tile * hidden * 4)

    return pl.pallas_call(
        _mlp_ln_res_kernel,
        out_shape=jax.ShapeDtypeStruct((rows, C), x2d.dtype),
        grid=grid,
        in_specs=[pl.BlockSpec((tile, C), lambda i: (i, 0)),
                  pl.BlockSpec((C, hidden), lambda i: (0, 0)),
                  pl.BlockSpec((1, hidden), lambda i: (0, 0)),
                  pl.BlockSpec((hidden, C), lambda i: (0, 0)),
                  pl.BlockSpec((8, C), lambda i: (0, 0))],
        out_specs=pl.BlockSpec((tile, C), lambda i: (i, 0)),
        compiler_params=_compiler_params(resident),
    )(x2d, w1_t, b1, w2_t, vec_pack)


# ----------------------------------------------------------------------------
# glue: relative-position bias (V2 CPB-MLP), shift mask, window partition
# ----------------------------------------------------------------------------
def _relative_position_index(window_size):
    ws0, ws1 = window_size
    coords = np.stack(np.meshgrid(np.arange(ws0), np.arange(ws1), indexing="ij"))
    cf = coords.reshape(2, -1)
    rel = cf[:, :, None] - cf[:, None, :]
    rel = rel.transpose(1, 2, 0).astype(np.int64)
    rel[..., 0] += ws0 - 1
    rel[..., 1] += ws1 - 1
    rel[..., 0] *= 2 * ws1 - 1
    return rel.sum(-1).reshape(-1)                                   # (N*N,)


def _relative_coords_table(window_size):
    ws0, ws1 = window_size
    ch = np.arange(-(ws0 - 1), ws0, dtype=np.float32)
    cw = np.arange(-(ws1 - 1), ws1, dtype=np.float32)
    t = np.stack(np.meshgrid(ch, cw, indexing="ij"))
    t = t.transpose(1, 2, 0)
    t[..., 0] /= max(ws0 - 1, 1)
    t[..., 1] /= max(ws1 - 1, 1)
    t *= 8.0
    t = np.sign(t) * np.log2(np.abs(t) + 1.0) / 3.0
    return t.reshape(-1, 2)                                          # (T, 2)


def compute_rel_bias_v2(p, window_size, num_heads):
    """SwinV2 continuous-position-bias MLP -> 16*sigmoid, shape (nh, N, N)."""
    tbl = jnp.asarray(_relative_coords_table(window_size))
    h = jax.nn.relu(tbl @ p["cpb_w1"].T + p["cpb_b1"])
    b = h @ p["cpb_w2"].T
    idx = jnp.asarray(_relative_position_index(window_size))
    N = window_size[0] * window_size[1]
    bias = b[idx].reshape(N, N, num_heads)
    bias = jnp.transpose(bias, (2, 0, 1))
    return 16.0 * jax.nn.sigmoid(bias)


def compute_attn_mask(pH, pW, window_size, shift_size):
    ws0, ws1 = window_size
    s0, s1 = shift_size
    img = np.zeros((pH, pW), np.float32)
    h_slices = ((0, -ws0), (-ws0, -s0), (-s0, None))
    w_slices = ((0, -ws1), (-ws1, -s1), (-s1, None))
    cnt = 0
    for hs in h_slices:
        for ws_ in w_slices:
            img[hs[0]:hs[1], ws_[0]:ws_[1]] = cnt
            cnt += 1
    nWh, nWw = pH // ws0, pW // ws1
    m = img.reshape(nWh, ws0, nWw, ws1).transpose(0, 2, 1, 3)
    m = m.reshape(nWh * nWw, ws0 * ws1)
    am = m[:, None, :] - m[:, :, None]
    am = np.where(am != 0, -100.0, 0.0).astype(np.float32)
    return jnp.asarray(am)                                           # (nW, N, N)


def attention_branch_pallas(x, p, window_size, shift_size, num_heads, mm_dtype):
    """Returns x + norm1( shifted_window_attention_v2(x) )."""
    B, H, W, C = x.shape
    ws0, ws1 = window_size
    pad_r = (ws1 - W % ws1) % ws1
    pad_b = (ws0 - H % ws0) % ws0
    xp = jnp.pad(x, ((0, 0), (0, pad_b), (0, pad_r), (0, 0)))
    _, pH, pW, _ = xp.shape
    ss = list(shift_size)
    if ws0 >= pH:
        ss[0] = 0
    if ws1 >= pW:
        ss[1] = 0
    shifted = sum(ss) > 0
    if shifted:
        xp = jnp.roll(xp, (-ss[0], -ss[1]), axis=(1, 2))

    nWh, nWw = pH // ws0, pW // ws1
    nW = nWh * nWw
    N = ws0 * ws1
    hd = C // num_heads

    # window partition (pure layout, left to XLA for now; see TODO at top).
    xw = xp.reshape(B, nWh, ws0, nWw, ws1, C).transpose(0, 1, 3, 2, 4, 5)
    xw2 = xw.reshape(B * nW * N, C)

    # parameter-sized prep (tiny, fused into the surrounding jit).
    rel_bias = compute_rel_bias_v2(p, window_size, num_heads)        # (nh,N,N)
    logit_scale = jnp.exp(jnp.minimum(p["logit_scale"].reshape(num_heads),
                                      math.log(100.0)))              # (nh,)
    scale_cols = jnp.repeat(logit_scale, hd)                          # (C,)

    wqkv_t = p["qkv_w"].T.astype(mm_dtype)                            # (C, 3C)
    bqkv = p["qkv_b"].at[C:2 * C].set(0.0).reshape(1, 3 * C)          # k-bias=0
    wproj_t = p["proj_w"].T.astype(mm_dtype)                          # (C, C)

    vec_pack = jnp.zeros((8, C), jnp.float32)
    vec_pack = vec_pack.at[0].set(scale_cols)
    vec_pack = vec_pack.at[1].set(p["proj_b"])
    vec_pack = vec_pack.at[2].set(p["ln1_g"])
    vec_pack = vec_pack.at[3].set(p["ln1_b"])

    mask = compute_attn_mask(pH, pW, window_size, ss) if shifted else None

    wb = _pick_images_per_tile(B, nW, N)
    out2 = window_attention_block_pallas(
        xw2, wqkv_t, bqkv, wproj_t, vec_pack, rel_bias, mask,
        num_heads, wb, nW, N)

    # window merge (pure layout, left to XLA).
    out = out2.reshape(B, nWh, nWw, ws0, ws1, C).transpose(0, 1, 3, 2, 4, 5)
    out = out.reshape(B, pH, pW, C)
    if shifted:
        out = jnp.roll(out, (ss[0], ss[1]), axis=(1, 2))
    return out[:, :H, :W, :]


def swin_v2_block_forward(x, p, window_size, shift_size, num_heads,
                          mm_dtype=jnp.bfloat16):
    B, H, W, C = x.shape
    hidden = p["mlp_w1"].shape[0]
    x = attention_branch_pallas(x, p, window_size, shift_size, num_heads,
                                mm_dtype)
    vec_pack = jnp.zeros((8, C), jnp.float32)
    vec_pack = vec_pack.at[0].set(p["mlp_b2"])
    vec_pack = vec_pack.at[1].set(p["ln2_g"])
    vec_pack = vec_pack.at[2].set(p["ln2_b"])
    out = mlp_block_pallas(x.reshape(B * H * W, C),
                           p["mlp_w1"].T.astype(mm_dtype),
                           p["mlp_b1"].reshape(1, hidden),
                           p["mlp_w2"].T.astype(mm_dtype),
                           vec_pack)
    return out.reshape(B, H, W, C)


# ----------------------------------------------------------------------------
# pure-JAX f32 reference (mirrors the PyTorch V2 forward) for validation
# ----------------------------------------------------------------------------
def reference_attention_v2(x, p, window_size, shift_size, num_heads):
    B, H, W, C = x.shape
    ws0, ws1 = window_size
    pad_r = (ws1 - W % ws1) % ws1
    pad_b = (ws0 - H % ws0) % ws0
    xp = jnp.pad(x, ((0, 0), (0, pad_b), (0, pad_r), (0, 0)))
    _, pH, pW, _ = xp.shape
    ss = list(shift_size)
    if ws0 >= pH:
        ss[0] = 0
    if ws1 >= pW:
        ss[1] = 0
    if sum(ss) > 0:
        xp = jnp.roll(xp, (-ss[0], -ss[1]), axis=(1, 2))
    nWh, nWw = pH // ws0, pW // ws1
    nW = nWh * nWw
    N = ws0 * ws1
    hd = C // num_heads
    xw = xp.reshape(B, nWh, ws0, nWw, ws1, C).transpose(0, 1, 3, 2, 4, 5)
    xw = xw.reshape(B * nW, N, C)

    qkv_b = p["qkv_b"].at[C:2 * C].set(0.0)
    qkv = xw @ p["qkv_w"].T + qkv_b
    qkv = qkv.reshape(B * nW, N, 3, num_heads, hd).transpose(2, 0, 3, 1, 4)
    q, k, v = (qkv[0], qkv[1], qkv[2])
    qn = q / jnp.maximum(jnp.linalg.norm(q, axis=-1, keepdims=True), 1e-12)
    kn = k / jnp.maximum(jnp.linalg.norm(k, axis=-1, keepdims=True), 1e-12)
    attn = qn @ jnp.swapaxes(kn, -2, -1)
    logit_scale = jnp.exp(jnp.minimum(p["logit_scale"], math.log(100.0)))
    attn = attn * logit_scale[None]
    attn = attn + compute_rel_bias_v2(p, window_size, num_heads)[None]
    if sum(ss) > 0:
        mask = compute_attn_mask(pH, pW, window_size, ss)
        attn = attn.reshape(B, nW, num_heads, N, N) + mask[None, :, None]
        attn = attn.reshape(-1, num_heads, N, N)
    attn = jax.nn.softmax(attn, axis=-1)
    out = jnp.swapaxes(attn @ v, 1, 2).reshape(B * nW, N, C)
    out = out @ p["proj_w"].T + p["proj_b"]
    out = out.reshape(B, nWh, nWw, ws0, ws1, C).transpose(0, 1, 3, 2, 4, 5)
    out = out.reshape(B, pH, pW, C)
    if sum(ss) > 0:
        out = jnp.roll(out, (ss[0], ss[1]), axis=(1, 2))
    return out[:, :H, :W, :]


def reference_swin_v2_block(x, p, window_size, shift_size, num_heads):
    attn = reference_attention_v2(x, p, window_size, shift_size, num_heads)
    x = x + _layernorm(attn, p["ln1_g"], p["ln1_b"])
    h = x @ p["mlp_w1"].T + p["mlp_b1"]
    h = jax.nn.gelu(h, approximate=False)
    h = h @ p["mlp_w2"].T + p["mlp_b2"]
    return x + _layernorm(h, p["ln2_g"], p["ln2_b"])


# ----------------------------------------------------------------------------
# main
# ----------------------------------------------------------------------------
if __name__ == "__main__":
    dim = 32
    num_heads = 4
    window_size = [4, 4]
    shift_size = [2, 2]
    mlp_hidden = int(dim * 4.0)
    B, H, W = 2, 8, 8

    key = jax.random.PRNGKey(0)
    ks = jax.random.split(key, 20)
    xav1 = math.sqrt(6.0 / (dim + mlp_hidden))
    xav2 = math.sqrt(6.0 / (mlp_hidden + dim))

    params = {
        "ln1_g": 1.0 + 0.05 * jax.random.normal(ks[0], (dim,), jnp.float32),
        "ln1_b": 0.05 * jax.random.normal(ks[1], (dim,), jnp.float32),
        "ln2_g": 1.0 + 0.05 * jax.random.normal(ks[2], (dim,), jnp.float32),
        "ln2_b": 0.05 * jax.random.normal(ks[3], (dim,), jnp.float32),
        "qkv_w": jax.random.normal(ks[4], (3 * dim, dim), jnp.float32) * 0.1,
        "qkv_b": jax.random.normal(ks[5], (3 * dim,), jnp.float32) * 0.05,
        "proj_w": jax.random.normal(ks[6], (dim, dim), jnp.float32) * 0.1,
        "proj_b": jax.random.normal(ks[7], (dim,), jnp.float32) * 0.05,
        "logit_scale": (jnp.log(10.0 * jnp.ones((num_heads, 1, 1), jnp.float32))
                        + 0.1 * jax.random.normal(ks[8], (num_heads, 1, 1),
                                                  jnp.float32)),
        "cpb_w1": jax.random.normal(ks[9], (512, 2), jnp.float32) * 0.1,
        "cpb_b1": jax.random.normal(ks[10], (512,), jnp.float32) * 0.1,
        "cpb_w2": jax.random.normal(ks[11], (num_heads, 512), jnp.float32) * 0.05,
        "mlp_w1": jax.random.uniform(ks[12], (mlp_hidden, dim), jnp.float32,
                                     -xav1, xav1),
        "mlp_b1": jax.random.normal(ks[13], (mlp_hidden,), jnp.float32) * 1e-6,
        "mlp_w2": jax.random.uniform(ks[14], (dim, mlp_hidden), jnp.float32,
                                     -xav2, xav2),
        "mlp_b2": jax.random.normal(ks[15], (dim,), jnp.float32) * 1e-6,
    }

    x = jax.random.normal(ks[16], (B, H, W, dim), jnp.float32)

    ref = jax.block_until_ready(
        reference_swin_v2_block(x, params, window_size, shift_size, num_heads))

    # (1) f32-operand run: strict check of the kernel semantics against the
    #     module-faithful f32 reference (validation-only path).
    fwd_f32 = jax.jit(partial(swin_v2_block_forward, window_size=window_size,
                              shift_size=shift_size, num_heads=num_heads,
                              mm_dtype=jnp.float32))
    out_f32 = jax.block_until_ready(fwd_f32(x, params))
    assert out_f32.shape == (B, H, W, dim)
    np.testing.assert_allclose(np.asarray(out_f32), np.asarray(ref),
                               rtol=1e-3, atol=5e-3)

    # (2) bf16-operand run (the performance path).  bf16 operand noise is
    #     amplified by the cosine-attention logit scale (~10x) and the two
    #     post-norms, so it is checked at the bf16 envelope (global relative
    #     error) rather than elementwise f32 tolerances.
    fwd_bf16 = jax.jit(partial(swin_v2_block_forward, window_size=window_size,
                               shift_size=shift_size, num_heads=num_heads,
                               mm_dtype=jnp.bfloat16))
    out_bf16 = jax.block_until_ready(fwd_bf16(x, params))
    assert out_bf16.shape == (B, H, W, dim)
    rel_err = float(jnp.linalg.norm(out_bf16 - ref) / jnp.linalg.norm(ref))
    assert rel_err < 0.05, f"bf16 path relative error too large: {rel_err}"

    print("KERNEL_OK")
</pallas_src>

<mosaic_0001>
module attributes {stable_mosaic.version = 11 : i64} {
  func.func @_win_attn_ln_res_kernel(%arg0: i32, %arg1: memref<64x32xf32, #tpu.memory_space<vmem>>, %arg2: memref<32x96xf32, #tpu.memory_space<vmem>>, %arg3: memref<1x96xf32, #tpu.memory_space<vmem>>, %arg4: memref<32x32xf32, #tpu.memory_space<vmem>>, %arg5: memref<8x32xf32, #tpu.memory_space<vmem>>, %arg6: memref<4x16x16xf32, #tpu.memory_space<vmem>>, %arg7: memref<4x16x16xf32, #tpu.memory_space<vmem>>, %arg8: memref<64x32xf32, #tpu.memory_space<vmem>>) attributes {dimension_semantics = [#tpu.dimension_semantics<parallel>], iteration_bounds = array<i64: 2>, scalar_prefetch = 0 : i64, scratch_operands = 0 : i64, tpu.core_type = #tpu.core_type<tc>, window_params = [{transform_indices = @transform_0, window_bounds = array<i64: 64, 32>}, {pipeline_mode = #tpu.pipeline_mode<synchronous>, transform_indices = @transform_1, window_bounds = array<i64: 32, 96>}, {pipeline_mode = #tpu.pipeline_mode<synchronous>, transform_indices = @transform_2, window_bounds = array<i64: 1, 96>}, {pipeline_mode = #tpu.pipeline_mode<synchronous>, transform_indices = @transform_3, window_bounds = array<i64: 32, 32>}, {pipeline_mode = #tpu.pipeline_mode<synchronous>, transform_indices = @transform_4, window_bounds = array<i64: 8, 32>}, {pipeline_mode = #tpu.pipeline_mode<synchronous>, transform_indices = @transform_5, window_bounds = array<i64: 4, 16, 16>}, {pipeline_mode = #tpu.pipeline_mode<synchronous>, transform_indices = @transform_6, window_bounds = array<i64: 4, 16, 16>}, {transform_indices = @transform_7, window_bounds = array<i64: 64, 32>}]} {
    %c0 = arith.constant 0 : index
    %c0_0 = arith.constant 0 : index
    %0 = vector.load %arg1[%c0, %c0_0] : memref<64x32xf32, #tpu.memory_space<vmem>>, vector<64x32xf32>
    %c0_1 = arith.constant 0 : index
    %c0_2 = arith.constant 0 : index
    %1 = vector.load %arg2[%c0_1, %c0_2] : memref<32x96xf32, #tpu.memory_space<vmem>>, vector<32x96xf32>
    %cst = arith.constant dense<0.000000e+00> : vector<64x96xf32>
    %2 = tpu.matmul %0, %1, %cst {dimension_numbers = #tpu.dot_dimension_numbers<[1], [0], [0], [1], [0, 0, 1, 1], [], []>} : vector<64x32xf32>, vector<32x96xf32>, vector<64x96xf32> -> vector<64x96xf32>
    %c0_3 = arith.constant 0 : index
    %c0_4 = arith.constant 0 : index
    %3 = vector.load %arg3[%c0_3, %c0_4] : memref<1x96xf32, #tpu.memory_space<vmem>>, vector<1x96xf32>
    %4 = vector.broadcast %3 : vector<1x96xf32> to vector<64x96xf32>
    %5 = arith.addf %2, %4 : vector<64x96xf32>
    %6 = vector.extract_strided_slice %5 {offsets = [0, 0], sizes = [64, 32], strides = [1, 1]} : vector<64x96xf32> to vector<64x32xf32>
    %7 = vector.shape_cast %6 : vector<64x32xf32> to vector<4x16x32xf32>
    %8 = vector.extract_strided_slice %5 {offsets = [0, 32], sizes = [64, 32], strides = [1, 1]} : vector<64x96xf32> to vector<64x32xf32>
    %9 = vector.shape_cast %8 : vector<64x32xf32> to vector<4x16x32xf32>
    %10 = vector.extract_strided_slice %5 {offsets = [0, 64], sizes = [64, 32], strides = [1, 1]} : vector<64x96xf32> to vector<64x32xf32>
    %11 = vector.shape_cast %10 : vector<64x32xf32> to vector<4x16x32xf32>
    %c0_5 = arith.constant 0 : index
    %c0_6 = arith.constant 0 : index
    %12 = vector.load %arg5[%c0_5, %c0_6] : memref<8x32xf32, #tpu.memory_space<vmem>>, vector<8x32xf32>
    %13 = vector.extract_strided_slice %12 {offsets = [0, 0], sizes = [1, 32], strides = [1, 1]} : vector<8x32xf32> to vector<1x32xf32>
    %14 = vector.shape_cast %13 : vector<1x32xf32> to vector<32xf32>
    %15 = vector.extract_strided_slice %12 {offsets = [1, 0], sizes = [1, 32], strides = [1, 1]} : vector<8x32xf32> to vector<1x32xf32>
    %16 = vector.shape_cast %15 : vector<1x32xf32> to vector<32xf32>
    %17 = vector.extract_strided_slice %12 {offsets = [2, 0], sizes = [1, 32], strides = [1, 1]} : vector<8x32xf32> to vector<1x32xf32>
    %18 = vector.shape_cast %17 : vector<1x32xf32> to vector<32xf32>
    %19 = vector.extract_strided_slice %12 {offsets = [3, 0], sizes = [1, 32], strides = [1, 1]} : vector<8x32xf32> to vector<1x32xf32>
    %20 = vector.shape_cast %19 : vector<1x32xf32> to vector<32xf32>
    %21 = vector.extract_strided_slice %7 {offsets = [0, 0, 0], sizes = [4, 16, 8], strides = [1, 1, 1]} : vector<4x16x32xf32> to vector<4x16x8xf32>
    %22 = vector.extract_strided_slice %9 {offsets = [0, 0, 0], sizes = [4, 16, 8], strides = [1, 1, 1]} : vector<4x16x32xf32> to vector<4x16x8xf32>
    %23 = vector.extract_strided_slice %14 {offsets = [0], sizes = [8], strides = [1]} : vector<32xf32> to vector<8xf32>
    %24 = arith.mulf %21, %21 : vector<4x16x8xf32>
    %cst_7 = arith.constant dense<0.000000e+00> : vector<4x16xf32>
    %25 = vector.multi_reduction <add>, %24, %cst_7 [2] : vector<4x16x8xf32> to vector<4x16xf32>
    %26 = vector.shape_cast %25 : vector<4x16xf32> to vector<4x16x1xf32>
    %cst_8 = arith.constant 1.000000e-24 : f32
    %27 = vector.broadcast %cst_8 : f32 to vector<4x16x1xf32>
    %28 = arith.maximumf %26, %27 : vector<4x16x1xf32>
    %29 = math.rsqrt %28 : vector<4x16x1xf32>
    %30 = vector.shape_cast %23 : vector<8xf32> to vector<1x1x8xf32>
    %31 = vector.broadcast %30 : vector<1x1x8xf32> to vector<4x16x8xf32>
    %32 = vector.broadcast %29 : vector<4x16x1xf32> to vector<4x16x8xf32>
    %33 = arith.mulf %31, %32 : vector<4x16x8xf32>
    %34 = arith.mulf %21, %33 : vector<4x16x8xf32>
    %35 = arith.mulf %22, %22 : vector<4x16x8xf32>
    %cst_9 = arith.constant dense<0.000000e+00> : vector<4x16xf32>
    %36 = vector.multi_reduction <add>, %35, %cst_9 [2] : vector<4x16x8xf32> to vector<4x16xf32>
    %37 = vector.shape_cast %36 : vector<4x16xf32> to vector<4x16x1xf32>
    %cst_10 = arith.constant 1.000000e-24 : f32
    %38 = vector.broadcast %cst_10 : f32 to vector<4x16x1xf32>
    %39 = arith.maximumf %37, %38 : vector<4x16x1xf32>
    %40 = math.rsqrt %39 : vector<4x16x1xf32>
    %41 = vector.broadcast %40 : vector<4x16x1xf32> to vector<4x16x8xf32>
    %42 = arith.mulf %22, %41 : vector<4x16x8xf32>
    %43 = vector.extract_strided_slice %11 {offsets = [0, 0, 0], sizes = [4, 16, 8], strides = [1, 1, 1]} : vector<4x16x32xf32> to vector<4x16x8xf32>
    %44 = vector.extract_strided_slice %7 {offsets = [0, 0, 8], sizes = [4, 16, 8], strides = [1, 1, 1]} : vector<4x16x32xf32> to vector<4x16x8xf32>
    %45 = vector.extract_strided_slice %9 {offsets = [0, 0, 8], sizes = [4, 16, 8], strides = [1, 1, 1]} : vector<4x16x32xf32> to vector<4x16x8xf32>
    %46 = vector.extract_strided_slice %14 {offsets = [8], sizes = [8], strides = [1]} : vector<32xf32> to vector<8xf32>
    %47 = arith.mulf %44, %44 : vector<4x16x8xf32>
    %cst_11 = arith.constant dense<0.000000e+00> : vector<4x16xf32>
    %48 = vector.multi_reduction <add>, %47, %cst_11 [2] : vector<4x16x8xf32> to vector<4x16xf32>
    %49 = vector.shape_cast %48 : vector<4x16xf32> to vector<4x16x1xf32>
    %cst_12 = arith.constant 1.000000e-24 : f32
    %50 = vector.broadcast %cst_12 : f32 to vector<4x16x1xf32>
    %51 = arith.maximumf %49, %50 : vector<4x16x1xf32>
    %52 = math.rsqrt %51 : vector<4x16x1xf32>
    %53 = vector.shape_cast %46 : vector<8xf32> to vector<1x1x8xf32>
    %54 = vector.broadcast %53 : vector<1x1x8xf32> to vector<4x16x8xf32>
    %55 = vector.broadcast %52 : vector<4x16x1xf32> to vector<4x16x8xf32>
    %56 = arith.mulf %54, %55 : vector<4x16x8xf32>
    %57 = arith.mulf %44, %56 : vector<4x16x8xf32>
    %58 = arith.mulf %45, %45 : vector<4x16x8xf32>
    %cst_13 = arith.constant dense<0.000000e+00> : vector<4x16xf32>
    %59 = vector.multi_reduction <add>, %58, %cst_13 [2] : vector<4x16x8xf32> to vector<4x16xf32>
    %60 = vector.shape_cast %59 : vector<4x16xf32> to vector<4x16x1xf32>
    %cst_14 = arith.constant 1.000000e-24 : f32
    %61 = vector.broadcast %cst_14 : f32 to vector<4x16x1xf32>
    %62 = arith.maximumf %60, %61 : vector<4x16x1xf32>
    %63 = math.rsqrt %62 : vector<4x16x1xf32>
    %64 = vector.broadcast %63 : vector<4x16x1xf32> to vector<4x16x8xf32>
    %65 = arith.mulf %45, %64 : vector<4x16x8xf32>
    %66 = vector.extract_strided_slice %11 {offsets = [0, 0, 8], sizes = [4, 16, 8], strides = [1, 1, 1]} : vector<4x16x32xf32> to vector<4x16x8xf32>
    %67 = vector.extract_strided_slice %7 {offsets = [0, 0, 16], sizes = [4, 16, 8], strides = [1, 1, 1]} : vector<4x16x32xf32> to vector<4x16x8xf32>
    %68 = vector.extract_strided_slice %9 {offsets = [0, 0, 16], sizes = [4, 16, 8], strides = [1, 1, 1]} : vector<4x16x32xf32> to vector<4x16x8xf32>
    %69 = vector.extract_strided_slice %14 {offsets = [16], sizes = [8], strides = [1]} : vector<32xf32> to vector<8xf32>
    %70 = arith.mulf %67, %67 : vector<4x16x8xf32>
    %cst_15 = arith.constant dense<0.000000e+00> : vector<4x16xf32>
    %71 = vector.multi_reduction <add>, %70, %cst_15 [2] : vector<4x16x8xf32> to vector<4x16xf32>
    %72 = vector.shape_cast %71 : vector<4x16xf32> to vector<4x16x1xf32>
    %cst_16 = arith.constant 1.000000e-24 : f32
    %73 = vector.broadcast %cst_16 : f32 to vector<4x16x1xf32>
    %74 = arith.maximumf %72, %73 : vector<4x16x1xf32>
    %75 = math.rsqrt %74 : vector<4x16x1xf32>
    %76 = vector.shape_cast %69 : vector<8xf32> to vector<1x1x8xf32>
    %77 = vector.broadcast %76 : vector<1x1x8xf32> to vector<4x16x8xf32>
    %78 = vector.broadcast %75 : vector<4x16x1xf32> to vector<4x16x8xf32>
    %79 = arith.mulf %77, %78 : vector<4x16x8xf32>
    %80 = arith.mulf %67, %79 : vector<4x16x8xf32>
    %81 = arith.mulf %68, %68 : vector<4x16x8xf32>
    %cst_17 = arith.constant dense<0.000000e+00> : vector<4x16xf32>
    %82 = vector.multi_reduction <add>, %81, %cst_17 [2] : vector<4x16x8xf32> to vector<4x16xf32>
    %83 = vector.shape_cast %82 : vector<4x16xf32> to vector<4x16x1xf32>
    %cst_18 = arith.constant 1.000000e-24 : f32
    %84 = vector.broadcast %cst_18 : f32 to vector<4x16x1xf32>
    %85 = arith.maximumf %83, %84 : vector<4x16x1xf32>
    %86 = math.rsqrt %85 : vector<4x16x1xf32>
    %87 = vector.broadcast %86 : vector<4x16x1xf32> to vector<4x16x8xf32>
    %88 = arith.mulf %68, %87 : vector<4x16x8xf32>
    %89 = vector.extract_strided_slice %11 {offsets = [0, 0, 16], sizes = [4, 16, 8], strides = [1, 1, 1]} : vector<4x16x32xf32> to vector<4x16x8xf32>
    %90 = vector.extract_strided_slice %7 {offsets = [0, 0, 24], sizes = [4, 16, 8], strides = [1, 1, 1]} : vector<4x16x32xf32> to vector<4x16x8xf32>
    %91 = vector.extract_strided_slice %9 {offsets = [0, 0, 24], sizes = [4, 16, 8], strides = [1, 1, 1]} : vector<4x16x32xf32> to vector<4x16x8xf32>
    %92 = vector.extract_strided_slice %14 {offsets = [24], sizes = [8], strides = [1]} : vector<32xf32> to vector<8xf32>
    %93 = arith.mulf %90, %90 : vector<4x16x8xf32>
    %cst_19 = arith.constant dense<0.000000e+00> : vector<4x16xf32>
    %94 = vector.multi_reduction <add>, %93, %cst_19 [2] : vector<4x16x8xf32> to vector<4x16xf32>
    %95 = vector.shape_cast %94 : vector<4x16xf32> to vector<4x16x1xf32>
    %cst_20 = arith.constant 1.000000e-24 : f32
    %96 = vector.broadcast %cst_20 : f32 to vector<4x16x1xf32>
    %97 = arith.maximumf %95, %96 : vector<4x16x1xf32>
    %98 = math.rsqrt %97 : vector<4x16x1xf32>
    %99 = vector.shape_cast %92 : vector<8xf32> to vector<1x1x8xf32>
    %100 = vector.broadcast %99 : vector<1x1x8xf32> to vector<4x16x8xf32>
    %101 = vector.broadcast %98 : vector<4x16x1xf32> to vector<4x16x8xf32>
    %102 = arith.mulf %100, %101 : vector<4x16x8xf32>
    %103 = arith.mulf %90, %102 : vector<4x16x8xf32>
    %104 = arith.mulf %91, %91 : vector<4x16x8xf32>
    %cst_21 = arith.constant dense<0.000000e+00> : vector<4x16xf32>
    %105 = vector.multi_reduction <add>, %104, %cst_21 [2] : vector<4x16x8xf32> to vector<4x16xf32>
    %106 = vector.shape_cast %105 : vector<4x16xf32> to vector<4x16x1xf32>
    %cst_22 = arith.constant 1.000000e-24 : f32
    %107 = vector.broadcast %cst_22 : f32 to vector<4x16x1xf32>
    %108 = arith.maximumf %106, %107 : vector<4x16x1xf32>
    %109 = math.rsqrt %108 : vector<4x16x1xf32>
    %110 = vector.broadcast %109 : vector<4x16x1xf32> to vector<4x16x8xf32>
    %111 = arith.mulf %91, %110 : vector<4x16x8xf32>
    %112 = vector.extract_strided_slice %11 {offsets = [0, 0, 24], sizes = [4, 16, 8], strides = [1, 1, 1]} : vector<4x16x32xf32> to vector<4x16x8xf32>
    %113 = vector.shape_cast %34 : vector<4x16x8xf32> to vector<4x1x16x8xf32>
    %114 = vector.shape_cast %57 : vector<4x16x8xf32> to vector<4x1x16x8xf32>
    %115 = vector.shape_cast %80 : vector<4x16x8xf32> to vector<4x1x16x8xf32>
    %116 = vector.shape_cast %103 : vector<4x16x8xf32> to vector<4x1x16x8xf32>
    %117 = tpu.concatenate %113, %114, %115, %116 in 1 : vector<4x1x16x8xf32>, vector<4x1x16x8xf32>, vector<4x1x16x8xf32>, vector<4x1x16x8xf32> -> vector<4x4x16x8xf32>
    %118 = vector.shape_cast %117 : vector<4x4x16x8xf32> to vector<16x16x8xf32>
    %119 = vector.shape_cast %42 : vector<4x16x8xf32> to vector<4x1x16x8xf32>
    %120 = vector.shape_cast %65 : vector<4x16x8xf32> to vector<4x1x16x8xf32>
    %121 = vector.shape_cast %88 : vector<4x16x8xf32> to vector<4x1x16x8xf32>
    %122 = vector.shape_cast %111 : vector<4x16x8xf32> to vector<4x1x16x8xf32>
    %123 = tpu.concatenate %119, %120, %121, %122 in 1 : vector<4x1x16x8xf32>, vector<4x1x16x8xf32>, vector<4x1x16x8xf32>, vector<4x1x16x8xf32> -> vector<4x4x16x8xf32>
    %124 = vector.shape_cast %123 : vector<4x4x16x8xf32> to vector<16x16x8xf32>
    %125 = vector.shape_cast %43 : vector<4x16x8xf32> to vector<4x1x16x8xf32>
    %126 = vector.shape_cast %66 : vector<4x16x8xf32> to vector<4x1x16x8xf32>
    %127 = vector.shape_cast %89 : vector<4x16x8xf32> to vector<4x1x16x8xf32>
    %128 = vector.shape_cast %112 : vector<4x16x8xf32> to vector<4x1x16x8xf32>
    %129 = tpu.concatenate %125, %126, %127, %128 in 1 : vector<4x1x16x8xf32>, vector<4x1x16x8xf32>, vector<4x1x16x8xf32>, vector<4x1x16x8xf32> -> vector<4x4x16x8xf32>
    %130 = vector.shape_cast %129 : vector<4x4x16x8xf32> to vector<16x16x8xf32>
    "tpu.trace_start"() <{level = 10 : i32, message = "bnd,bmd->bnm"}> : () -> ()
    %cst_23 = arith.constant dense<0.000000e+00> : vector<16x16x16xf32>
    %131 = tpu.matmul %118, %124, %cst_23 {dimension_numbers = #tpu.dot_dimension_numbers<[2], [2], [1], [1], [0, 0, 0, 1, 1, 1], [0], [0]>} : vector<16x16x8xf32>, vector<16x16x8xf32>, vector<16x16x16xf32> -> vector<16x16x16xf32>
    "tpu.trace_stop"() : () -> ()
    %132 = vector.shape_cast %131 : vector<16x16x16xf32> to vector<1x4x4x16x16xf32>
    %c0_24 = arith.constant 0 : index
    %c0_25 = arith.constant 0 : index
    %c0_26 = arith.constant 0 : index
    %133 = vector.load %arg6[%c0_24, %c0_25, %c0_26] : memref<4x16x16xf32, #tpu.memory_space<vmem>>, vector<4x16x16xf32>
    %134 = vector.shape_cast %133 : vector<4x16x16xf32> to vector<1x1x4x16x16xf32>
    %135 = vector.broadcast %134 : vector<1x1x4x16x16xf32> to vector<1x4x4x16x16xf32>
    %136 = arith.addf %132, %135 : vector<1x4x4x16x16xf32>
    %c0_27 = arith.constant 0 : index
    %c0_28 = arith.constant 0 : index
    %c0_29 = arith.constant 0 : index
    %137 = vector.load %arg7[%c0_27, %c0_28, %c0_29] : memref<4x16x16xf32, #tpu.memory_space<vmem>>, vector<4x16x16xf32>
    %138 = vector.shape_cast %137 : vector<4x16x16xf32> to vector<1x4x1x16x16xf32>
    %139 = vector.broadcast %138 : vector<1x4x1x16x16xf32> to vector<1x4x4x16x16xf32>
    %140 = arith.addf %136, %139 : vector<1x4x4x16x16xf32>
    %141 = vector.shape_cast %140 : vector<1x4x4x16x16xf32> to vector<16x16x16xf32>
    %cst_30 = arith.constant dense<0xFF800000> : vector<16x16xf32>
    %142 = vector.multi_reduction <maximumf>, %141, %cst_30 [2] : vector<16x16x16xf32> to vector<16x16xf32>
    %143 = vector.shape_cast %142 : vector<16x16xf32> to vector<16x16x1xf32>
    %144 = vector.broadcast %143 : vector<16x16x1xf32> to vector<16x16x16xf32>
    %145 = arith.subf %141, %144 : vector<16x16x16xf32>
    %146 = math.exp %145 : vector<16x16x16xf32>
    %cst_31 = arith.constant dense<0.000000e+00> : vector<16x16xf32>
    %147 = vector.multi_reduction <add>, %146, %cst_31 [2] : vector<16x16x16xf32> to vector<16x16xf32>
    %148 = vector.shape_cast %147 : vector<16x16xf32> to vector<16x16x1xf32>
    "tpu.trace_start"() <{level = 10 : i32, message = "bnm,bmd->bnd"}> : () -> ()
    %cst_32 = arith.constant dense<0.000000e+00> : vector<16x16x8xf32>
    %149 = tpu.matmul %146, %130, %cst_32 {dimension_numbers = #tpu.dot_dimension_numbers<[2], [1], [1], [2], [0, 0, 0, 1, 1, 2], [0], [0]>} : vector<16x16x16xf32>, vector<16x16x8xf32>, vector<16x16x8xf32> -> vector<16x16x8xf32>
    "tpu.trace_stop"() : () -> ()
    %150 = tpu.reciprocal %148 : vector<16x16x1xf32> -> vector<16x16x1xf32>
    %151 = vector.broadcast %150 : vector<16x16x1xf32> to vector<16x16x8xf32>
    %152 = arith.mulf %149, %151 : vector<16x16x8xf32>
    %153 = vector.shape_cast %152 : vector<16x16x8xf32> to vector<4x4x16x8xf32>
    %154 = vector.extract_strided_slice %153 {offsets = [0, 0, 0, 0], sizes = [4, 1, 16, 8], strides = [1, 1, 1, 1]} : vector<4x4x16x8xf32> to vector<4x1x16x8xf32>
    %155 = vector.shape_cast %154 : vector<4x1x16x8xf32> to vector<4x16x8xf32>
    %156 = vector.shape_cast %155 : vector<4x16x8xf32> to vector<64x8xf32>
    %157 = vector.extract_strided_slice %153 {offsets = [0, 1, 0, 0], sizes = [4, 1, 16, 8], strides = [1, 1, 1, 1]} : vector<4x4x16x8xf32> to vector<4x1x16x8xf32>
    %158 = vector.shape_cast %157 : vector<4x1x16x8xf32> to vector<4x16x8xf32>
    %159 = vector.shape_cast %158 : vector<4x16x8xf32> to vector<64x8xf32>
    %160 = vector.extract_strided_slice %153 {offsets = [0, 2, 0, 0], sizes = [4, 1, 16, 8], strides = [1, 1, 1, 1]} : vector<4x4x16x8xf32> to vector<4x1x16x8xf32>
    %161 = vector.shape_cast %160 : vector<4x1x16x8xf32> to vector<4x16x8xf32>
    %162 = vector.shape_cast %161 : vector<4x16x8xf32> to vector<64x8xf32>
    %163 = vector.extract_strided_slice %153 {offsets = [0, 3, 0, 0], sizes = [4, 1, 16, 8], strides = [1, 1, 1, 1]} : vector<4x4x16x8xf32> to vector<4x1x16x8xf32>
    %164 = vector.shape_cast %163 : vector<4x1x16x8xf32> to vector<4x16x8xf32>
    %165 = vector.shape_cast %164 : vector<4x16x8xf32> to vector<64x8xf32>
    %166 = tpu.concatenate %156, %159, %162, %165 in 1 : vector<64x8xf32>, vector<64x8xf32>, vector<64x8xf32>, vector<64x8xf32> -> vector<64x32xf32>
    %c0_33 = arith.constant 0 : index
    %c0_34 = arith.constant 0 : index
    %167 = vector.load %arg4[%c0_33, %c0_34] : memref<32x32xf32, #tpu.memory_space<vmem>>, vector<32x32xf32>
    %cst_35 = arith.constant dense<0.000000e+00> : vector<64x32xf32>
    %168 = tpu.matmul %166, %167, %cst_35 {dimension_numbers = #tpu.dot_dimension_numbers<[1], [0], [0], [1], [0, 0, 1, 1], [], []>} : vector<64x32xf32>, vector<32x32xf32>, vector<64x32xf32> -> vector<64x32xf32>
    %169 = vector.shape_cast %16 : vector<32xf32> to vector<1x32xf32>
    %170 = vector.broadcast %169 : vector<1x32xf32> to vector<64x32xf32>
    %171 = arith.addf %168, %170 : vector<64x32xf32>
    %cst_36 = arith.constant dense<0.000000e+00> : vector<64xf32>
    %172 = vector.multi_reduction <add>, %171, %cst_36 [1] : vector<64x32xf32> to vector<64xf32>
    %173 = vector.shape_cast %172 : vector<64xf32> to vector<64x1xf32>
    %cst_37 = arith.constant 3.200000e+01 : f32
    %174 = vector.broadcast %cst_37 : f32 to vector<64x1xf32>
    %175 = arith.divf %173, %174 : vector<64x1xf32>
    %176 = vector.broadcast %175 : vector<64x1xf32> to vector<64x32xf32>
    %177 = arith.subf %171, %176 : vector<64x32xf32>
    %178 = arith.mulf %177, %177 : vector<64x32xf32>
    %cst_38 = arith.constant dense<0.000000e+00> : vector<64xf32>
    %179 = vector.multi_reduction <add>, %178, %cst_38 [1] : vector<64x32xf32> to vector<64xf32>
    %180 = vector.shape_cast %179 : vector<64xf32> to vector<64x1xf32>
    %cst_39 = arith.constant 3.200000e+01 : f32
    %181 = vector.broadcast %cst_39 : f32 to vector<64x1xf32>
    %182 = arith.divf %180, %181 : vector<64x1xf32>
    %183 = vector.broadcast %175 : vector<64x1xf32> to vector<64x32xf32>
    %184 = arith.subf %171, %183 : vector<64x32xf32>
    %cst_40 = arith.constant 9.99999974E-6 : f32
    %185 = vector.broadcast %cst_40 : f32 to vector<64x1xf32>
    %186 = arith.addf %182, %185 : vector<64x1xf32>
    %187 = math.rsqrt %186 : vector<64x1xf32>
    %188 = vector.broadcast %187 : vector<64x1xf32> to vector<64x32xf32>
    %189 = arith.mulf %184, %188 : vector<64x32xf32>
    %190 = vector.shape_cast %18 : vector<32xf32> to vector<1x32xf32>
    %191 = vector.broadcast %190 : vector<1x32xf32> to vector<64x32xf32>
    %192 = arith.mulf %189, %191 : vector<64x32xf32>
    %193 = vector.shape_cast %20 : vector<32xf32> to vector<1x32xf32>
    %194 = vector.broadcast %193 : vector<1x32xf32> to vector<64x32xf32>
    %195 = arith.addf %192, %194 : vector<64x32xf32>
    %196 = arith.addf %0, %195 : vector<64x32xf32>
    %c0_41 = arith.constant 0 : index
    %c0_42 = arith.constant 0 : index
    %197 = vector.load %arg8[%c0_41, %c0_42] : memref<64x32xf32, #tpu.memory_space<vmem>>, vector<64x32xf32>
    tpu.vector_store %arg8[%c0_41, %c0_42], %196 {strides = array<i32>} : memref<64x32xf32, #tpu.memory_space<vmem>>, vector<64x32xf32>,
    return
  }
  func.func @transform_0(%arg0: i32) -> (i32, i32) {
    %c0_i32 = arith.constant 0 : i32
    %c0_i32_0 = arith.constant 0 : i32
    return %arg0, %c0_i32 : i32, i32
  }
  func.func @transform_1(%arg0: i32) -> (i32, i32) {
    %c0_i32 = arith.constant 0 : i32
    %c0_i32_0 = arith.constant 0 : i32
    %c0_i32_1 = arith.constant 0 : i32
    return %c0_i32, %c0_i32_0 : i32, i32
  }
  func.func @transform_2(%arg0: i32) -> (i32, i32) {
    %c0_i32 = arith.constant 0 : i32
    %c0_i32_0 = arith.constant 0 : i32
    %c0_i32_1 = arith.constant 0 : i32
    return %c0_i32, %c0_i32_0 : i32, i32
  }
  func.func @transform_3(%arg0: i32) -> (i32, i32) {
    %c0_i32 = arith.constant 0 : i32
    %c0_i32_0 = arith.constant 0 : i32
    %c0_i32_1 = arith.constant 0 : i32
    return %c0_i32, %c0_i32_0 : i32, i32
  }
  func.func @transform_4(%arg0: i32) -> (i32, i32) {
    %c0_i32 = arith.constant 0 : i32
    %c0_i32_0 = arith.constant 0 : i32
    %c0_i32_1 = arith.constant 0 : i32
    return %c0_i32, %c0_i32_0 : i32, i32
  }
  func.func @transform_5(%arg0: i32) -> (i32, i32, i32) {
    %c0_i32 = arith.constant 0 : i32
    %c0_i32_0 = arith.constant 0 : i32
    %c0_i32_1 = arith.constant 0 : i32
    %c0_i32_2 = arith.constant 0 : i32
    return %c0_i32, %c0_i32_0, %c0_i32_1 : i32, i32, i32
  }
  func.func @transform_6(%arg0: i32) -> (i32, i32, i32) {
    %c0_i32 = arith.constant 0 : i32
    %c0_i32_0 = arith.constant 0 : i32
    %c0_i32_1 = arith.constant 0 : i32
    %c0_i32_2 = arith.constant 0 : i32
    return %c0_i32, %c0_i32_0, %c0_i32_1 : i32, i32, i32
  }
  func.func @transform_7(%arg0: i32) -> (i32, i32) {
    %c0_i32 = arith.constant 0 : i32
    %c0_i32_0 = arith.constant 0 : i32
    return %arg0, %c0_i32 : i32, i32
  }
}

module attributes {stable_mosaic.version = 11 : i64} {
  func.func @_mlp_ln_res_kernel(%arg0: i32, %arg1: memref<64x32xf32, #tpu.memory_space<vmem>>, %arg2: memref<32x128xf32, #tpu.memory_space<vmem>>, %arg3: memref<1x128xf32, #tpu.memory_space<vmem>>, %arg4: memref<128x32xf32, #tpu.memory_space<vmem>>, %arg5: memref<8x32xf32, #tpu.memory_space<vmem>>, %arg6: memref<64x32xf32, #tpu.memory_space<vmem>>) attributes {dimension_semantics = [#tpu.dimension_semantics<parallel>], iteration_bounds = array<i64: 2>, scalar_prefetch = 0 : i64, scratch_operands = 0 : i64, tpu.core_type = #tpu.core_type<tc>, window_params = [{transform_indices = @transform_0, window_bounds = array<i64: 64, 32>}, {pipeline_mode = #tpu.pipeline_mode<synchronous>, transform_indices = @transform_1, window_bounds = array<i64: 32, 128>}, {pipeline_mode = #tpu.pipeline_mode<synchronous>, transform_indices = @transform_2, window_bounds = array<i64: 1, 128>}, {pipeline_mode = #tpu.pipeline_mode<synchronous>, transform_indices = @transform_3, window_bounds = array<i64: 128, 32>}, {pipeline_mode = #tpu.pipeline_mode<synchronous>, transform_indices = @transform_4, window_bounds = array<i64: 8, 32>}, {transform_indices = @transform_5, window_bounds = array<i64: 64, 32>}]} {
    %c0 = arith.constant 0 : index
    %c0_0 = arith.constant 0 : index
    %0 = vector.load %arg1[%c0, %c0_0] : memref<64x32xf32, #tpu.memory_space<vmem>>, vector<64x32xf32>
    %c0_1 = arith.constant 0 : index
    %c0_2 = arith.constant 0 : index
    %1 = vector.load %arg5[%c0_1, %c0_2] : memref<8x32xf32, #tpu.memory_space<vmem>>, vector<8x32xf32>
    %c0_3 = arith.constant 0 : index
    %c0_4 = arith.constant 0 : index
    %2 = vector.load %arg2[%c0_3, %c0_4] : memref<32x128xf32, #tpu.memory_space<vmem>>, vector<32x128xf32>
    %cst = arith.constant dense<0.000000e+00> : vector<64x128xf32>
    %3 = tpu.matmul %0, %2, %cst {dimension_numbers = #tpu.dot_dimension_numbers<[1], [0], [0], [1], [0, 0, 1, 1], [], []>} : vector<64x32xf32>, vector<32x128xf32>, vector<64x128xf32> -> vector<64x128xf32>
    %c0_5 = arith.constant 0 : index
    %c0_6 = arith.constant 0 : index
    %4 = vector.load %arg3[%c0_5, %c0_6] : memref<1x128xf32, #tpu.memory_space<vmem>>, vector<1x128xf32>
    %5 = vector.broadcast %4 : vector<1x128xf32> to vector<64x128xf32>
    %6 = arith.addf %3, %5 : vector<64x128xf32>
    %cst_7 = arith.constant 0.707106769 : f32
    %7 = vector.broadcast %cst_7 : f32 to vector<64x128xf32>
    %8 = arith.mulf %6, %7 : vector<64x128xf32>
    %9 = math.absf %8 : vector<64x128xf32>
    %cst_8 = arith.constant 0.327591091 : f32
    %10 = vector.broadcast %cst_8 : f32 to vector<64x128xf32>
    %11 = arith.mulf %10, %9 : vector<64x128xf32>
    %cst_9 = arith.constant 1.000000e+00 : f32
    %12 = vector.broadcast %cst_9 : f32 to vector<64x128xf32>
    %13 = arith.addf %12, %11 : vector<64x128xf32>
    %14 = tpu.reciprocal %13 : vector<64x128xf32> -> vector<64x128xf32>
    %cst_10 = arith.constant 1.06140542 : f32
    %15 = vector.broadcast %cst_10 : f32 to vector<64x128xf32>
    %16 = arith.mulf %15, %14 : vector<64x128xf32>
    %cst_11 = arith.constant -1.45315206 : f32
    %17 = vector.broadcast %cst_11 : f32 to vector<64x128xf32>
    %18 = arith.addf %16, %17 : vector<64x128xf32>
    %19 = arith.mulf %18, %14 : vector<64x128xf32>
    %cst_12 = arith.constant 1.42141378 : f32
    %20 = vector.broadcast %cst_12 : f32 to vector<64x128xf32>
    %21 = arith.addf %19, %20 : vector<64x128xf32>
    %22 = arith.mulf %21, %14 : vector<64x128xf32>
    %cst_13 = arith.constant -0.284496725 : f32
    %23 = vector.broadcast %cst_13 : f32 to vector<64x128xf32>
    %24 = arith.addf %22, %23 : vector<64x128xf32>
    %25 = arith.mulf %24, %14 : vector<64x128xf32>
    %cst_14 = arith.constant 0.254829586 : f32
    %26 = vector.broadcast %cst_14 : f32 to vector<64x128xf32>
    %27 = arith.addf %25, %26 : vector<64x128xf32>
    %28 = arith.mulf %27, %14 : vector<64x128xf32>
    %cst_15 = arith.constant 0.000000e+00 : f32
    %29 = vector.broadcast %cst_15 : f32 to vector<64x128xf32>
    %30 = arith.cmpf oge, %8, %29 : vector<64x128xf32>
    %cst_16 = arith.constant 1.000000e+00 : f32
    %cst_17 = arith.constant -1.000000e+00 : f32
    %31 = vector.broadcast %cst_16 : f32 to vector<64x128xf32>
    %32 = vector.broadcast %cst_17 : f32 to vector<64x128xf32>
    %33 = arith.select %30, %31, %32 : vector<64x128xi1>, vector<64x128xf32>
    %cst_18 = arith.constant 0.000000e+00 : f32
    %34 = vector.broadcast %cst_18 : f32 to vector<64x128xf32>
    %35 = arith.subf %34, %9 : vector<64x128xf32>
    %36 = arith.mulf %35, %9 : vector<64x128xf32>
    %37 = math.exp %36 : vector<64x128xf32>
    %38 = arith.mulf %28, %37 : vector<64x128xf32>
    %cst_19 = arith.constant 1.000000e+00 : f32
    %39 = vector.broadcast %cst_19 : f32 to vector<64x128xf32>
    %40 = arith.subf %39, %38 : vector<64x128xf32>
    %41 = arith.mulf %33, %40 : vector<64x128xf32>
    %cst_20 = arith.constant 5.000000e-01 : f32
    %42 = vector.broadcast %cst_20 : f32 to vector<64x128xf32>
    %43 = arith.mulf %42, %6 : vector<64x128xf32>
    %cst_21 = arith.constant 1.000000e+00 : f32
    %44 = vector.broadcast %cst_21 : f32 to vector<64x128xf32>
    %45 = arith.addf %44, %41 : vector<64x128xf32>
    %46 = arith.mulf %43, %45 : vector<64x128xf32>
    %c0_22 = arith.constant 0 : index
    %c0_23 = arith.constant 0 : index
    %47 = vector.load %arg4[%c0_22, %c0_23] : memref<128x32xf32, #tpu.memory_space<vmem>>, vector<128x32xf32>
    %cst_24 = arith.constant dense<0.000000e+00> : vector<64x32xf32>
    %48 = tpu.matmul %46, %47, %cst_24 {dimension_numbers = #tpu.dot_dimension_numbers<[1], [0], [0], [1], [0, 0, 1, 1], [], []>} : vector<64x128xf32>, vector<128x32xf32>, vector<64x32xf32> -> vector<64x32xf32>
    %49 = vector.extract_strided_slice %1 {offsets = [0, 0], sizes = [1, 32], strides = [1, 1]} : vector<8x32xf32> to vector<1x32xf32>
    %50 = vector.shape_cast %49 : vector<1x32xf32> to vector<32xf32>
    %51 = vector.shape_cast %50 : vector<32xf32> to vector<1x32xf32>
    %52 = vector.broadcast %51 : vector<1x32xf32> to vector<64x32xf32>
    %53 = arith.addf %48, %52 : vector<64x32xf32>
    %54 = vector.extract_strided_slice %1 {offsets = [1, 0], sizes = [1, 32], strides = [1, 1]} : vector<8x32xf32> to vector<1x32xf32>
    %55 = vector.shape_cast %54 : vector<1x32xf32> to vector<32xf32>
    %56 = vector.extract_strided_slice %1 {offsets = [2, 0], sizes = [1, 32], strides = [1, 1]} : vector<8x32xf32> to vector<1x32xf32>
    %57 = vector.shape_cast %56 : vector<1x32xf32> to vector<32xf32>
    %cst_25 = arith.constant dense<0.000000e+00> : vector<64xf32>
    %58 = vector.multi_reduction <add>, %53, %cst_25 [1] : vector<64x32xf32> to vector<64xf32>
    %59 = vector.shape_cast %58 : vector<64xf32> to vector<64x1xf32>
    %cst_26 = arith.constant 3.200000e+01 : f32
    %60 = vector.broadcast %cst_26 : f32 to vector<64x1xf32>
    %61 = arith.divf %59, %60 : vector<64x1xf32>
    %62 = vector.broadcast %61 : vector<64x1xf32> to vector<64x32xf32>
    %63 = arith.subf %53, %62 : vector<64x32xf32>
    %64 = arith.mulf %63, %63 : vector<64x32xf32>
    %cst_27 = arith.constant dense<0.000000e+00> : vector<64xf32>
    %65 = vector.multi_reduction <add>, %64, %cst_27 [1] : vector<64x32xf32> to vector<64xf32>
    %66 = vector.shape_cast %65 : vector<64xf32> to vector<64x1xf32>
    %cst_28 = arith.constant 3.200000e+01 : f32
    %67 = vector.broadcast %cst_28 : f32 to vector<64x1xf32>
    %68 = arith.divf %66, %67 : vector<64x1xf32>
    %69 = vector.broadcast %61 : vector<64x1xf32> to vector<64x32xf32>
    %70 = arith.subf %53, %69 : vector<64x32xf32>
    %cst_29 = arith.constant 9.99999974E-6 : f32
    %71 = vector.broadcast %cst_29 : f32 to vector<64x1xf32>
    %72 = arith.addf %68, %71 : vector<64x1xf32>
    %73 = math.rsqrt %72 : vector<64x1xf32>
    %74 = vector.broadcast %73 : vector<64x1xf32> to vector<64x32xf32>
    %75 = arith.mulf %70, %74 : vector<64x32xf32>
    %76 = vector.shape_cast %55 : vector<32xf32> to vector<1x32xf32>
    %77 = vector.broadcast %76 : vector<1x32xf32> to vector<64x32xf32>
    %78 = arith.mulf %75, %77 : vector<64x32xf32>
    %79 = vector.shape_cast %57 : vector<32xf32> to vector<1x32xf32>
    %80 = vector.broadcast %79 : vector<1x32xf32> to vector<64x32xf32>
    %81 = arith.addf %78, %80 : vector<64x32xf32>
    %82 = arith.addf %0, %81 : vector<64x32xf32>
    %c0_30 = arith.constant 0 : index
    %c0_31 = arith.constant 0 : index
    %83 = vector.load %arg6[%c0_30, %c0_31] : memref<64x32xf32, #tpu.memory_space<vmem>>, vector<64x32xf32>
    tpu.vector_store %arg6[%c0_30, %c0_31], %82 {strides = array<i32>} : memref<64x32xf32, #tpu.memory_space<vmem>>, vector<64x32xf32>,
    return
  }
  func.func @transform_0(%arg0: i32) -> (i32, i32) {
    %c0_i32 = arith.constant 0 : i32
    %c0_i32_0 = arith.constant 0 : i32
    return %arg0, %c0_i32 : i32, i32
  }
  func.func @transform_1(%arg0: i32) -> (i32, i32) {
    %c0_i32 = arith.constant 0 : i32
    %c0_i32_0 = arith.constant 0 : i32
    %c0_i32_1 = arith.constant 0 : i32
    return %c0_i32, %c0_i32_0 : i32, i32
  }
  func.func @transform_2(%arg0: i32) -> (i32, i32) {
    %c0_i32 = arith.constant 0 : i32
    %c0_i32_0 = arith.constant 0 : i32
    %c0_i32_1 = arith.constant 0 : i32
    return %c0_i32, %c0_i32_0 : i32, i32
  }
  func.func @transform_3(%arg0: i32) -> (i32, i32) {
    %c0_i32 = arith.constant 0 : i32
    %c0_i32_0 = arith.constant 0 : i32
    %c0_i32_1 = arith.constant 0 : i32
    return %c0_i32, %c0_i32_0 : i32, i32
  }
  func.func @transform_4(%arg0: i32) -> (i32, i32) {
    %c0_i32 = arith.constant 0 : i32
    %c0_i32_0 = arith.constant 0 : i32
    %c0_i32_1 = arith.constant 0 : i32
    return %c0_i32, %c0_i32_0 : i32, i32
  }
  func.func @transform_5(%arg0: i32) -> (i32, i32) {
    %c0_i32 = arith.constant 0 : i32
    %c0_i32_0 = arith.constant 0 : i32
    return %arg0, %c0_i32 : i32, i32
  }
}

</mosaic_0001>

<bundles_post_ra>
// kernel: swin_v2_block_forward.3
= control target key start
LH: loop header
LB: loop body
LE: loop exit
PB: predicated region body
PF: predicated region fallthrough
CT: control target
= control target key end

     0   :  { %10 = vsyncpa [#allocation3], 0  ;;  %s1732_s0 = inlined_call_operand.vmem [shape: f32[128,32], index: 0, kind: input, shape index: {}]   ;;  %s1733_s1 = inlined_call_operand.vmem [shape: f32[32,128], index: 1, kind: input, shape index: {}]   ;;  %s1734_s2 = inlined_call_operand.vmem [shape: f32[1,128], index: 2, kind: input, shape index: {}]   ;;  %s1735_s3 = inlined_call_operand.vmem [shape: f32[128,32], index: 3, kind: input, shape index: {}]   ;;  %s1736_s4 = inlined_call_operand.vmem [shape: f32[8,32], index: 4, kind: input, shape index: {}]   ;;  %s1737_s5 = inlined_call_operand.hbm [shape: f32[128,32], index: 5, kind: output, shape index: {}]  }
   0x1   :  { %12 = vsyncpa [#allocation3 + $0x1], 0  ;;  %s1296_s18 = smov 0   ;;  %s1298_s19 = smov 0  }
   0x2   :  { %s1300_s20 = smov 0   ;;  %s1302_s21 = smov 0  }
   0x3 LB: > { %s1317_s22 = sadd.s32 4294967295, %s1260_s21   ;;  %s930_s23 = sadd.s32 4294967294, %s1260_s21   ;;  %s1260_s21 = sphi %s1302_s21, %s1743_s21   ;;  %s1256_s20 = sphi %s1300_s20, %s1742_s20   ;;  %s1252_s19 = sphi %s1298_s19, %s1741_s19   ;;  %s1248_s18 = sphi %s1296_s18, %s1740_s18  }
   0x4   : > { %s1321_s24 = sadd.s32 1, %s1260_s21   ;;  %s135_s25 = sadd.s32 1, %s1256_s20 }
   0x5   : > { %s132_s26 = ssub.s32 %s1260_s21, %s1321_s24  ;;  %p145_p0 = scmp.ne.s32.totalorder %s1256_s20, %s1252_s19 }
   0x6   : > { %p133_p1 = scmp.eq.s32.totalorder %s132_s26, 0  ;;  %p146_p2 = scmp.eq.s32.totalorder %s1317_s22, 1 }
   0x7   : > { %p151_p3 = scmp.ne.s32.totalorder %s1252_s19, %s1248_s18  ;;  %p152_p4 = scmp.eq.s32.totalorder %s930_s23, 1 }
   0x8   : > { %s1332_s27 = scalar_select %p133_p1, %s1256_s20, %s135_s25  }
   0x9   : > { %p1334_p5 = por %p146_p2, %p145_p0  ;;  %p1338_p6 = por %p152_p4, %p151_p3 }
   0xa   : > { %p933_p7 = scmp.ge.s32.totalorder %s1260_s21, 1  ;;  %p191_p8 = scmp.lt.s32.totalorder %s1260_s21, 3 }
   0xc   : > { %p192_p9 = pnand %p933_p7, %p191_p8 }
   0xd   : > { %v235_v0 = vld [vmem:[%s1733_s1] sm:$0xff] (!%p192_p9)  ;;  %v236_v1 = vld [vmem:[%s1733_s1 + $0x8] sm:$0xff] (!%p192_p9)  ;;  %v237_v2 = vld [vmem:[%s1733_s1 + $0x10] sm:$0xff] (!%p192_p9)  ;;  %s935_s11 = sshll.u32 (!%p192_p9), %s1317_s22, 3  ;;  %vm246_vm0 = vcmask (!%p192_p9), 261120   ;;  %s216_s6 = sand.u32 (!%p192_p9), 1, %s1252_s19  }
   0xe   : > { %195 = sbr.rel (%p192_p9) target bundleno = 851 (0x353), region = 40  ;;  %v1052_v3 = vpack.c.bf16 (!%p192_p9), %v236_v1, %v235_v0  ;;  %v238_v4 = vld [vmem:[%s1733_s1 + $0x18] sm:$0xff] (!%p192_p9)  ;;  %p220_p10 = scmp.lt.s32.totalorder (!%p192_p9), %s935_s11, 15  ;;  %v584_v14 = vld [vmem:[%s1735_s3] sm:$0xff] (!%p192_p9)  ;;  %v585_v15 = vld [vmem:[%s1735_s3 + $0x8] sm:$0xff] (!%p192_p9) }
   0xf   : > { %v1056_v5 = vpack.c.bf16 (!%p192_p9), %v238_v4, %v237_v2  ;;  %v1060_v16 = vpack.c.bf16 (!%p192_p9), %v585_v15, %v584_v14  ;;  %v586_v17 = vld [vmem:[%s1735_s3 + $0x10] sm:$0xff] (!%p192_p9)  ;;  %v587_v18 = vld [vmem:[%s1735_s3 + $0x18] sm:$0xff] (!%p192_p9)  ;;  %v588_v20 = vld [vmem:[%s1735_s3 + $0x20] sm:$0xff] (!%p192_p9)  ;;  %s934_s7 = sshll.u32 (!%p192_p9), %s216_s6, 6  ;;  %s951_s9 = sshll.u32 (!%p192_p9), %s1317_s22, 10 }
  0x10   : > { %1053 = vmatprep.subr.bf16.mxu0 (!%p192_p9), %v1052_v3  ;;  %v1064_v19 = vpack.c.bf16 (!%p192_p9), %v587_v18, %v586_v17  ;;  %v589_v21 = vld [vmem:[%s1735_s3 + $0x28] sm:$0xff] (!%p192_p9)  ;;  %v590_v23 = vld [vmem:[%s1735_s3 + $0x30] sm:$0xff] (!%p192_p9)  ;;  %v591_v24 = vld [vmem:[%s1735_s3 + $0x38] sm:$0xff] (!%p192_p9)  ;;  %s1650_s8 = scalar_lea.vmem (!%p192_p9), [#allocation2], %s934_s7  ;;  %s1680_s13 = scalar_lea.hbm (!%p192_p9), %s1737_s5, %s951_s9 }
  0x11   : > { %1055 = vmatpush3.bf16.msra.mxu0 (!%p192_p9), %v1052_v3  ;;  %1092 = vmatprep.subr.bf16.mxu1 (!%p192_p9), %v1060_v16  ;;  %v1068_v22 = vpack.c.bf16 (!%p192_p9), %v589_v21, %v588_v20  ;;  %v1072_v25 = vpack.c.bf16 (!%p192_p9), %v591_v24, %v590_v23  ;;  %v592_v26 = vld [vmem:[%s1735_s3 + $0x40] sm:$0xff] (!%p192_p9)  ;;  %v593_v27 = vld [vmem:[%s1735_s3 + $0x48] sm:$0xff] (!%p192_p9)  ;;  %v594_v29 = vld [vmem:[%s1735_s3 + $0x50] sm:$0xff] (!%p192_p9)  ;;  %s868_s10 = sshll.u32 (!%p192_p9), %s1650_s8, 4  ;;  %s1691_s22 = scalar_lea.sflag (!%p192_p9), [#allocation3], %s216_s6  ;;  %s1682_s10 = int_to_ptr.vmem [resolvable:$true] %s868_s10 }
  0x12   : > { %1057 = vmatprep.subr.bf16.mxu0 (!%p192_p9), %v1056_v5  ;;  %1100 = vmatpush3.bf16.msra.mxu1 (!%p192_p9), %v1060_v16  ;;  %v1076_v28 = vpack.c.bf16 (!%p192_p9), %v593_v27, %v592_v26  ;;  %v595_v30 = vld [vmem:[%s1735_s3 + $0x58] sm:$0xff] (!%p192_p9)  ;;  %v596_v32 = vld [vmem:[%s1735_s3 + $0x60] sm:$0xff] (!%p192_p9)  ;;  %v597_v33 = vld [vmem:[%s1735_s3 + $0x68] sm:$0xff] (!%p192_p9)  ;;  %v1262_v26 = vmov (!%p192_p9), -1.0   ;;  %s1263_s15 = smov (!%p192_p9), [#allocation2]  }
  0x13   : > { %1093 = vmatprep.subr.bf16.mxu1 (!%p192_p9), %v1064_v19  ;;  %v1080_v31 = vpack.c.bf16 (!%p192_p9), %v595_v30, %v594_v29  ;;  %v598_v34 = vld [vmem:[%s1735_s3 + $0x70] sm:$0xff] (!%p192_p9)  ;;  %v1084_v35 = vpack.c.bf16 (!%p192_p9), %v597_v33, %v596_v32  ;;  %v599_v36 = vld [vmem:[%s1735_s3 + $0x78] sm:$0xff] (!%p192_p9)  ;;  %v937_v38 = vld [vmem:[%s1734_s2] ss:$0 sm:$0xff] (!%p192_p9)  ;;  %s1202_s16 = sshll.u32 (!%p192_p9), %s1263_s15, 4  ;;  %s1203_s16 = int_to_ptr.vmem [resolvable:$false] %s1202_s16 }
  0x14   : > { %v1088_v37 = vpack.c.bf16 (!%p192_p9), %v599_v36, %v598_v34  ;;  %p1205_p0 = scmp.lt.s32.totalorder (!%p192_p9), %s1682_s10, %s1203_s16 }
  0x15   : > { %s1745_s11 = smov (!%p220_p10, %s935_s11), 15  ;;  %1059 = vmatpush3.bf16.msra.mxu0 %v1056_v5 }
  0x16   : > { %s936_s14 = sshll.u32 %s1745_s11, 3  ;;  %1061 = vmatprep.subr.bf16.mxu0 %v1060_v16  ;;  %1101 = vmatpush3.bf16.msra.mxu1 %v1064_v19 }
  0x17   : > { %s223_s17 = scalar_lea.vmem %s1732_s0, %s936_s14  ;;  %1094 = vmatprep.subr.bf16.mxu1 %v1068_v22  ;;  %s1198_s14 = scalar_lea.vmem %s1682_s10, 1024 }
  0x18   : > { %v1360_v6 = vld [vmem:[%s223_s17] sm:$0xff]  ;;  %v1364_v7 = vld [vmem:[%s223_s17 + $0x8] sm:$0xff]  ;;  %v1366_v8 = vld [vmem:[%s223_s17 + $0x10] sm:$0xff]  ;;  %p1199_p11 = scmp.ne.s32.totalorder %s1682_s10, %s1198_s14 }
  0x19   : > { %996 = vmatprep.mubr.msk.f32.mxu0 %vm246_vm0, %v1360_v6  ;;  %v1372_v9 = vld [vmem:[%s223_s17 + $0x18] sm:$0xff]  ;;  %v1374_v10 = vld [vmem:[%s223_s17 + $0x20] sm:$0xff]  ;;  %v1380_v11 = vld [vmem:[%s223_s17 + $0x28] sm:$0xff] }
  0x1a   : > { %997 = vmatmul.mubr.msk.f32.vlgmr.msra.gmra.mrb[0].mxu0 %vm246_vm0, %v1364_v7  ;;  %v1382_v12 = vld [vmem:[%s223_s17 + $0x30] sm:$0xff]  ;;  %v1388_v13 = vld [vmem:[%s223_s17 + $0x38] sm:$0xff]  ;;  %1102 = vmatpush3.bf16.msra.mxu1 %v1068_v22  ;;  %p1200_p12 = pnand %p1199_p11, %p1334_p5  ;;  %s1204_s17 = scalar_lea.vmem %s1203_s16, 2048 }
  0x1b   : > { %999 = vmatprep.mubr.msk.f32.mxu0 %vm246_vm0, %v1366_v8  ;;  %1063 = vmatpush3.bf16.msra.mxu0 %v1060_v16  ;;  %p1206_p1 = scmp.lt.s32.totalorder %s1204_s17, %s1198_s14 }
  0x1c   : > { %1065 = vmatprep.subr.bf16.mxu0 %v1064_v19  ;;  %1095 = vmatprep.subr.bf16.mxu1 %v1072_v25  ;;  %p1201_p13 = pneg %p1200_p12 }
  0x1d   : > { %p1207_p2 = por %p1206_p1, %p1205_p0 }
  0x1e   : > { %1000 = vmatmul.mubr.msk.f32.gmra.mrb[2].mxu0 %vm246_vm0, %v1372_v9  ;;  %1103 = vmatpush3.bf16.msra.mxu1 %v1072_v25 }
  0x1f   : > { %1002 = vmatprep.mubr.msk.f32.mxu0 %vm246_vm0, %v1374_v10  ;;  %1067 = vmatpush3.bf16.msra.mxu0 %v1064_v19  ;;  %p1208_p3 = pnand %p1207_p2, %p1201_p13 }
  0x20   : > { %1069 = vmatprep.subr.bf16.mxu0 %v1068_v22  ;;  %1096 = vmatprep.subr.bf16.mxu1 %v1076_v28 }
  0x22   : > { %1003 = vmatmul.mubr.msk.f32.gmra.mrb[4].mxu0 %vm246_vm0, %v1380_v11  ;;  %1104 = vmatpush3.bf16.msra.mxu1 %v1076_v28 }
  0x23   : > { %1005 = vmatprep.mubr.msk.f32.mxu0 %vm246_vm0, %v1382_v12  ;;  %1071 = vmatpush3.bf16.msra.mxu0 %v1068_v22 }
  0x24   : > { %1073 = vmatprep.subr.bf16.mxu0 %v1072_v25  ;;  %1097 = vmatprep.subr.bf16.mxu1 %v1080_v31 }
  0x26   : > { %1006 = vmatmul.mubr.msk.f32.gmra.mrb[6].mxu0 %vm246_vm0, %v1388_v13  ;;  %1105 = vmatpush3.bf16.msra.mxu1 %v1080_v31 }
  0x27   : > { %1075 = vmatpush3.bf16.msra.mxu0 %v1072_v25  ;;  %1098 = vmatprep.subr.bf16.mxu1 %v1084_v35 }
  0x28   : > { %1077 = vmatprep.subr.bf16.mxu0 %v1076_v28 }
  0x2a   : > { %1106 = vmatpush3.bf16.msra.mxu1 %v1084_v35 }
  0x2b   : > { %1079 = vmatpush3.bf16.msra.mxu0 %v1076_v28  ;;  %1099 = vmatprep.subr.bf16.mxu1 %v1088_v37 }
  0x2c   : > { %1081 = vmatprep.subr.bf16.mxu0 %v1080_v31 }
  0x2e   : > { %1107 = vmatpush3.bf16.msra.mxu1 %v1088_v37 }
  0x2f   : > { %1083 = vmatpush3.bf16.msra.mxu0 %v1080_v31 }
  0x30   : > { %1085 = vmatprep.subr.bf16.mxu0 %v1084_v35 }
  0x33   : > { %1087 = vmatpush3.bf16.msra.mxu0 %v1084_v35 }
  0x34   : > { %1089 = vmatprep.subr.bf16.mxu0 %v1088_v37 }
  0x37   : > { %1091 = vmatpush3.bf16.msra.mxu0 %v1088_v37 }
  0xed   : > { %v998_v39 = vpop.f32.mrb[0].mxu0 }
  0xee   : > { %v343_v40 = vadd.f32 %v998_v39, %v937_v38  ;;  %v337_v41 = vpop.f32.mrb[1].mxu0 }
  0xef   : > { %v338_v42 = vadd.f32 %v937_v38, %v337_v41 }
  0xf0   : > { %v377_v43 = vmul.f32 0.70710677, %v343_v40  ;;  %v1462_v15 = vmul.f32 0.5, %v343_v40 }
  0xf1   : > { %v376_v44 = vmul.f32 0.70710677, %v338_v42  ;;  %v1001_v45 = vpop.f32.mrb[2].mxu0  ;;  %v1477_v28 = vmul.f32 0.5, %v338_v42 }
  0xf2   : > { %v385_v46 = vand.u32 2147483647, %v377_v43  ;;  %v1443_v47 = vadd.f32 %v1001_v45, %v937_v38  ;;  %v347_v48 = vpop.f32.mrb[3].mxu0  ;;  %vm489_vm1 = vcmp.ge.f32.partialorder %v377_v43, 0.0 }
  0xf3   : > { %v384_v49 = vand.u32 2147483647, %v376_v44  ;;  %v1445_v50 = vadd.f32 %v937_v38, %v347_v48  ;;  %vm488_vm2 = vcmp.ge.f32.partialorder %v376_v44, 0.0  ;;  %v1475_v27 = vsel %vm489_vm1, 1.0, %v1262_v26 }
  0xf4   : > { %v393_v51 = vmul.f32 0.3275911, %v385_v46  ;;  %v1448_v52 = vmul.f32 0.70710677, %v1443_v47  ;;  %v505_v5 = vsub.f32 0.0, %v385_v46  ;;  %v1487_v37 = vsel %vm488_vm2, 1.0, %v1262_v26 }
  0xf5   : > { %v392_v53 = vmul.f32 0.3275911, %v384_v49  ;;  %v1451_v54 = vmul.f32 0.70710677, %v1445_v50  ;;  %v1004_v57 = vpop.f32.mrb[4].mxu0  ;;  %v504_v17 = vsub.f32 0.0, %v384_v49 }
  0xf6   : > { %v401_v55 = vadd.f32 1.0, %v393_v51  ;;  %v387_v56 = vand.u32 2147483647, %v1448_v52  ;;  %v357_v60 = vpop.f32.mrb[5].mxu0  ;;  %v1455_v0 = vadd.f32 %v1004_v57, %v937_v38  ;;  %v513_v22 = vmul.f32 %v505_v5, %v385_v46 }
  0xf7   : > { %v400_v58 = vadd.f32 1.0, %v392_v53  ;;  %v386_v59 = vand.u32 2147483647, %v1451_v54  ;;  %v1457_v4 = vadd.f32 %v937_v38, %v357_v60  ;;  %v512_v32 = vmul.f32 %v504_v17, %v384_v49 }
  0xf8   : > { %1150 = vrcp.f32 %v401_v55  ;;  %v395_v61 = vmul.f32 0.3275911, %v387_v56  ;;  %v1460_v14 = vmul.f32 0.70710677, %v1455_v0  ;;  %v507_v20 = vsub.f32 0.0, %v387_v56 }
  0xf9   : > { %v394_v62 = vmul.f32 0.3275911, %v386_v59  ;;  %v1007_v63 = vpop.f32.mrb[6].mxu0  ;;  %1152 = vrcp.f32 %v400_v58  ;;  %v1465_v16 = vmul.f32 0.70710677, %v1457_v4  ;;  %v506_v23 = vsub.f32 0.0, %v386_v59 }
  0xfa   : > { %v367_v1 = vpop.f32.mrb[7].mxu0  ;;  %v403_v2 = vadd.f32 1.0, %v395_v61  ;;  %v389_v18 = vand.u32 2147483647, %v1460_v14  ;;  %v1468_v19 = vadd.f32 %v1007_v63, %v937_v38  ;;  %v515_v39 = vmul.f32 %v507_v20, %v387_v56 }
  0xfb   : > { %v402_v3 = vadd.f32 1.0, %v394_v62  ;;  %v388_v21 = vand.u32 2147483647, %v1465_v16  ;;  %v1479_v30 = vadd.f32 %v937_v38, %v367_v1  ;;  %v522_v41 = vmul.f32 1.442695, %v513_v22 }
  0xfc   : > { %v397_v24 = vmul.f32 0.3275911, %v389_v18  ;;  %v1472_v25 = vmul.f32 0.70710677, %v1468_v19  ;;  %v509_v34 = vsub.f32 0.0, %v389_v18  ;;  %v514_v42 = vmul.f32 %v506_v23, %v386_v59 }
  0xfd   : > { %1154 = vrcp.f32 %v402_v3  ;;  %v396_v29 = vmul.f32 0.3275911, %v388_v21  ;;  %v508_v46 = vsub.f32 0.0, %v388_v21  ;;  %v1492_v48 = vmul.f32 0.70710677, %v1479_v30 }
  0xfe   : > { %1156 = vrcp.f32 %v403_v2  ;;  %v405_v33 = vadd.f32 1.0, %v397_v24  ;;  %v391_v35 = vand.u32 2147483647, %v1472_v25  ;;  %v520_v49 = vmul.f32 1.442695, %v512_v32 }
  0xff   : > { %v404_v40 = vadd.f32 1.0, %v396_v29  ;;  %v1495_v51 = vmul.f32 0.5, %v1443_v47  ;;  %v517_v44 = vmul.f32 %v509_v34, %v389_v18  ;;  %v526_v57 = vmul.f32 1.442695, %v515_v39 }
 0x100   : > { %1158 = vrcp.f32 %v405_v33  ;;  %v399_v38 = vmul.f32 0.3275911, %v391_v35  ;;  %v511_v58 = vsub.f32 0.0, %v391_v35  ;;  %v390_v59 = vand.u32 2147483647, %v1492_v48 }
 0x101   : > { %1160 = vrcp.f32 %v404_v40  ;;  %vm491_vm3 = vcmp.ge.f32.partialorder %v1448_v52, 0.0  ;;  %v524_v60 = vmul.f32 1.442695, %v514_v42  ;;  %v516_v63 = vmul.f32 %v508_v46, %v388_v21 }
 0x102   : > { %v1481_v31 = vpop.eup %1150  ;;  %v407_v53 = vadd.f32 1.0, %v399_v38  ;;  %v398_v1 = vmul.f32 0.3275911, %v390_v59  ;;  %v530_v2 = vmul.f32 1.442695, %v517_v44  ;;  %v519_v18 = vmul.f32 %v511_v58, %v391_v35 }
 0x103   : > { %v417_v36 = vmul.f32 1.0614054, %v1481_v31  ;;  %v1489_v43 = vpop.eup %1152  ;;  %v1512_v21 = vsel %vm491_vm3, 1.0, %v1262_v26  ;;  %v528_v32 = vmul.f32 1.442695, %v516_v63  ;;  %v510_v42 = vsub.f32 0.0, %v390_v59 }
 0x104   : > { %1162 = vrcp.f32 %v407_v53  ;;  %v416_v61 = vmul.f32 1.0614054, %v1489_v43  ;;  %v406_v20 = vadd.f32 1.0, %v398_v1  ;;  %vm490_vm4 = vcmp.ge.f32.partialorder %v1451_v54, 0.0 }
 0x105   : > { %v425_v45 = vadd.f32 -1.4531521, %v417_v36  ;;  %1164 = vpow2.f32 %v522_v41  ;;  %v534_v41 = vmul.f32 1.442695, %v519_v18  ;;  %v518_v1 = vmul.f32 %v510_v42, %v390_v59 }
 0x106   : > { %1166 = vpow2.f32 %v520_v49  ;;  %v424_v3 = vadd.f32 -1.4531521, %v416_v61  ;;  %vm493_vm5 = vcmp.ge.f32.partialorder %v1460_v14, 0.0  ;;  %vm492_vm6 = vcmp.ge.f32.partialorder %v1465_v16, 0.0 }
 0x107   : > { %v1497_v55 = vpop.eup %1154  ;;  %v433_v56 = vmul.f32 %v1481_v31, %v425_v45  ;;  %1168 = vpow2.f32 %v526_v57  ;;  %vm495_vm7 = vcmp.ge.f32.partialorder %v1472_v25, 0.0  ;;  %vm494_vm8 = vcmp.ge.f32.partialorder %v1492_v48, 0.0 }
 0x108   : > { %v1503_v62 = vpop.eup %1156  ;;  %v418_v5 = vmul.f32 1.0614054, %v1497_v55  ;;  %1170 = vpow2.f32 %v524_v60  ;;  %v432_v22 = vmul.f32 %v1489_v43, %v424_v3  ;;  %v502_v25 = vsel %vm494_vm8, 1.0, %v1262_v26 }
 0x109   : > { %v441_v47 = vadd.f32 1.4214138, %v433_v56  ;;  %v419_v24 = vmul.f32 1.0614054, %v1503_v62  ;;  %1172 = vrcp.f32 %v406_v20  ;;  %v600_v48 = vlaneseq }
 0x10a   : > { %v426_v23 = vadd.f32 -1.4531521, %v418_v5  ;;  %v1514_v33 = vpop.eup %1158  ;;  %1174 = vpow2.f32 %v530_v2  ;;  %v440_v34 = vadd.f32 1.4214138, %v432_v22 }
 0x10b   : > { %v449_v17 = vmul.f32 %v1481_v31, %v441_v47  ;;  %v427_v36 = vadd.f32 -1.4531521, %v419_v24  ;;  %v1517_v39 = vpop.eup %1160  ;;  %v421_v38 = vmul.f32 1.0614054, %v1514_v33  ;;  %1176 = vpow2.f32 %v528_v32 }
 0x10c   : > { %v434_v35 = vmul.f32 %v1497_v55, %v426_v23  ;;  %v448_v52 = vmul.f32 %v1489_v43, %v440_v34  ;;  %v420_v49 = vmul.f32 1.0614054, %v1517_v39  ;;  %1178 = vpow2.f32 %v534_v41 }
 0x10d   : > { %v457_v29 = vadd.f32 -0.28449672, %v449_v17  ;;  %v435_v46 = vmul.f32 %v1503_v62, %v427_v36  ;;  %v429_v53 = vadd.f32 -1.4531521, %v421_v38 }
 0x10e   : > { %v442_v45 = vadd.f32 1.4214138, %v434_v35  ;;  %v1525_v56 = vpop.eup %1162  ;;  %v456_v57 = vadd.f32 -0.28449672, %v448_v52  ;;  %v428_v61 = vadd.f32 -1.4531521, %v420_v49 }
 0x10f   : > { %v465_v40 = vmul.f32 %v1481_v31, %v457_v29  ;;  %v443_v60 = vadd.f32 1.4214138, %v435_v46  ;;  %v1165_v47 = vpop.eup %1164  ;;  %v437_v2 = vmul.f32 %v1514_v33, %v429_v53  ;;  %v423_v3 = vmul.f32 1.0614054, %v1525_v56 }
 0x110   : > { %v450_v58 = vmul.f32 %v1497_v55, %v442_v45  ;;  %v1167_v5 = vpop.eup %1166  ;;  %v464_v17 = vmul.f32 %v1489_v43, %v456_v57  ;;  %v436_v22 = vmul.f32 %v1517_v39, %v428_v61  ;;  %v498_v29 = vsel %vm490_vm4, 1.0, %v1262_v26 }
 0x111   : > { %v473_v44 = vadd.f32 0.2548296, %v465_v40  ;;  %v451_v20 = vmul.f32 %v1503_v62, %v443_v60  ;;  %v1169_v23 = vpop.eup %1168  ;;  %v431_v59 = vadd.f32 -1.4531521, %v423_v3  ;;  %v532_v52 = vmul.f32 1.442695, %v518_v1 }
 0x112   : > { %v458_v18 = vadd.f32 -0.28449672, %v450_v58  ;;  %v1171_v32 = vpop.eup %1170  ;;  %v472_v34 = vadd.f32 0.2548296, %v464_v17  ;;  %v444_v40 = vadd.f32 1.4214138, %v436_v22 }
 0x113   : > { %v481_v63 = vmul.f32 %v1481_v31, %v473_v44  ;;  %v445_v31 = vadd.f32 1.4214138, %v437_v2  ;;  %v459_v36 = vadd.f32 -0.28449672, %v451_v20  ;;  %v1538_v42 = vpop.eup %1172  ;;  %v439_v46 = vmul.f32 %v1525_v56, %v431_v59 }
 0x114   : > { %v466_v35 = vmul.f32 %v1497_v55, %v458_v18  ;;  %v1175_v49 = vpop.eup %1174  ;;  %v480_v54 = vmul.f32 %v1489_v43, %v472_v34  ;;  %v452_v57 = vmul.f32 %v1517_v39, %v444_v40  ;;  %v422_v60 = vmul.f32 1.0614054, %v1538_v42 }
 0x115   : > { %v537_v24 = vmul.f32 %v1165_v47, %v481_v63  ;;  %v453_v45 = vmul.f32 %v1514_v33, %v445_v31  ;;  %v467_v53 = vmul.f32 %v1503_v62, %v459_v36  ;;  %v447_v61 = vadd.f32 1.4214138, %v439_v46  ;;  %v1177_v43 = vpop.eup %1176 }
 0x116   : > { %v474_v44 = vadd.f32 0.2548296, %v466_v35  ;;  %v536_v47 = vmul.f32 %v1167_v5, %v480_v54  ;;  %v460_v2 = vadd.f32 -0.28449672, %v452_v57  ;;  %v430_v18 = vadd.f32 -1.4531521, %v422_v60 }
 0x117   : > { %v545_v38 = vsub.f32 1.0, %v537_v24  ;;  %v461_v58 = vadd.f32 -0.28449672, %v453_v45  ;;  %v475_v1 = vadd.f32 0.2548296, %v467_v53  ;;  %v455_v20 = vmul.f32 %v1525_v56, %v447_v61  ;;  %v1179_v61 = vpop.eup %1178 }
 0x118   : > { %v482_v63 = vmul.f32 %v1497_v55, %v474_v44  ;;  %v544_v41 = vsub.f32 1.0, %v536_v47  ;;  %v468_v31 = vmul.f32 %v1517_v39, %v460_v2  ;;  %1180 = vpow2.f32 %v532_v52 }
 0x119   : > { %v553_v3 = vmul.f32 %v545_v38, %v1475_v27  ;;  %v469_v17 = vmul.f32 %v1514_v33, %v461_v58  ;;  %v483_v24 = vmul.f32 %v1503_v62, %v475_v1  ;;  %v438_v55 = vmul.f32 %v1538_v42, %v430_v18 }
 0x11a   : > { %v538_v22 = vmul.f32 %v1171_v32, %v482_v63  ;;  %v463_v59 = vadd.f32 -0.28449672, %v455_v20  ;;  %v552_v34 = vmul.f32 %v544_v41, %v1487_v37  ;;  %v476_v36 = vadd.f32 0.2548296, %v468_v31 }
 0x11b   : > { %v477_v5 = vadd.f32 0.2548296, %v469_v17  ;;  %v539_v27 = vmul.f32 %v1169_v23, %v483_v24  ;;  %v569_v40 = vadd.f32 1.0, %v553_v3  ;;  %v446_v45 = vadd.f32 1.4214138, %v438_v55 }
 0x11c   : > { %v546_v35 = vsub.f32 1.0, %v538_v22  ;;  %v471_v32 = vmul.f32 %v1525_v56, %v463_v59  ;;  %v568_v46 = vadd.f32 1.0, %v552_v34  ;;  %v484_v52 = vmul.f32 %v1517_v39, %v476_v36 }
 0x11d   : > { %v485_v38 = vmul.f32 %v1514_v33, %v477_v5  ;;  %v547_v54 = vsub.f32 1.0, %v539_v27  ;;  %v562_v44 = vmul.f32 0.5, %v1445_v50  ;;  %v454_v57 = vmul.f32 %v1538_v42, %v446_v45 }
 0x11e   : > { %v554_v62 = vmul.f32 %v546_v35, %v498_v29  ;;  %v479_v37 = vadd.f32 0.2548296, %v471_v32  ;;  %v576_v23 = vmul.f32 %v568_v46, %v1477_v28  ;;  %v540_v33 = vmul.f32 %v1177_v43, %v484_v52 }
 0x11f   : > { %v541_v53 = vmul.f32 %v1175_v49, %v485_v38  ;;  %v555_v60 = vmul.f32 %v547_v54, %v1512_v21  ;;  %v577_v47 = vmul.f32 %v569_v40, %v1462_v15  ;;  %v462_v29 = vadd.f32 -0.28449672, %v454_v57 }
 0x120   : > { %v570_v58 = vadd.f32 1.0, %v554_v62  ;;  %v487_v1 = vmul.f32 %v1525_v56, %v479_v37  ;;  %v501_v50 = vsel %vm493_vm5, 1.0, %v1262_v26  ;;  %1040 = vmatprep.mubr.f32.mxu0 %v576_v23  ;;  %v548_v2 = vsub.f32 1.0, %v540_v33 }
 0x121   : > { %v549_v63 = vsub.f32 1.0, %v541_v53  ;;  %v571_v49 = vadd.f32 1.0, %v555_v60  ;;  %v500_v28 = vsel %vm492_vm6, 1.0, %v1262_v26  ;;  %1041 = vmatmul.mubr.f32.vlgmr.msra.gmra.mrb[8].mxu0 %v577_v47  ;;  %v470_v15 = vmul.f32 %v1538_v42, %v462_v29 }
 0x122   : > { %v578_v39 = vmul.f32 %v570_v58, %v562_v44  ;;  %v543_v43 = vmul.f32 %v1179_v61, %v487_v1  ;;  %v556_v3 = vmul.f32 %v548_v2, %v500_v28  ;;  %v1181_v17 = vpop.eup %1180  ;;  %v564_v20 = vmul.f32 0.5, %v1457_v4 }
 0x123   : > { %v557_v21 = vmul.f32 %v549_v63, %v501_v50  ;;  %v579_v56 = vmul.f32 %v571_v49, %v1495_v51  ;;  %v478_v18 = vadd.f32 0.2548296, %v470_v15  ;;  %v565_v22 = vmul.f32 0.5, %v1455_v0 }
 0x124   : > { %1043 = vmatprep.mubr.f32.mxu1 %v578_v39  ;;  %v572_v41 = vadd.f32 1.0, %v556_v3  ;;  %v551_v16 = vsub.f32 1.0, %v543_v43  ;;  %v503_v5 = vsel %vm495_vm7, 1.0, %v1262_v26  ;;  %v566_v27 = vmul.f32 0.5, %v1479_v30  ;;  %v1588_v26 = vld [vmem:[%s1736_s4] sm:$0xff] }
 0x125   : > { %v573_v14 = vadd.f32 1.0, %v557_v21  ;;  %1044 = vmatmul.mubr.f32.vlgmr.msra.gmra.mrb[0].mxu1 %v579_v56  ;;  %v486_v24 = vmul.f32 %v1538_v42, %v478_v18  ;;  %v567_v42 = vmul.f32 0.5, %v1468_v19  ;;  %v1582_v38 = vshrl.u32 %v600_v48, 7 }
 0x126   : > { %v580_v31 = vmul.f32 %v572_v41, %v564_v20  ;;  %v559_v59 = vmul.f32 %v551_v16, %v503_v5 }
 0x127   : > { %v581_v51 = vmul.f32 %v573_v14, %v565_v22  ;;  %v542_v55 = vmul.f32 %v1181_v17, %v486_v24  ;;  %v602_v45 = vsub.s32 0, %v1582_v38 }
 0x128   : > { %1046 = vmatprep.mubr.f32.mxu1 %v580_v31  ;;  %v575_v35 = vadd.f32 1.0, %v559_v59 }
 0x129   : > { %1047 = vmatmul.mubr.f32.gmra.mrb[2].mxu1 %v581_v51  ;;  %v550_v4 = vsub.f32 1.0, %v542_v55  ;;  %v603_v32 = vrot.slane %v1588_v26, %v602_v45 }
 0x12a   : > { %v583_v40 = vmul.f32 %v575_v35, %v567_v42 }
 0x12b   : > { %v558_v34 = vmul.f32 %v550_v4, %v502_v25 }
 0x12d   : > { %v574_v0 = vadd.f32 1.0, %v558_v34 }
 0x12f   : > { %v582_v36 = vmul.f32 %v574_v0, %v566_v27 }
 0x131   : > { %1049 = vmatprep.mubr.f32.mxu1 %v582_v36 }
 0x132   : > { %1050 = vmatmul.mubr.f32.gmra.mrb[4].mxu1 %v583_v40 }
 0x1f4   : > { %v1042_v30 = vpop.f32.mrb[8].mxu0 }
 0x1f5   : > { %v676_v46 = vadd.f32 %v1042_v30, %v603_v32  ;;  %v670_v62 = vpop.f32.mrb[9].mxu0 }
 0x1f6   : > { %v671_v19 = vadd.f32 %v670_v62, %v603_v32 }
 0x1f7   : > { %v712_v52 = vsel %vm246_vm0, %v676_v46, 0.0 }
 0x1f8   : > { %v1045_v54 = vpop.f32.mrb[0].mxu1  ;;  %713 = vadd.xlane.f32.xlu0 %v712_v52  ;;  %v709_v23 = vsel %vm246_vm0, %v671_v19, 0.0 }
 0x1f9   : > { %v686_v44 = vadd.f32 %v1045_v54, %v603_v32  ;;  %v680_v53 = vpop.f32.mrb[1].mxu1 }
 0x1fa   : > { %v681_v57 = vadd.f32 %v680_v53, %v603_v32 }
 0x1fb   : > { %v718_v37 = vsel %vm246_vm0, %v686_v44, 0.0 }
 0x1fc   : > { %719 = vadd.xlane.f32.xlu1 %v718_v37  ;;  %v1048_v58 = vpop.f32.mrb[2].mxu1  ;;  %710 = vadd.xlane.f32.xlu0 %v709_v23  ;;  %v715_v47 = vsel %vm246_vm0, %v681_v57, 0.0 }
 0x1fd   : > { %v690_v60 = vpop.f32.mrb[3].mxu1  ;;  %v696_v33 = vadd.f32 %v1048_v58, %v603_v32 }
 0x1fe   : > { %v691_v61 = vadd.f32 %v690_v60, %v603_v32 }
 0x1ff   : > { %v724_v29 = vsel %vm246_vm0, %v696_v33, 0.0 }
 0x200   : > { %716 = vadd.xlane.f32.xlu1 %v715_v47  ;;  %v721_v63 = vsel %vm246_vm0, %v691_v61, 0.0 }
 0x201   : > { %722 = vadd.xlane.f32.xlu0 %v721_v63 }
 0x204   : > { %725 = vadd.xlane.f32.xlu1 %v724_v29 }
 0x205   : > { %v1051_v1 = vpop.f32.mrb[4].mxu1 }
 0x206   : > { %v706_v50 = vadd.f32 %v1051_v1, %v603_v32  ;;  %v700_v39 = vpop.f32.mrb[5].mxu1 }
 0x207   : > { %v701_v49 = vadd.f32 %v700_v39, %v603_v32 }
 0x208   : > { %v730_v2 = vsel %vm246_vm0, %v706_v50, 0.0 }
 0x209   : > { %v727_v28 = vsel %vm246_vm0, %v701_v49, 0.0  ;;  %731 = vadd.xlane.f32.xlu1 %v730_v2 }
 0x20a   : > { %728 = vadd.xlane.f32.xlu0 %v727_v28 }
 0x285   : > { %v714_v21 = vpop.xlane.xlu0 %713 }
 0x286   : > { %v735_v15 = vmul.f32 0.03125, %v714_v21  ;;  %v828_v21 = vsub.s32 2, %v1582_v38 }
 0x288   : > { %v1599_v43 = vsub.f32 %v676_v46, %v735_v15 }
 0x289   : > { %v720_v56 = vpop.xlane.xlu1 %719  ;;  %v711_v17 = vpop.xlane.xlu0 %710 }
 0x28a   : > { %v737_v3 = vmul.f32 0.03125, %v720_v56  ;;  %v734_v14 = vmul.f32 0.03125, %v711_v17  ;;  %v751_v18 = vmul.f32 %v1599_v43, %v1599_v43 }
 0x28c   : > { %v1603_v20 = vsub.f32 %v686_v44, %v737_v3  ;;  %v1605_v41 = vsub.f32 %v671_v19, %v734_v14  ;;  %v761_v22 = vsel %vm246_vm0, %v751_v18, 0.0 }
 0x28d   : > { %v717_v16 = vpop.xlane.xlu1 %716  ;;  %762 = vadd.xlane.f32.xlu1 %v761_v22  ;;  %v829_v22 = vrot.slane %v1588_v26, %v828_v21 }
 0x28e   : > { %v736_v24 = vmul.f32 0.03125, %v717_v16  ;;  %v753_v31 = vmul.f32 %v1603_v20, %v1603_v20  ;;  %v723_v5 = vpop.xlane.xlu0 %722  ;;  %v750_v51 = vmul.f32 %v1605_v41, %v1605_v41 }
 0x28f   : > { %v738_v59 = vmul.f32 0.03125, %v723_v5 }
 0x290   : > { %v1612_v55 = vsub.f32 %v681_v57, %v736_v24  ;;  %v767_v4 = vsel %vm246_vm0, %v753_v31, 0.0  ;;  %v758_v34 = vsel %vm246_vm0, %v750_v51, 0.0 }
 0x291   : > { %v726_v25 = vpop.xlane.xlu1 %725  ;;  %v1616_v35 = vsub.f32 %v691_v61, %v738_v59  ;;  %768 = vadd.xlane.f32.xlu1 %v767_v4  ;;  %759 = vadd.xlane.f32.xlu0 %v758_v34 }
 0x292   : > { %v739_v27 = vmul.f32 0.03125, %v726_v25  ;;  %v752_v0 = vmul.f32 %v1612_v55, %v1612_v55 }
 0x293   : > { %v754_v40 = vmul.f32 %v1616_v35, %v1616_v35 }
 0x294   : > { %v1620_v42 = vsub.f32 %v696_v33, %v739_v27  ;;  %v764_v36 = vsel %vm246_vm0, %v752_v0, 0.0 }
 0x295   : > { %765 = vadd.xlane.f32.xlu0 %v764_v36  ;;  %v770_v19 = vsel %vm246_vm0, %v754_v40, 0.0 }
 0x296   : > { %v755_v48 = vmul.f32 %v1620_v42, %v1620_v42  ;;  %v732_v45 = vpop.xlane.xlu1 %731 }
 0x297   : > { %v729_v32 = vpop.xlane.xlu0 %728  ;;  %v741_v30 = vmul.f32 0.03125, %v732_v45 }
 0x298   : > { %v773_v46 = vsel %vm246_vm0, %v755_v48, 0.0  ;;  %v740_v62 = vmul.f32 0.03125, %v729_v32 }
 0x299   : > { %774 = vadd.xlane.f32.xlu1 %v773_v46  ;;  %v1629_v54 = vsub.f32 %v706_v50, %v741_v30  ;;  %771 = vadd.xlane.f32.xlu0 %v770_v19 }
 0x29a   : > { %v1631_v52 = vsub.f32 %v701_v49, %v740_v62  ;;  %v816_v49 = vsub.s32 1, %v1582_v38 }
 0x29b   : > { %v757_v44 = vmul.f32 %v1629_v54, %v1629_v54 }
 0x29c   : > { %v756_v53 = vmul.f32 %v1631_v52, %v1631_v52  ;;  %v817_v17 = vrot.slane %v1588_v26, %v816_v49 }
 0x29d   : > { %v779_v57 = vsel %vm246_vm0, %v757_v44, 0.0 }
 0x29e   : > { %780 = vadd.xlane.f32.xlu1 %v779_v57  ;;  %v776_v37 = vsel %vm246_vm0, %v756_v53, 0.0 }
 0x29f   : > { %777 = vadd.xlane.f32.xlu0 %v776_v37 }
 0x31a   : > { %v763_v23 = vpop.xlane.xlu1 %762 }
 0x31b   : > { %v783_v58 = vmul.f32 0.03125, %v763_v23 }
 0x31d   : > { %v791_v60 = vadd.f32 1e-05, %v783_v58 }
 0x31e   : > { %v769_v33 = vpop.xlane.xlu1 %768  ;;  %v760_v61 = vpop.xlane.xlu0 %759 }
 0x31f   : > { %1182 = vrsqrt.f32 %v791_v60  ;;  %v785_v47 = vmul.f32 0.03125, %v769_v33  ;;  %v782_v63 = vmul.f32 0.03125, %v760_v61 }
 0x321   : > { %v793_v29 = vadd.f32 1e-05, %v785_v47  ;;  %v790_v1 = vadd.f32 1e-05, %v782_v63 }
 0x322   : > { %v766_v50 = vpop.xlane.xlu0 %765 }
 0x323   : > { %1184 = vrsqrt.f32 %v793_v29  ;;  %v784_v39 = vmul.f32 0.03125, %v766_v50 }
 0x324   : > { %1186 = vrsqrt.f32 %v790_v1 }
 0x325   : > { %v792_v2 = vadd.f32 1e-05, %v784_v39 }
 0x326   : > { %v775_v28 = vpop.xlane.xlu1 %774  ;;  %v772_v56 = vpop.xlane.xlu0 %771 }
 0x327   : > { %v787_v15 = vmul.f32 0.03125, %v775_v28  ;;  %1188 = vrsqrt.f32 %v792_v2  ;;  %v786_v3 = vmul.f32 0.03125, %v772_v56 }
 0x329   : > { %v795_v14 = vadd.f32 1e-05, %v787_v15  ;;  %v1183_v18 = vpop.eup %1182  ;;  %v794_v16 = vadd.f32 1e-05, %v786_v3 }
 0x32a   : > { %v807_v24 = vmul.f32 %v1183_v18, %v1599_v43 }
 0x32b   : > { %1190 = vrsqrt.f32 %v795_v14  ;;  %v781_v31 = vpop.xlane.xlu1 %780 }
 0x32c   : > { %1192 = vrsqrt.f32 %v794_v16  ;;  %v819_v38 = vmul.f32 %v817_v17, %v807_v24  ;;  %v789_v5 = vmul.f32 0.03125, %v781_v31  ;;  %v778_v51 = vpop.xlane.xlu0 %777 }
 0x32d   : > { %v1185_v59 = vpop.eup %1184  ;;  %v788_v4 = vmul.f32 0.03125, %v778_v51 }
 0x32e   : > { %v1187_v25 = vpop.eup %1186  ;;  %v831_v34 = vadd.f32 %v829_v22, %v819_v38  ;;  %v809_v27 = vmul.f32 %v1185_v59, %v1603_v20  ;;  %v797_v0 = vadd.f32 1e-05, %v789_v5 }
 0x32f   : > { %v806_v36 = vmul.f32 %v1187_v25, %v1605_v41  ;;  %v796_v26 = vadd.f32 1e-05, %v788_v4 }
 0x330   : > { %v839_v43 = vadd.f32 %v831_v34, %v1364_v7  ;;  %v821_v40 = vmul.f32 %v817_v17, %v809_v27  ;;  %1194 = vrsqrt.f32 %v797_v0 }
 0x331   : > { %v1189_v48 = vpop.eup %1188  ;;  %v818_v45 = vmul.f32 %v817_v17, %v806_v36  ;;  %1196 = vrsqrt.f32 %v796_v26 }
 0x332   : > { %847 = vst.msk [vmem:[%s1650_s8 + $0x8] sm:$0xff] %vm246_vm0, %v839_v43  ;;  %v833_v32 = vadd.f32 %v829_v22, %v821_v40  ;;  %v808_v20 = vmul.f32 %v1189_v48, %v1612_v55 }
 0x333   : > { %v830_v30 = vadd.f32 %v829_v22, %v818_v45 }
 0x334   : > { %v841_v7 = vadd.f32 %v833_v32, %v1372_v9  ;;  %v820_v46 = vmul.f32 %v817_v17, %v808_v20 }
 0x335   : > { %v1191_v41 = vpop.eup %1190  ;;  %v838_v19 = vadd.f32 %v830_v30, %v1360_v6 }
 0x336   : > { %v1193_v62 = vpop.eup %1192  ;;  %v811_v44 = vmul.f32 %v1191_v41, %v1620_v42  ;;  %849 = vst.msk [vmem:[%s1650_s8 + $0x18] sm:$0xff] %vm246_vm0, %v841_v7  ;;  %v832_v53 = vadd.f32 %v829_v22, %v820_v46 }
 0x337   : > { %v810_v57 = vmul.f32 %v1193_v62, %v1616_v35  ;;  %846 = vst.msk [vmem:[%s1650_s8] sm:$0xff] %vm246_vm0, %v838_v19 }
 0x338   : > { %v823_v55 = vmul.f32 %v817_v17, %v811_v44  ;;  %v840_v37 = vadd.f32 %v832_v53, %v1366_v8 }
 0x339   : > { %v822_v9 = vmul.f32 %v817_v17, %v810_v57 }
 0x33a   : > { %v835_v23 = vadd.f32 %v829_v22, %v823_v55  ;;  %v1195_v58 = vpop.eup %1194  ;;  %848 = vst.msk [vmem:[%s1650_s8 + $0x10] sm:$0xff] %vm246_vm0, %v840_v37 }
 0x33b   : > { %v834_v6 = vadd.f32 %v829_v22, %v822_v9  ;;  %v1197_v42 = vpop.eup %1196  ;;  %v813_v35 = vmul.f32 %v1195_v58, %v1629_v54 }
 0x33c   : > { %v843_v60 = vadd.f32 %v835_v23, %v1380_v11  ;;  %v812_v61 = vmul.f32 %v1197_v42, %v1631_v52 }
 0x33d   : > { %v842_v33 = vadd.f32 %v834_v6, %v1374_v10  ;;  %v825_v8 = vmul.f32 %v817_v17, %v813_v35 }
 0x33e   : > { %851 = vst.msk [vmem:[%s1650_s8 + $0x28] sm:$0xff] %vm246_vm0, %v843_v60  ;;  %v824_v47 = vmul.f32 %v817_v17, %v812_v61 }
 0x33f   : > { %850 = vst.msk [vmem:[%s1650_s8 + $0x20] sm:$0xff] %vm246_vm0, %v842_v33  ;;  %v837_v63 = vadd.f32 %v829_v22, %v825_v8 }
 0x340   : > { %v836_v11 = vadd.f32 %v829_v22, %v824_v47 }
 0x341   : > { %v845_v29 = vadd.f32 %v837_v63, %v1388_v13 }
 0x342   : > { %v844_v10 = vadd.f32 %v836_v11, %v1382_v12 }
 0x343   : > { %853 = vst.msk [vmem:[%s1650_s8 + $0x38] sm:$0xff] %vm246_vm0, %v845_v29 }
 0x344   : > { %852 = vst.msk [vmem:[%s1650_s8 + $0x30] sm:$0xff] %vm246_vm0, %v844_v10 }
 0x345   : > { %1211 = shalt.err (!%p1208_p3)
}
 0x346   : > { %s1212_s23 = scalar_lea.hbm %s1680_s13, 1024  ;;  %s1216_s30 = scalar_lea.hbm %s1737_s5, 2048 }
 0x347   : > { %p1213_p4 = scmp.ne.s32.totalorder %s1680_s13, %s1212_s23  ;;  %p1217_p9 = scmp.lt.u32.totalorder %s1680_s13, %s1737_s5 }
 0x348   : > { %p1218_p10 = scmp.lt.u32.totalorder %s1216_s30, %s1212_s23  ;;  %p1220_p12 = scmp.lt.u32.totalorder %s1212_s23, %s1680_s13 }
 0x349   : > { %p1214_p7 = pnand %p1213_p4, %p1334_p5 }
 0x34a   : > { %p1219_p11 = por %p1218_p10, %p1217_p9 }
 0x34b   : > { %p1215_p8 = pneg %p1214_p7 }
 0x34c   : > { %p1221_p13 = por %p1220_p12, %p1219_p11 }
 0x34e   : > { %p1222_p0 = pnand %p1221_p13, %p1215_p8 }
 0x350   : > { %1225 = shalt.err (!%p1222_p0)
}
 0x351   : > { %s1264_s8 = smov 128   ;;  %s1265_s9 = smov 8  }
 0x352   : > { %1108 = dma.vmem_to_hbm [thread:$0]  (%p1334_p5), %s1682_s10, 1024, %s1680_s13, %s1691_s22, %s1264_s8, %s1264_s8, %s1265_s9  }
 0x353 PF: > { %p1114_p1 = scmp.ge.s32.totalorder %s1260_s21, 2  ;;  %s883_s11 = sand.u32 1, %s1248_s18  }
 0x354   : > { %s884_s12 = scalar_lea.sflag [#allocation3], %s883_s11 }
 0x355   : > { %p1111_p2 = pnand %p1114_p1, %p1338_p6 }
 0x357   : > { %1243 = dma.done.wait (!%p1111_p2), %s884_s12, 1024  }
 0x358   : > { %1245 = vsyncadd (!%p1111_p2), %s884_s12, 4294966272  ;;  %p15_p3 = scmp.ge.s32.totalorder %s1321_s24, 4   ;;  %s1740_s18 = smov %s1252_s19 }
 0x359   : > { %s1741_s19 = smov %s1256_s20  ;;  %s1742_s20 = smov %s1332_s27 }
 0x35a   : > { %s1743_s21 = smov %s1321_s24  ;;  %17 = sbr.rel (!%p15_p3) target bundleno = 3 (0x3), region = 75 }
 0x361   :  { %889 = vsyncpa [#allocation3], 1 }
 0x362   :  { %891 = vsyncpa [#allocation3 + $0x1], 1 }

// kernel: swin_v2_block_forward.2
= control target key start
LH: loop header
LB: loop body
LE: loop exit
PB: predicated region body
PF: predicated region fallthrough
CT: control target
= control target key end

     0   :  { %s6288_s24 = smov 0   ;;  %s7764_s0 = inlined_call_operand.vmem [shape: f32[128,32], index: 0, kind: input, shape index: {}]   ;;  %s7765_s1 = inlined_call_operand.vmem [shape: f32[32,96], index: 1, kind: input, shape index: {}]   ;;  %s7766_s2 = inlined_call_operand.vmem [shape: f32[1,96], index: 2, kind: input, shape index: {}]   ;;  %s7767_s3 = inlined_call_operand.vmem [shape: f32[32,32], index: 3, kind: input, shape index: {}]   ;;  %s7768_s4 = inlined_call_operand.vmem [shape: f32[8,32], index: 4, kind: input, shape index: {}]   ;;  %s7769_s5 = inlined_call_operand.vmem [shape: f32[4,16,16], index: 5, kind: input, shape index: {}]   ;;  %s7770_s6 = inlined_call_operand.vmem [shape: f32[4,16,16], index: 6, kind: input, shape index: {}]   ;;  %s7771_s7 = inlined_call_operand.vmem [shape: f32[128,32], index: 7, kind: output, shape index: {}]  }
   0x1 LB: > { %s4929_s25 = sadd.s32 4294967295, %s6235_s24   ;;  %p4933_p0 = scmp.ge.s32.totalorder %s6235_s24, 1  ;;  %s6235_s24 = sphi %s6288_s24, %s17_s24  }
   0x2   : > { %p238_p1 = scmp.lt.s32.totalorder %s6235_s24, 3 }
   0x4   : > { %p239_p2 = pnand %p4933_p0, %p238_p1 }
   0x5   : > { %v290_v0 = vld [vmem:[%s7765_s1] sm:$0xff] (!%p239_p2)  ;;  %v291_v1 = vld [vmem:[%s7765_s1 + $0x8] sm:$0xff] (!%p239_p2)  ;;  %v292_v2 = vld [vmem:[%s7765_s1 + $0x10] sm:$0xff] (!%p239_p2)  ;;  %s4934_s9 = sshll.u32 (!%p239_p2), %s4929_s25, 3  ;;  %vm301_vm0 = vcmask (!%p239_p2), 261120   ;;  %s6237_s18 = smov (!%p239_p2), 80  }
   0x6   : > { %242 = sbr.rel (%p239_p2) target bundleno = 2503 (0x9c7), region = 48  ;;  %v5469_v3 = vpack.c.bf16 (!%p239_p2), %v291_v1, %v290_v0  ;;  %v293_v4 = vld [vmem:[%s7765_s1 + $0x18] sm:$0xff] (!%p239_p2)  ;;  %p271_p3 = scmp.lt.s32.totalorder (!%p239_p2), %s4934_s9, 15  ;;  %v4938_v14 = vld [vmem:[%s7766_s2] ss:$0 sm:$0xff] (!%p239_p2)  ;;  %vm440_vm1 = vcmask (!%p239_p2), 64512  }
   0x7   : > { %v5473_v5 = vpack.c.bf16 (!%p239_p2), %v293_v4, %v292_v2  ;;  %s6238_s19 = smov (!%p239_p2), 88   ;;  %s6239_s20 = smov (!%p239_p2), 72   ;;  %vm6770_vm2 = vmpackc.low (!%p239_p2), %vm440_vm1, %vm440_vm1  ;;  %vm2725_vm3 = vcmask (!%p239_p2), 130048   ;;  %vm4582_vm4 = vcmask (!%p239_p2), 195584  }
   0x8   : > { %5470 = vmatprep.subr.bf16.mxu0 (!%p239_p2), %v5469_v3  ;;  %5645 = vmatprep.subr.bf16.mxu1 (!%p239_p2), %v5469_v3  ;;  %s6240_s21 = smov (!%p239_p2), 112   ;;  %s6241_s22 = smov (!%p239_p2), 104  }
   0x9   : > { %5472 = vmatpush3.bf16.msra.mxu0 (!%p239_p2), %v5469_v3  ;;  %5647 = vmatpush3.bf16.msra.mxu1 (!%p239_p2), %v5469_v3  ;;  %s6242_s23 = smov (!%p239_p2), 96   ;;  %s6243_s25 = smov (!%p239_p2), 120  }
   0xa   : > { %5474 = vmatprep.subr.bf16.mxu0 (!%p239_p2), %v5473_v5  ;;  %5646 = vmatprep.subr.bf16.mxu1 (!%p239_p2), %v5473_v5  ;;  %s6246_s10 = smov (!%p239_p2), 16   ;;  %s6247_s11 = smov (!%p239_p2), 24  }
   0xd   : > { %s7775_s9 = smov (!%p271_p3, %s4934_s9), 15  ;;  %5476 = vmatpush3.bf16.msra.mxu0 %v5473_v5  ;;  %5648 = vmatpush3.bf16.msra.mxu1 %v5473_v5 }
   0xe   : > { %s4935_s12 = sshll.u32 %s7775_s9, 3 }
   0xf   : > { %s6316_s15 = scalar_lea.vmem %s7764_s0, %s4935_s12 }
  0x10   : > { %v282_v6 = vld [vmem:[%s6316_s15] sm:$0xff]  ;;  %v283_v8 = vld [vmem:[%s6316_s15 + $0x8] sm:$0xff]  ;;  %v284_v10 = vld [vmem:[%s6316_s15 + $0x10] sm:$0xff] }
  0x11   : > { %v286_v7 = vld [vmem:[%s6316_s15 + $0x20] sm:$0xff]  ;;  %5213 = vmatprep.mubr.msk.f32.mxu0 %vm301_vm0, %v282_v6  ;;  %v287_v9 = vld [vmem:[%s6316_s15 + $0x28] sm:$0xff]  ;;  %v288_v11 = vld [vmem:[%s6316_s15 + $0x30] sm:$0xff] }
  0x12   : > { %5219 = vmatprep.mubr.msk.f32.mxu1 %vm301_vm0, %v286_v7  ;;  %5214 = vmatmul.mubr.msk.f32.vlgmr.msra.gmra.mrb[0].mxu0 %vm301_vm0, %v283_v8  ;;  %v285_v12 = vld [vmem:[%s6316_s15 + $0x18] sm:$0xff] }
  0x13   : > { %5220 = vmatmul.mubr.msk.f32.vlgmr.msra.gmra.mrb[0].mxu1 %vm301_vm0, %v287_v9  ;;  %5216 = vmatprep.mubr.msk.f32.mxu0 %vm301_vm0, %v284_v10  ;;  %v289_v13 = vld [vmem:[%s6316_s15 + $0x38] sm:$0xff] }
  0x14   : > { %5222 = vmatprep.mubr.msk.f32.mxu1 %vm301_vm0, %v288_v11 }
  0x16   : > { %5217 = vmatmul.mubr.msk.f32.gmra.mrb[2].mxu0 %vm301_vm0, %v285_v12 }
  0x17   : > { %5223 = vmatmul.mubr.msk.f32.gmra.mrb[2].mxu1 %vm301_vm0, %v289_v13 }
  0xe5   : > { %v5215_v15 = vpop.f32.mrb[0].mxu0 }
  0xe6   : > { %v6337_v16 = vadd.f32 %v5215_v15, %v4938_v14  ;;  %v392_v17 = vpop.f32.mrb[1].mxu0  ;;  %v5221_v18 = vpop.f32.mrb[0].mxu1 }
  0xe7   : > { %v412_v19 = vpop.f32.mrb[1].mxu1  ;;  %v6347_v22 = vadd.f32 %v5221_v18, %v4938_v14  ;;  %v6363_v28 = vadd.f32 %v4938_v14, %v392_v17 }
  0xe8   : > { %v6341_v20 = vmul.f32 %v6337_v16, %v6337_v16  ;;  %v6377_v30 = vadd.f32 %v4938_v14, %v412_v19 }
  0xe9   : > { %v5218_v21 = vpop.f32.mrb[2].mxu0  ;;  %v6357_v27 = vmul.f32 %v6347_v22, %v6347_v22  ;;  %v6371_v29 = vmul.f32 %v6363_v28, %v6363_v28 }
  0xea   : > { %815 = vrot.lane.b32.xlu1 %v6341_v20, %s6237_s18  ;;  %663 = vrot.lane.b32.xlu0 %v6341_v20, %s6238_s19  ;;  %v402_v23 = vpop.f32.mrb[3].mxu0  ;;  %v5224_v24 = vpop.f32.mrb[2].mxu1  ;;  %v6385_v31 = vmul.f32 %v6377_v30, %v6377_v30  ;;  %v6399_v32 = vadd.f32 %v5218_v21, %v4938_v14 }
  0xeb   : > { %v422_v25 = vpop.f32.mrb[3].mxu1  ;;  %v6417_v34 = vadd.f32 %v5224_v24, %v4938_v14  ;;  %v6431_v36 = vadd.f32 %v4938_v14, %v402_v23 }
  0xec   : > { %v6349_v26 = vadd.f32 %v4938_v14, %v422_v25  ;;  %v6407_v33 = vmul.f32 %v6399_v32, %v6399_v32 }
  0xed   : > { %v6425_v35 = vmul.f32 %v6417_v34, %v6417_v34  ;;  %v6439_v37 = vmul.f32 %v6431_v36, %v6431_v36 }
  0xee   : > { %967 = vrot.lane.b32.xlu1 %v6341_v20, %s6239_s20  ;;  %735 = vrot.lane.b32.xlu0 %v6341_v20, %s6240_s21  ;;  %v6455_v38 = vmul.f32 %v6349_v26, %v6349_v26 }
  0xf2   : > { %671 = vrot.lane.b32.xlu1 %v6357_v27, %s6238_s19  ;;  %887 = vrot.lane.b32.xlu0 %v6341_v20, %s6241_s22 }
  0xf6   : > { %823 = vrot.lane.b32.xlu1 %v6357_v27, %s6237_s18  ;;  %519 = vrot.lane.b32.xlu0 %v6357_v27, %s6242_s23 }
  0xfa   : > { %975 = vrot.lane.b32.xlu1 %v6357_v27, %s6239_s20  ;;  %661 = vrot.lane.b32.xlu0 %v6371_v29, %s6238_s19 }
  0xfe   : > { %511 = vrot.lane.b32.xlu1 %v6341_v20, %s6242_s23  ;;  %965 = vrot.lane.b32.xlu0 %v6371_v29, %s6239_s20 }
 0x102   : > { %583 = vrot.lane.b32.xlu1 %v6341_v20, %s6243_s25  ;;  %669 = vrot.lane.b32.xlu0 %v6385_v31, %s6238_s19 }
 0x106   : > { %813 = vrot.lane.b32.xlu1 %v6371_v29, %s6237_s18  ;;  %821 = vrot.lane.b32.xlu0 %v6385_v31, %s6237_s18 }
 0x10a   : > { %517 = vrot.lane.b32.xlu1 %v6385_v31, %s6242_s23  ;;  %973 = vrot.lane.b32.xlu0 %v6385_v31, %s6239_s20 }
 0x10e   : > { %589 = vrot.lane.b32.xlu1 %v6385_v31, %s6243_s25  ;;  %509 = vrot.lane.b32.xlu0 %v6371_v29, %s6242_s23 }
 0x112   : > { %667 = vrot.lane.b32.xlu1 %v6407_v33, %s6238_s19  ;;  %581 = vrot.lane.b32.xlu0 %v6371_v29, %s6243_s25 }
 0x116   : > { %819 = vrot.lane.b32.xlu1 %v6407_v33, %s6237_s18  ;;  %733 = vrot.lane.b32.xlu0 %v6371_v29, %s6240_s21 }
 0x11a   : > { %971 = vrot.lane.b32.xlu1 %v6407_v33, %s6239_s20  ;;  %885 = vrot.lane.b32.xlu0 %v6371_v29, %s6241_s22 }
 0x11e   : > { %675 = vrot.lane.b32.xlu1 %v6425_v35, %s6238_s19  ;;  %587 = vrot.lane.b32.xlu0 %v6407_v33, %s6243_s25 }
 0x122   : > { %827 = vrot.lane.b32.xlu1 %v6425_v35, %s6237_s18  ;;  %891 = vrot.lane.b32.xlu0 %v6407_v33, %s6241_s22 }
 0x126   : > { %979 = vrot.lane.b32.xlu1 %v6425_v35, %s6239_s20  ;;  %665 = vrot.lane.b32.xlu0 %v6439_v37, %s6238_s19 }
 0x12a   : > { %515 = vrot.lane.b32.xlu1 %v6407_v33, %s6242_s23  ;;  %817 = vrot.lane.b32.xlu0 %v6439_v37, %s6237_s18 }
 0x12e   : > { %739 = vrot.lane.b32.xlu1 %v6407_v33, %s6240_s21  ;;  %969 = vrot.lane.b32.xlu0 %v6439_v37, %s6239_s20 }
 0x132   : > { %585 = vrot.lane.b32.xlu1 %v6439_v37, %s6243_s25  ;;  %673 = vrot.lane.b32.xlu0 %v6455_v38, %s6238_s19 }
 0x136   : > { %825 = vrot.lane.b32.xlu0 %v6455_v38, %s6237_s18  ;;  %s7716_s18 = scalar_lea.vmem %s7771_s7, %s4935_s12 }
 0x13a   : > { %977 = vrot.lane.b32.xlu0 %v6455_v38, %s6239_s20 }
 0x13e   : > { %513 = vrot.lane.b32.xlu0 %v6439_v37, %s6242_s23 }
 0x142   : > { %737 = vrot.lane.b32.xlu0 %v6439_v37, %s6240_s21 }
 0x146   : > { %889 = vrot.lane.b32.xlu0 %v6439_v37, %s6241_s22 }
 0x15c   : > { %v816_v39 = vpop.permute.xlu1 %815  ;;  %v664_v40 = vpop.permute.xlu0 %663 }
 0x15d   : > { %v688_v41 = vsel %vm440_vm1, %v664_v40, 0.0  ;;  %v840_v44 = vsel %vm440_vm1, %v816_v39, 0.0 }
 0x15e   : > { %689 = vadd.xlane.f32.xlu1 %v688_v41 }
 0x160   : > { %v968_v42 = vpop.permute.xlu1 %967  ;;  %v6472_v43 = vpop.permute.xlu0 %735 }
 0x161   : > { %v992_v47 = vsel %vm440_vm1, %v968_v42, 0.0 }
 0x162   : > { %841 = vadd.xlane.f32.xlu1 %v840_v44 }
 0x164   : > { %v672_v45 = vpop.permute.xlu1 %671  ;;  %v6475_v46 = vpop.permute.xlu0 %887 }
 0x165   : > { %v700_v48 = vsel %vm440_vm1, %v672_v45, 0.0 }
 0x166   : > { %993 = vadd.xlane.f32.xlu1 %v992_v47  ;;  %701 = vadd.xlane.f32.xlu0 %v700_v48 }
 0x168   : > { %v824_v49 = vpop.permute.xlu1 %823  ;;  %v6479_v50 = vpop.permute.xlu0 %519 }
 0x169   : > { %v852_v11 = vsel %vm440_vm1, %v824_v49, 0.0 }
 0x16c   : > { %v976_v51 = vpop.permute.xlu1 %975  ;;  %v662_v52 = vpop.permute.xlu0 %661 }
 0x16d   : > { %v685_v53 = vsel %vm440_vm1, %v662_v52, 0.0  ;;  %v1004_v39 = vsel %vm440_vm1, %v976_v51, 0.0 }
 0x16e   : > { %686 = vadd.xlane.f32.xlu0 %v685_v53 }
 0x170   : > { %v512_v54 = vpop.permute.xlu1 %511  ;;  %v966_v55 = vpop.permute.xlu0 %965 }
 0x171   : > { %v989_v56 = vsel %vm440_vm1, %v966_v55, 0.0  ;;  %v536_v47 = vsel %vm440_vm1, %v512_v54, 0.0 }
 0x172   : > { %990 = vadd.xlane.f32.xlu0 %v989_v56 }
 0x174   : > { %v6483_v57 = vpop.permute.xlu1 %583  ;;  %v670_v58 = vpop.permute.xlu0 %669 }
 0x175   : > { %v697_v0 = vsel %vm440_vm1, %v670_v58, 0.0 }
 0x178   : > { %v814_v59 = vpop.permute.xlu1 %813  ;;  %v822_v60 = vpop.permute.xlu0 %821 }
 0x179   : > { %v837_v61 = vsel %vm440_vm1, %v814_v59, 0.0  ;;  %v849_v24 = vsel %vm440_vm1, %v822_v60, 0.0 }
 0x17a   : > { %838 = vadd.xlane.f32.xlu1 %v837_v61 }
 0x17c   : > { %v6486_v62 = vpop.permute.xlu1 %517  ;;  %v974_v63 = vpop.permute.xlu0 %973 }
 0x17d   : > { %v1001_v25 = vsel %vm440_vm1, %v974_v63, 0.0 }
 0x17e   : > { %698 = vadd.xlane.f32.xlu1 %v697_v0 }
 0x180   : > { %v6489_v1 = vpop.permute.xlu1 %589  ;;  %v510_v2 = vpop.permute.xlu0 %509 }
 0x181   : > { %v533_v45 = vsel %vm440_vm1, %v510_v2, 0.0  ;;  %v760_v2 = vsel %vm440_vm1, %v6472_v43, 0.0 }
 0x184   : > { %v668_v3 = vpop.permute.xlu1 %667  ;;  %v6491_v4 = vpop.permute.xlu0 %581 }
 0x185   : > { %v694_v5 = vsel %vm440_vm1, %v668_v3, 0.0  ;;  %v605_v58 = vsel %vm440_vm1, %v6491_v4, 0.0  ;;  %v912_v3 = vsel %vm440_vm1, %v6475_v46, 0.0  ;;  %v608_v46 = vsel %vm440_vm1, %v6483_v57, 0.0 }
 0x186   : > { %695 = vadd.xlane.f32.xlu0 %v694_v5 }
 0x188   : > { %v820_v6 = vpop.permute.xlu1 %819  ;;  %v6494_v7 = vpop.permute.xlu0 %733 }
 0x189   : > { %v846_v8 = vsel %vm440_vm1, %v820_v6, 0.0 }
 0x18a   : > { %847 = vadd.xlane.f32.xlu0 %v846_v8 }
 0x18c   : > { %v972_v9 = vpop.permute.xlu1 %971  ;;  %v6497_v10 = vpop.permute.xlu0 %885 }
 0x18d   : > { %v998_v12 = vsel %vm440_vm1, %v972_v9, 0.0 }
 0x18e   : > { %853 = vadd.xlane.f32.xlu0 %v852_v11  ;;  %999 = vadd.xlane.f32.xlu1 %v998_v12  ;;  %v545_v11 = vsel %vm440_vm1, %v6486_v62, 0.0 }
 0x190   : > { %v6501_v13 = vpop.permute.xlu0 %587  ;;  %v676_v40 = vpop.permute.xlu1 %675 }
 0x191   : > { %v706_v41 = vsel %vm440_vm1, %v676_v40, 0.0  ;;  %v614_v6 = vsel %vm440_vm1, %v6501_v13, 0.0 }
 0x194   : > { %v6503_v14 = vpop.permute.xlu0 %891  ;;  %v828_v51 = vpop.permute.xlu1 %827 }
 0x195   : > { %v858_v52 = vsel %vm440_vm1, %v828_v51, 0.0 }
 0x198   : > { %v666_v15 = vpop.permute.xlu0 %665  ;;  %v980_v55 = vpop.permute.xlu1 %979 }
 0x199   : > { %v691_v17 = vsel %vm440_vm1, %v666_v15, 0.0  ;;  %v1010_v56 = vsel %vm440_vm1, %v980_v55, 0.0  ;;  %v548_v15 = vsel %vm440_vm1, %v6479_v50, 0.0 }
 0x19a   : > { %692 = vadd.xlane.f32.xlu1 %v691_v17  ;;  %v757_v17 = vsel %vm440_vm1, %v6494_v7, 0.0  ;;  %v918_v7 = vsel %vm440_vm1, %v6503_v14, 0.0 }
 0x19c   : > { %v818_v18 = vpop.permute.xlu0 %817  ;;  %v516_v61 = vpop.permute.xlu1 %515 }
 0x19d   : > { %v843_v19 = vsel %vm440_vm1, %v818_v18, 0.0  ;;  %v542_v63 = vsel %vm440_vm1, %v516_v61, 0.0 }
 0x19e   : > { %844 = vadd.xlane.f32.xlu1 %v843_v19 }
 0x1a0   : > { %v970_v21 = vpop.permute.xlu0 %969  ;;  %v740_v0 = vpop.permute.xlu1 %739 }
 0x1a1   : > { %v995_v23 = vsel %vm440_vm1, %v970_v21, 0.0  ;;  %v909_v21 = vsel %vm440_vm1, %v6497_v10, 0.0  ;;  %v766_v57 = vsel %vm440_vm1, %v740_v0, 0.0 }
 0x1a2   : > { %996 = vadd.xlane.f32.xlu1 %v995_v23 }
 0x1a4   : > { %591 = vrot.lane.b32.xlu0 %v6357_v27, %s6243_s25  ;;  %v674_v42 = vpop.permute.xlu0 %673  ;;  %v586_v5 = vpop.permute.xlu1 %585 }
 0x1a5   : > { %v703_v44 = vsel %vm440_vm1, %v674_v42, 0.0 }
 0x1a6   : > { %850 = vadd.xlane.f32.xlu1 %v849_v24 }
 0x1a8   : > { %523 = vrot.lane.b32.xlu0 %v6425_v35, %s6242_s23  ;;  %v826_v48 = vpop.permute.xlu0 %825 }
 0x1a9   : > { %v855_v49 = vsel %vm440_vm1, %v826_v48, 0.0 }
 0x1aa   : > { %1002 = vadd.xlane.f32.xlu1 %v1001_v25  ;;  %v611_v25 = vsel %vm440_vm1, %v586_v5, 0.0 }
 0x1ac   : > { %741 = vrot.lane.b32.xlu0 %v6385_v31, %s6240_s21  ;;  %v978_v53 = vpop.permute.xlu0 %977 }
 0x1ad   : > { %v1007_v54 = vsel %vm440_vm1, %v978_v53, 0.0 }
 0x1ae   : > { %1005 = vadd.xlane.f32.xlu1 %v1004_v39 }
 0x1b0   : > { %893 = vrot.lane.b32.xlu0 %v6385_v31, %s6241_s22  ;;  %v514_v59 = vpop.permute.xlu0 %513 }
 0x1b1   : > { %v539_v60 = vsel %vm440_vm1, %v514_v59, 0.0 }
 0x1b4   : > { %v738_v4 = vpop.permute.xlu0 %737 }
 0x1b5   : > { %v763_v18 = vsel %vm440_vm1, %v738_v4, 0.0 }
 0x1b8   : > { %v6555_v9 = vpop.permute.xlu0 %889 }
 0x1bf   : > { %521 = vrot.lane.b32.xlu1 %v6455_v38, %s6242_s23 }
 0x1c3   : > { %743 = vrot.lane.b32.xlu1 %v6357_v27, %s6240_s21 }
 0x1cf   : > { %707 = vadd.xlane.f32.xlu0 %v706_v41 }
 0x1e5   : > { %895 = vrot.lane.b32.xlu0 %v6357_v27, %s6241_s22 }
 0x1e7   : > { %704 = vadd.xlane.f32.xlu1 %v703_v44 }
 0x1eb   : > { %534 = vadd.xlane.f32.xlu1 %v533_v45  ;;  %v690_v8 = vpop.xlane.xlu1 %689 }
 0x1ec   : > { %v710_v23 = vmax.f32 %v690_v8, 1e-24 }
 0x1ef   : > { %537 = vadd.xlane.f32.xlu1 %v536_v47  ;;  %v842_v12 = vpop.xlane.xlu1 %841 }
 0x1f0   : > { %v862_v40 = vmax.f32 %v842_v12, 1e-24 }
 0x1f3   : > { %v6559_v43 = vpop.xlane.xlu0 %701  ;;  %v994_v19 = vpop.xlane.xlu1 %993 }
 0x1f4   : > { %v1014_v10 = vmax.f32 %v994_v19, 1e-24 }
 0x1fb   : > { %v687_v13 = vpop.xlane.xlu0 %686 }
 0x1fc   : > { %v709_v62 = vmax.f32 %v687_v13, 1e-24 }
 0x1fe   : > { %5948 = vrsqrt.f32 %v709_v62 }
 0x1ff   : > { %5950 = vrsqrt.f32 %v710_v23  ;;  %v991_v39 = vpop.xlane.xlu0 %990 }
 0x200   : > { %593 = vrot.lane.b32.xlu1 %v6455_v38, %s6243_s25  ;;  %v1013_v41 = vmax.f32 %v991_v39, 1e-24 }
 0x204   : > { %856 = vadd.xlane.f32.xlu0 %v855_v49 }
 0x207   : > { %v839_v24 = vpop.xlane.xlu1 %838 }
 0x208   : > { %v861_v50 = vmax.f32 %v839_v24, 1e-24  ;;  %v5949_v42 = vpop.eup %5948 }
 0x209   : > { %v5951_v44 = vpop.eup %5950  ;;  %v725_v45 = vmul.f32 %v5949_v42, %v6363_v28 }
 0x20a   : > { %5952 = vrsqrt.f32 %v861_v50  ;;  %v726_v48 = vmul.f32 %v5951_v44, %v6337_v16 }
 0x20b   : > { %5954 = vrsqrt.f32 %v862_v40  ;;  %v6576_v14 = vpop.xlane.xlu1 %698 }
 0x20c   : > { %5956 = vrsqrt.f32 %v1013_v41  ;;  %v5668_v51 = vpack.i.bf16 %v726_v48, %v725_v45 }
 0x20d   : > { %5958 = vrsqrt.f32 %v1014_v10 }
 0x213   : > { %v696_v0 = vpop.xlane.xlu0 %695 }
 0x214   : > { %v5953_v47 = vpop.eup %5952  ;;  %v712_v13 = vmax.f32 %v696_v0, 1e-24 }
 0x215   : > { %v5955_v49 = vpop.eup %5954 }
 0x216   : > { %v5957_v53 = vpop.eup %5956 }
 0x217   : > { %v5959_v55 = vpop.eup %5958  ;;  %v1029_v59 = vmul.f32 %v5957_v53, %v6363_v28 }
 0x21a   : > { %595 = vrot.lane.b32.xlu0 %v6425_v35, %s6243_s25 }
 0x21e   : > { %747 = vrot.lane.b32.xlu0 %v6425_v35, %s6240_s21 }
 0x222   : > { %897 = vrot.lane.b32.xlu0 %v6455_v38, %s6241_s22 }
 0x224   : > { %859 = vadd.xlane.f32.xlu1 %v858_v52  ;;  %v877_v52 = vmul.f32 %v5953_v47, %v6363_v28 }
 0x226   : > { %899 = vrot.lane.b32.xlu0 %v6425_v35, %s6241_s22 }
 0x228   : > { %1008 = vadd.xlane.f32.xlu1 %v1007_v54  ;;  %v878_v54 = vmul.f32 %v5955_v49, %v6337_v16 }
 0x22c   : > { %1011 = vadd.xlane.f32.xlu1 %v1010_v56  ;;  %v6581_v56 = vpop.xlane.xlu1 %999 }
 0x230   : > { %v693_v61 = vpop.xlane.xlu1 %692 }
 0x23d   : > { %745 = vrot.lane.b32.xlu1 %v6455_v38, %s6240_s21 }
 0x245   : > { %606 = vadd.xlane.f32.xlu0 %v605_v58  ;;  %v5673_v58 = vpack.i.bf16 %v878_v54, %v877_v52 }
 0x249   : > { %540 = vadd.xlane.f32.xlu0 %v539_v60  ;;  %v1030_v60 = vmul.f32 %v5959_v55, %v6337_v16  ;;  %v1016_v55 = vmax.f32 %v6581_v56, 1e-24 }
 0x24d   : > { %543 = vadd.xlane.f32.xlu0 %v542_v63  ;;  %v5678_v63 = vpack.i.bf16 %v1030_v60, %v1029_v59 }
 0x251   : > { %761 = vadd.xlane.f32.xlu0 %v760_v2  ;;  %v845_v2 = vpop.xlane.xlu1 %844 }
 0x252   : > { %v863_v44 = vmax.f32 %v845_v2, 1e-24 }
 0x255   : > { %913 = vadd.xlane.f32.xlu0 %v912_v3  ;;  %v848_v3 = vpop.xlane.xlu0 %847  ;;  %v997_v5 = vpop.xlane.xlu1 %996 }
 0x256   : > { %v864_v47 = vmax.f32 %v848_v3, 1e-24  ;;  %v1015_v54 = vmax.f32 %v997_v5, 1e-24 }
 0x259   : > { %615 = vadd.xlane.f32.xlu0 %v614_v6  ;;  %v6587_v4 = vpop.xlane.xlu0 %853  ;;  %v6589_v6 = vpop.xlane.xlu1 %850 }
 0x25d   : > { %546 = vadd.xlane.f32.xlu0 %v545_v11  ;;  %v592_v8 = vpop.permute.xlu0 %591  ;;  %v6591_v11 = vpop.xlane.xlu1 %1002 }
 0x25e   : > { %v620_v19 = vsel %vm440_vm1, %v592_v8, 0.0 }
 0x261   : > { %609 = vadd.xlane.f32.xlu1 %v608_v46  ;;  %549 = vadd.xlane.f32.xlu0 %v548_v15  ;;  %v524_v12 = vpop.permute.xlu0 %523  ;;  %v711_v46 = vmax.f32 %v693_v61, 1e-24  ;;  %v915_v15 = vsel %vm440_vm1, %v6555_v9, 0.0 }
 0x263   : > { %5960 = vrsqrt.f32 %v711_v46 }
 0x264   : > { %5962 = vrsqrt.f32 %v712_v13 }
 0x265   : > { %758 = vadd.xlane.f32.xlu1 %v757_v17  ;;  %764 = vadd.xlane.f32.xlu0 %v763_v18  ;;  %v6595_v17 = vpop.xlane.xlu1 %1005  ;;  %v617_v18 = vsel %vm440_vm1, %v6489_v1, 0.0  ;;  %v742_v62 = vpop.permute.xlu0 %741  ;;  %5964 = vrsqrt.f32 %v863_v44 }
 0x266   : > { %v769_v9 = vsel %vm440_vm1, %v742_v62, 0.0  ;;  %5966 = vrsqrt.f32 %v864_v47  ;;  %v714_v62 = vmax.f32 %v6559_v43, 1e-24 }
 0x267   : > { %5968 = vrsqrt.f32 %v1015_v54 }
 0x268   : > { %5970 = vrsqrt.f32 %v1016_v55 }
 0x269   : > { %910 = vadd.xlane.f32.xlu1 %v909_v21  ;;  %767 = vadd.xlane.f32.xlu0 %v766_v57  ;;  %v522_v21 = vpop.permute.xlu1 %521  ;;  %v554_v57 = vsel %vm440_vm1, %v524_v12, 0.0  ;;  %v894_v23 = vpop.permute.xlu0 %893 }
 0x26a   : > { %v921_v41 = vsel %vm440_vm1, %v894_v23, 0.0  ;;  %v551_v59 = vsel %vm440_vm1, %v522_v21, 0.0  ;;  %v1018_v21 = vmax.f32 %v6595_v17, 1e-24  ;;  %v1017_v23 = vmax.f32 %v6591_v11, 1e-24 }
 0x26d   : > { %612 = vadd.xlane.f32.xlu1 %v611_v25  ;;  %919 = vadd.xlane.f32.xlu0 %v918_v7  ;;  %v5961_v24 = vpop.eup %5960  ;;  %v744_v50 = vpop.permute.xlu1 %743 }
 0x26e   : > { %v5963_v25 = vpop.eup %5962  ;;  %v6602_v7 = vpop.xlane.xlu0 %707  ;;  %v772_v1 = vsel %vm440_vm1, %v744_v50, 0.0  ;;  %v727_v39 = vmul.f32 %v5961_v24, %v6431_v36 }
 0x26f   : > { %v728_v40 = vmul.f32 %v5963_v25, %v6399_v32  ;;  %v5965_v48 = vpop.eup %5964 }
 0x270   : > { %v5967_v49 = vpop.eup %5966 }
 0x271   : > { %v5683_v10 = vpack.i.bf16 %v728_v40, %v727_v39  ;;  %v880_v52 = vmul.f32 %v5967_v49, %v6399_v32  ;;  %v5969_v61 = vpop.eup %5968 }
 0x272   : > { %v896_v42 = vpop.permute.xlu0 %895  ;;  %v1031_v2 = vmul.f32 %v5969_v61, %v6431_v36 }
 0x273   : > { %v924_v45 = vsel %vm440_vm1, %v896_v42, 0.0 }
 0x27e   : > { %5669 = vrot.lane.b32.xlu1 %v5668_v51, %s6243_s25  ;;  %v879_v51 = vmul.f32 %v5965_v48, %v6431_v36 }
 0x280   : > { %v5688_v53 = vpack.i.bf16 %v880_v52, %v879_v51 }
 0x283   : > { %5674 = vrot.lane.b32.xlu0 %v5673_v58, %s6240_s21  ;;  %v705_v58 = vpop.xlane.xlu1 %704 }
 0x287   : > { %5679 = vrot.lane.b32.xlu0 %v5678_v63, %s6241_s22  ;;  %v535_v60 = vpop.xlane.xlu1 %534  ;;  %v5971_v63 = vpop.eup %5970 }
 0x288   : > { %v1032_v3 = vmul.f32 %v5971_v63, %v6399_v32  ;;  %v557_v43 = vmax.f32 %v535_v60, 1e-24 }
 0x28a   : > { %v5693_v12 = vpack.i.bf16 %v1032_v3, %v1031_v2 }
 0x28b   : > { %v538_v0 = vpop.xlane.xlu1 %537 }
 0x28f   : > { %v594_v5 = vpop.permute.xlu1 %593 }
 0x290   : > { %v623_v56 = vsel %vm440_vm1, %v594_v5, 0.0  ;;  %v865_v5 = vmax.f32 %v6589_v6, 1e-24 }
 0x291   : > { %v6617_v8 = vpop.xlane.xlu0 %856 }
 0x295   : > { %v596_v46 = vpop.permute.xlu0 %595 }
 0x296   : > { %v626_v49 = vsel %vm440_vm1, %v596_v46, 0.0  ;;  %v866_v46 = vmax.f32 %v6587_v4, 1e-24 }
 0x299   : > { %v748_v13 = vpop.permute.xlu0 %747 }
 0x29a   : > { %v778_v3 = vsel %vm440_vm1, %v748_v13, 0.0 }
 0x2a2   : > { %916 = vadd.xlane.f32.xlu1 %v915_v15  ;;  %v441_v15 = vsel %vm440_vm1, %v6371_v29, 0.0 }
 0x2a6   : > { %618 = vadd.xlane.f32.xlu0 %v617_v18  ;;  %621 = vadd.xlane.f32.xlu1 %v620_v19  ;;  %v713_v18 = vmax.f32 %v6576_v14, 1e-24  ;;  %v444_v19 = vsel %vm440_vm1, %v6341_v20, 0.0  ;;  %v716_v14 = vmax.f32 %v6602_v7, 1e-24 }
 0x2a7   : > { %v558_v20 = vmax.f32 %v538_v0, 1e-24 }
 0x2a8   : > { %5972 = vrsqrt.f32 %v713_v18 }
 0x2a9   : > { %5974 = vrsqrt.f32 %v714_v62 }
 0x2aa   : > { %555 = vadd.xlane.f32.xlu0 %v554_v57  ;;  %v898_v57 = vpop.permute.xlu0 %897  ;;  %5976 = vrsqrt.f32 %v1018_v21 }
 0x2ab   : > { %5978 = vrsqrt.f32 %v1017_v23 }
 0x2ae   : > { %770 = vadd.xlane.f32.xlu0 %v769_v9  ;;  %v715_v9 = vmax.f32 %v705_v58, 1e-24  ;;  %v900_v24 = vpop.permute.xlu0 %899 }
 0x2af   : > { %v930_v18 = vsel %vm440_vm1, %v900_v24, 0.0 }
 0x2b0   : > { %5980 = vrsqrt.f32 %v715_v9 }
 0x2b1   : > { %v6629_v29 = vpop.xlane.xlu1 %859  ;;  %5982 = vrsqrt.f32 %v716_v14 }
 0x2b2   : > { %773 = vadd.xlane.f32.xlu0 %v772_v1  ;;  %v5973_v50 = vpop.eup %5972  ;;  %5984 = vrsqrt.f32 %v558_v20  ;;  %v868_v24 = vmax.f32 %v6629_v29, 1e-24  ;;  %v481_v29 = vlaneseq }
 0x2b3   : > { %v5975_v1 = vpop.eup %5974  ;;  %v729_v11 = vmul.f32 %v5973_v50, %v6377_v30  ;;  %5986 = vrsqrt.f32 %v557_v43  ;;  %v447_v50 = vsel %vm440_vm1, %v6439_v37, 0.0  ;;  %v867_v43 = vmax.f32 %v6617_v8, 1e-24 }
 0x2b4   : > { %v5977_v39 = vpop.eup %5976  ;;  %v730_v40 = vmul.f32 %v5975_v1, %v6347_v22  ;;  %5988 = vrsqrt.f32 %v865_v5  ;;  %v6694_v8 = vshrl.u32 %v481_v29, 7 }
 0x2b5   : > { %v6632_v25 = vpop.xlane.xlu1 %1008  ;;  %v1034_v44 = vmul.f32 %v5977_v39, %v6347_v22  ;;  %5990 = vrsqrt.f32 %v866_v46 }
 0x2b6   : > { %922 = vadd.xlane.f32.xlu0 %v921_v41  ;;  %v5979_v41 = vpop.eup %5978  ;;  %v5698_v42 = vpack.i.bf16 %v730_v40, %v729_v11  ;;  %5992 = vrsqrt.f32 %v868_v24 }
 0x2b7   : > { %5684 = vrot.lane.b32.xlu1 %v5683_v10, %s6243_s25  ;;  %v1033_v47 = vmul.f32 %v5979_v41, %v6377_v30  ;;  %5994 = vrsqrt.f32 %v867_v43 }
 0x2b9   : > { %v6638_v7 = vpop.xlane.xlu1 %1011  ;;  %v5708_v51 = vpack.i.bf16 %v1034_v44, %v1033_v47 }
 0x2ba   : > { %925 = vadd.xlane.f32.xlu0 %v924_v45  ;;  %v5981_v45 = vpop.eup %5980 }
 0x2bb   : > { %v5983_v48 = vpop.eup %5982  ;;  %v731_v52 = vmul.f32 %v5981_v45, %v6349_v26 }
 0x2bc   : > { %v732_v58 = vmul.f32 %v5983_v48, %v6417_v34 }
 0x2bd   : > { %v746_v54 = vpop.permute.xlu1 %745 }
 0x2be   : > { %v775_v60 = vsel %vm440_vm1, %v746_v54, 0.0  ;;  %v5713_v61 = vpack.i.bf16 %v732_v58, %v731_v52 }
 0x2d0   : > { %5689 = vrot.lane.b32.xlu0 %v5688_v53, %s6240_s21  ;;  %v5985_v53 = vpop.eup %5984 }
 0x2d1   : > { %v574_v63 = vmul.f32 %v5985_v53, %v6337_v16  ;;  %v1020_v53 = vmax.f32 %v6638_v7, 1e-24 }
 0x2d2   : > { %v6634_v17 = vpop.xlane.xlu0 %606 }
 0x2d3   : > { %v629_v40 = vmax.f32 %v6634_v17, 1e-24  ;;  %v431_v17 = vld [vmem:[%s7768_s4] sm:$0xff] }
 0x2d5   : > { %5996 = vrsqrt.f32 %v629_v40 }
 0x2d6   : > { %v6640_v10 = vpop.xlane.xlu0 %540  ;;  %5998 = vrsqrt.f32 %v1020_v53 }
 0x2da   : > { %v6647_v55 = vpop.xlane.xlu0 %543 }
 0x2db   : > { %552 = vadd.xlane.f32.xlu1 %v551_v59  ;;  %v5987_v59 = vpop.eup %5986 }
 0x2dc   : > { %v573_v0 = vmul.f32 %v5987_v59, %v6363_v28  ;;  %v5989_v13 = vpop.eup %5988  ;;  %v1019_v59 = vmax.f32 %v6632_v25, 1e-24 }
 0x2dd   : > { %v5991_v21 = vpop.eup %5990  ;;  %v881_v6 = vmul.f32 %v5989_v13, %v6377_v30 }
 0x2de   : > { %v6655_v2 = vpop.xlane.xlu0 %761  ;;  %6000 = vrsqrt.f32 %v1019_v59 }
 0x2df   : > { %v782_v24 = vmax.f32 %v6655_v2, 1e-24 }
 0x2ec   : > { %5694 = vrot.lane.b32.xlu1 %v5693_v12, %s6241_s22  ;;  %v5718_v12 = vpack.i.bf16 %v574_v63, %v573_v0 }
 0x2ee   : > { %v6673_v9 = vpop.xlane.xlu1 %609 }
 0x2ef   : > { %624 = vadd.xlane.f32.xlu0 %v623_v56  ;;  %v927_v56 = vsel %vm440_vm1, %v898_v57, 0.0  ;;  %v882_v57 = vmul.f32 %v5991_v21, %v6347_v22  ;;  %v560_v21 = vmax.f32 %v6647_v55, 1e-24 }
 0x2f1   : > { %v5703_v4 = vpack.i.bf16 %v882_v57, %v881_v6  ;;  %v456_v57 = vsel %vm440_vm1, %v6357_v27, 0.0  ;;  %6002 = vrsqrt.f32 %v560_v21 }
 0x2f2   : > { %v6679_v20 = vpop.xlane.xlu1 %758 }
 0x2f3   : > { %442 = vadd.xlane.f32.xlu0 %v441_v15  ;;  %v6662_v15 = vpop.xlane.xlu0 %913 }
 0x2f4   : > { %v934_v40 = vmax.f32 %v6662_v15, 1e-24 }
 0x2f6   : > { %v6686_v11 = vpop.xlane.xlu1 %910 }
 0x2f7   : > { %445 = vadd.xlane.f32.xlu0 %v444_v19  ;;  %v6665_v19 = vpop.xlane.xlu0 %615 }
 0x2fa   : > { %v6691_v41 = vpop.xlane.xlu1 %612 }
 0x2fb   : > { %v6667_v62 = vpop.xlane.xlu0 %546  ;;  %v631_v2 = vmax.f32 %v6691_v41, 1e-24  ;;  %v453_v41 = vsel %vm440_vm1, %v6385_v31, 0.0 }
 0x2fe   : > { %v5670_v47 = vpop.permute.xlu1 %5669 }
 0x2ff   : > { %v6671_v23 = vpop.xlane.xlu0 %549 }
 0x303   : > { %v6676_v14 = vpop.xlane.xlu0 %764 }
 0x307   : > { %v6684_v1 = vpop.xlane.xlu0 %767 }
 0x30b   : > { %v6688_v39 = vpop.xlane.xlu0 %919 }
 0x30d   : > { %5699 = vrot.lane.b32.xlu0 %v5698_v42, %s6243_s25  ;;  %v5993_v42 = vpop.eup %5992 }
 0x30e   : > { %v5995_v44 = vpop.eup %5994  ;;  %v884_v45 = vmul.f32 %v5993_v42, %v6417_v34 }
 0x30f   : > { %v5675_v37 = vpop.permute.xlu0 %5674  ;;  %v883_v48 = vmul.f32 %v5995_v44, %v6349_v26  ;;  %v5997_v58 = vpop.eup %5996 }
 0x310   : > { %627 = vadd.xlane.f32.xlu1 %v626_v49  ;;  %v5999_v25 = vpop.eup %5998 }
 0x311   : > { %5709 = vrot.lane.b32.xlu0 %v5708_v51, %s6241_s22  ;;  %v5723_v49 = vpack.i.bf16 %v884_v45, %v883_v48  ;;  %v483_v51 = vsub.s32 0, %v6694_v8  ;;  %v1036_v5 = vmul.f32 %v5999_v25, %v6417_v34 }
 0x313   : > { %v5680_v52 = vpop.permute.xlu0 %5679  ;;  %v6703_v54 = vrot.slane %v431_v17, %v483_v51 }
 0x314   : > { %776 = vadd.xlane.f32.xlu1 %v775_v60 }
 0x315   : > { %5714 = vrot.lane.b32.xlu0 %v5713_v61, %s6243_s25  ;;  %v450_v61 = vsel %vm440_vm1, %v6407_v33, 0.0  ;;  %v645_v63 = vmul.f32 %v5997_v58, %v6703_v54 }
 0x317   : > { %v653_v7 = vmul.f32 %v645_v63, %v6363_v28  ;;  %v781_v63 = vmax.f32 %v6679_v20, 1e-24 }
 0x318   : > { %779 = vadd.xlane.f32.xlu1 %v778_v3  ;;  %v6001_v3 = vpop.eup %6000 }
 0x319   : > { %5719 = vrot.lane.b32.xlu0 %v5718_v12, %s6242_s23  ;;  %v1035_v33 = vmul.f32 %v6001_v3, %v6349_v26  ;;  %v6003_v44 = vpop.eup %6002 }
 0x31a   : > { %v576_v48 = vmul.f32 %v6003_v44, %v6399_v32 }
 0x31c   : > { %928 = vadd.xlane.f32.xlu1 %v927_v56  ;;  %v5728_v56 = vpack.i.bf16 %v1036_v5, %v1035_v33  ;;  %v933_v33 = vmax.f32 %v6686_v11, 1e-24 }
 0x320   : > { %931 = vadd.xlane.f32.xlu1 %v930_v18 }
 0x331   : > { %5704 = vrot.lane.b32.xlu1 %v5703_v4, %s6240_s21  ;;  %v559_v4 = vmax.f32 %v6640_v10, 1e-24  ;;  %v630_v10 = vmax.f32 %v6673_v9, 1e-24 }
 0x333   : > { %v6707_v60 = vpop.xlane.xlu0 %618  ;;  %6004 = vrsqrt.f32 %v559_v4 }
 0x334   : > { %6006 = vrsqrt.f32 %v782_v24 }
 0x335   : > { %6008 = vrsqrt.f32 %v934_v40  ;;  %v7093_v40 = vld [vmem:[%s7769_s5 + $0x18] sm:$0xff] }
 0x337   : > { %v6714_v0 = vpop.xlane.xlu0 %555 }
 0x338   : > { %448 = vadd.xlane.f32.xlu0 %v447_v50  ;;  %v6736_v50 = vpop.xlane.xlu1 %916 }
 0x33b   : > { %v6717_v12 = vpop.xlane.xlu0 %770 }
 0x33c   : > { %v6741_v42 = vpop.xlane.xlu1 %621 }
 0x33f   : > { %v6721_v46 = vpop.xlane.xlu0 %773 }
 0x340   : > { %v5685_v45 = vpop.permute.xlu1 %5684 }
 0x343   : > { %v6725_v18 = vpop.xlane.xlu0 %922 }
 0x347   : > { %v6727_v13 = vpop.xlane.xlu0 %925 }
 0x34b   : > { %v6730_v6 = vpop.permute.xlu0 %5689 }
 0x34e   : > { %5724 = vrot.lane.b32.xlu0 %v5723_v49, %s6240_s21 }
 0x352   : > { %5734 = vrot.lane.b32.xlu0 %v5670_v47, %s6242_s23 }
 0x355   : > { %451 = vadd.xlane.f32.xlu1 %v450_v61 }
 0x356   : > { %5744 = vrot.lane.b32.xlu0 %v5680_v52, %s6242_s23 }
 0x35a   : > { %1045 = vrot.lane.b32.xlu0 %v653_v7, %s6243_s25 }
 0x366   : > { %5729 = vrot.lane.b32.xlu1 %v5728_v56, %s6241_s22 }
 0x368   : > { %v6749_v17 = vpop.xlane.xlu1 %552 }
 0x36a   : > { %5739 = vrot.lane.b32.xlu1 %v5675_v37, %s6242_s23  ;;  %v6005_v37 = vpop.eup %6004 }
 0x36b   : > { %v6007_v15 = vpop.eup %6006  ;;  %v575_v51 = vmul.f32 %v6005_v37, %v6431_v36 }
 0x36c   : > { %v6009_v52 = vpop.eup %6008  ;;  %v798_v59 = vmul.f32 %v6007_v15, %v6703_v54  ;;  %v5695_v31 = vpop.permute.xlu1 %5694 }
 0x36d   : > { %v5748_v58 = vpack.i.bf16 %v576_v48, %v575_v51  ;;  %v950_v3 = vmul.f32 %v6009_v52, %v6703_v54 }
 0x36e   : > { %v806_v5 = vmul.f32 %v798_v59, %v6337_v16 }
 0x36f   : > { %v958_v21 = vmul.f32 %v950_v3, %v6337_v16  ;;  %v632_v3 = vmax.f32 %v6665_v19, 1e-24  ;;  %v459_v19 = vsel %vm440_vm1, %v6455_v38, 0.0  ;;  %v786_v38 = vmax.f32 %v6721_v46, 1e-24 }
 0x379   : > { %457 = vadd.xlane.f32.xlu0 %v456_v57 }
 0x37c   : > { %v6738_v43 = vpop.xlane.xlu0 %624 }
 0x380   : > { %v443_v55 = vpop.xlane.xlu0 %442 }
 0x381   : > { %v465_v29 = vmax.f32 %v443_v55, 1e-24 }
 0x383   : > { %6010 = vrsqrt.f32 %v465_v29 }
 0x384   : > { %v446_v27 = vpop.xlane.xlu0 %445  ;;  %6012 = vrsqrt.f32 %v630_v10 }
 0x385   : > { %v466_v49 = vmax.f32 %v446_v27, 1e-24  ;;  %6014 = vrsqrt.f32 %v631_v2 }
 0x387   : > { %6016 = vrsqrt.f32 %v466_v49 }
 0x388   : > { %v6745_v47 = vpop.permute.xlu0 %5699  ;;  %6018 = vrsqrt.f32 %v781_v63  ;;  %v936_v63 = vmax.f32 %v6688_v39, 1e-24 }
 0x389   : > { %6020 = vrsqrt.f32 %v933_v33 }
 0x38c   : > { %v6751_v53 = vpop.permute.xlu0 %5709 }
 0x38d   : > { %v6011_v9 = vpop.eup %6010 }
 0x38e   : > { %454 = vadd.xlane.f32.xlu1 %v453_v41  ;;  %v485_v61 = vmul.f32 %v6011_v9, %v6703_v54  ;;  %v6013_v20 = vpop.eup %6012  ;;  %v562_v41 = vmax.f32 %v6671_v23, 1e-24 }
 0x38f   : > { %5749 = vrot.lane.b32.xlu0 %v5748_v58, %s6242_s23  ;;  %v6015_v24 = vpop.eup %6014  ;;  %v646_v11 = vmul.f32 %v6013_v20, %v6703_v54  ;;  %v462_v58 = vsel %vm440_vm1, %v6425_v35, 0.0 }
 0x390   : > { %v6759_v7 = vpop.permute.xlu0 %5714  ;;  %v493_v25 = vmul.f32 %v485_v61, %v6363_v28  ;;  %v647_v27 = vmul.f32 %v6015_v24, %v6703_v54  ;;  %6022 = vrsqrt.f32 %v562_v41  ;;  %v784_v61 = vmax.f32 %v6684_v1, 1e-24 }
 0x391   : > { %v6017_v29 = vpop.eup %6016  ;;  %v654_v10 = vmul.f32 %v646_v11, %v6337_v16 }
 0x392   : > { %5229 = vmatprep.mubr.msk.f32.mxu1 %vm440_vm1, %v493_v25  ;;  %v486_v44 = vmul.f32 %v6017_v29, %v6703_v54  ;;  %v655_v37 = vmul.f32 %v647_v27, %v6431_v36  ;;  %v6019_v2 = vpop.eup %6018 }
 0x393   : > { %1071 = vrot.lane.b32.xlu0 %v806_v5, %s6240_s21  ;;  %v797_v15 = vmul.f32 %v6019_v2, %v6703_v54  ;;  %v6021_v49 = vpop.eup %6020 }
 0x394   : > { %v5720_v56 = vpop.permute.xlu0 %5719  ;;  %v494_v48 = vmul.f32 %v486_v44, %v6337_v16  ;;  %v949_v52 = vmul.f32 %v6021_v49, %v6703_v54  ;;  %v783_v44 = vmax.f32 %v6676_v14, 1e-24  ;;  %v938_v49 = vmax.f32 %v6727_v13, 1e-24 }
 0x395   : > { %v5722_v57 = vunpack.i.h.bf16 %v5720_v56  ;;  %v5721_v4 = vunpack.i.l.bf16 %v5720_v56  ;;  %v805_v51 = vmul.f32 %v797_v15, %v6363_v28 }
 0x396   : > { %v957_v9 = vmul.f32 %v949_v52, %v6363_v28 }
 0x397   : > { %v5477_v55 = vpack.c.bf16 %v5722_v57, %v5721_v4  ;;  %1095 = vrot.lane.b32.xlu0 %v958_v21, %s6241_s22 }
 0x399   : > { %5479 = vmatprep.subr.msk.bf16.mxu1 %vm6770_vm2, %v5477_v55 }
 0x39a   : > { %5482 = vmatpush3.bf16.xpose.msk.msra.mxu1 %vm6770_vm2, %v5477_v55  ;;  %v6023_v35 = vpop.eup %6022 }
 0x39b   : > { %5764 = vrot.lane.b32.xlu0 %v5695_v31, %s6242_s23  ;;  %v578_v39 = vmul.f32 %v6023_v35, %v6347_v22 }
 0x39d   : > { %v6802_v59 = vpop.xlane.xlu1 %627 }
 0x39e   : > { %v636_v13 = vmax.f32 %v6802_v59, 1e-24  ;;  %v563_v59 = vmax.f32 %v6749_v17, 1e-24 }
 0x39f   : > { %1047 = vrot.lane.b32.xlu1 %v654_v10, %s6243_s25  ;;  %1049 = vrot.lane.b32.xlu0 %v655_v37, %s6243_s25 }
 0x3a1   : > { %5230 = vmatmul.mubr.msk.f32.vlgmr.msra.gmra.mrb[4].mxu1 %vm440_vm1, %v494_v48 }
 0x3a3   : > { %5754 = vrot.lane.b32.xlu1 %v5685_v45, %s6242_s23  ;;  %v561_v45 = vmax.f32 %v6667_v62, 1e-24  ;;  %v634_v62 = vmax.f32 %v6741_v42, 1e-24 }
 0x3a5   : > { %6024 = vrsqrt.f32 %v561_v45  ;;  %v633_v45 = vmax.f32 %v6707_v60, 1e-24 }
 0x3a6   : > { %6026 = vrsqrt.f32 %v784_v61 }
 0x3a7   : > { %1069 = vrot.lane.b32.xlu1 %v805_v51, %s6240_s21  ;;  %6028 = vrsqrt.f32 %v936_v63  ;;  %v935_v51 = vmax.f32 %v6736_v50, 1e-24 }
 0x3a8   : > { %6030 = vrsqrt.f32 %v632_v3 }
 0x3a9   : > { %6032 = vrsqrt.f32 %v634_v62 }
 0x3aa   : > { %6034 = vrsqrt.f32 %v783_v44 }
 0x3ab   : > { %1093 = vrot.lane.b32.xlu1 %v957_v9, %s6241_s22  ;;  %6036 = vrsqrt.f32 %v786_v38 }
 0x3ac   : > { %6038 = vrsqrt.f32 %v938_v49 }
 0x3ad   : > { %6040 = vrsqrt.f32 %v935_v51 }
 0x3ae   : > { %6042 = vrsqrt.f32 %v633_v45 }
 0x3af   : > { %5759 = vrot.lane.b32.xlu1 %v6730_v6, %s6242_s23  ;;  %v6808_v6 = vpop.xlane.xlu1 %776  ;;  %v6025_v31 = vpop.eup %6024  ;;  %6044 = vrsqrt.f32 %v636_v13 }
 0x3b0   : > { %v6027_v21 = vpop.eup %6026  ;;  %v577_v57 = vmul.f32 %v6025_v31, %v6377_v30 }
 0x3b1   : > { %v800_v11 = vmul.f32 %v6027_v21, %v6703_v54  ;;  %v6029_v27 = vpop.eup %6028 }
 0x3b2   : > { %v5768_v29 = vpack.i.bf16 %v578_v39, %v577_v57  ;;  %v952_v48 = vmul.f32 %v6029_v27, %v6703_v54  ;;  %v6031_v14 = vpop.eup %6030  ;;  %v785_v39 = vmax.f32 %v6717_v12, 1e-24 }
 0x3b3   : > { %v6814_v5 = vpop.xlane.xlu1 %779  ;;  %v808_v2 = vmul.f32 %v800_v11, %v6399_v32  ;;  %v6033_v46 = vpop.eup %6032  ;;  %v648_v9 = vmul.f32 %v6031_v14, %v6703_v54 }
 0x3b4   : > { %v960_v52 = vmul.f32 %v952_v48, %v6399_v32  ;;  %v650_v41 = vmul.f32 %v6033_v46, %v6703_v54  ;;  %v6035_v63 = vpop.eup %6034  ;;  %v788_v60 = vmax.f32 %v6814_v5, 1e-24 }
 0x3b5   : > { %v656_v50 = vmul.f32 %v648_v9, %v6399_v32  ;;  %v6037_v3 = vpop.eup %6036 }
 0x3b6   : > { %v658_v61 = vmul.f32 %v650_v41, %v6347_v22  ;;  %v802_v31 = vmul.f32 %v6037_v3, %v6703_v54  ;;  %6046 = vrsqrt.f32 %v788_v60 }
 0x3b7   : > { %v6820_v24 = vpop.xlane.xlu1 %928  ;;  %6048 = vrsqrt.f32 %v563_v59 }
 0x3b8   : > { %v810_v17 = vmul.f32 %v802_v31, %v6347_v22  ;;  %v939_v13 = vmax.f32 %v6820_v24, 1e-24 }
 0x3bb   : > { %v932_v15 = vpop.xlane.xlu1 %931 }
 0x3bc   : > { %v940_v5 = vmax.f32 %v932_v15, 1e-24 }
 0x3be   : > { %463 = vadd.xlane.f32.xlu0 %v462_v58 }
 0x3bf   : > { %v5705_v58 = vpop.permute.xlu1 %5704 }
 0x3c5   : > { %v6806_v25 = vpop.xlane.xlu0 %448 }
 0x3c9   : > { %v6810_v23 = vpop.permute.xlu0 %5724 }
 0x3cd   : > { %v5735_v1 = vpop.permute.xlu0 %5734 }
 0x3ce   : > { %v5737_v33 = vunpack.i.h.bf16 %v5735_v1  ;;  %v5736_v56 = vunpack.i.l.bf16 %v5735_v1  ;;  %v6039_v1 = vpop.eup %6038 }
 0x3cf   : > { %v954_v57 = vmul.f32 %v6039_v1, %v6703_v54 }
 0x3d0   : > { %v5483_v20 = vpack.c.bf16 %v5737_v33, %v5736_v56  ;;  %v564_v33 = vmax.f32 %v6714_v0, 1e-24  ;;  %v6041_v56 = vpop.eup %6040 }
 0x3d1   : > { %v5745_v4 = vpop.permute.xlu0 %5744  ;;  %v951_v12 = vmul.f32 %v6041_v56, %v6703_v54 }
 0x3d2   : > { %v5747_v42 = vunpack.i.h.bf16 %v5745_v4  ;;  %v5746_v55 = vunpack.i.l.bf16 %v5745_v4  ;;  %5485 = vmatprep.subr.msk.bf16.mxu1 %vm6770_vm2, %v5483_v20  ;;  %6050 = vrsqrt.f32 %v564_v33 }
 0x3d3   : > { %460 = vadd.xlane.f32.xlu1 %v459_v19  ;;  %5488 = vmatpush3.bf16.xpose.msk.msra.mxu1 %vm6770_vm2, %v5483_v20  ;;  %6052 = vrsqrt.f32 %v785_v39  ;;  %v937_v19 = vmax.f32 %v6725_v18, 1e-24 }
 0x3d4   : > { %v6828_v10 = vpack.c.bf16 %v5747_v42, %v5746_v55  ;;  %5769 = vrot.lane.b32.xlu0 %v5768_v29, %s6242_s23  ;;  %6054 = vrsqrt.f32 %v940_v5  ;;  %v962_v42 = vmul.f32 %v954_v57, %v6347_v22  ;;  %v959_v29 = vmul.f32 %v951_v12, %v6431_v36 }
 0x3d5   : > { %v1046_v37 = vpop.permute.xlu0 %1045  ;;  %6056 = vrsqrt.f32 %v937_v19  ;;  %v6930_v5 = vpack.i.bf16 %v6347_v22, %v6377_v30 }
 0x3d6   : > { %5236 = vmatprep.mubr.msk.f32.mxu1 %vm440_vm1, %v1046_v37  ;;  %5497 = vmatprep.subr.msk.bf16.mxu1 %vm6770_vm2, %v6828_v10 }
 0x3d8   : > { %1075 = vrot.lane.b32.xlu0 %v808_v2, %s6240_s21  ;;  %v635_v2 = vmax.f32 %v6738_v43, 1e-24 }
 0x3da   : > { %6058 = vrsqrt.f32 %v635_v2 }
 0x3dc   : > { %1099 = vrot.lane.b32.xlu0 %v960_v52, %s6241_s22  ;;  %v787_v52 = vmax.f32 %v6808_v6, 1e-24 }
 0x3de   : > { %6060 = vrsqrt.f32 %v787_v52 }
 0x3df   : > { %6062 = vrsqrt.f32 %v939_v13 }
 0x3e0   : > { %5784 = vrot.lane.b32.xlu0 %v6751_v53, %s6242_s23  ;;  %v799_v53 = vmul.f32 %v6035_v63, %v6703_v54  ;;  %v6906_v63 = vpack.i.bf16 %v6337_v16, %v6363_v28 }
 0x3e2   : > { %v6851_v35 = vpop.xlane.xlu1 %451  ;;  %v807_v20 = vmul.f32 %v799_v53, %v6431_v36  ;;  %v6916_v53 = vpack.i.bf16 %v6399_v32, %v6431_v36 }
 0x3e4   : > { %1051 = vrot.lane.b32.xlu1 %v656_v50, %s6243_s25  ;;  %1055 = vrot.lane.b32.xlu0 %v658_v61, %s6243_s25 }
 0x3e6   : > { %v5730_v62 = vpop.permute.xlu1 %5729 }
 0x3e8   : > { %5794 = vrot.lane.b32.xlu0 %v6759_v7, %s6242_s23  ;;  %5774 = vrot.lane.b32.xlu1 %v6745_v47, %s6242_s23  ;;  %v6043_v7 = vpop.eup %6042 }
 0x3e9   : > { %v6045_v55 = vpop.eup %6044  ;;  %v649_v18 = vmul.f32 %v6043_v7, %v6703_v54 }
 0x3ea   : > { %v5740_v21 = vpop.permute.xlu1 %5739  ;;  %v652_v11 = vmul.f32 %v6045_v55, %v6703_v54  ;;  %v6047_v27 = vpop.eup %6046 }
 0x3eb   : > { %v5742_v0 = vunpack.i.h.bf16 %v5740_v21  ;;  %v5741_v4 = vunpack.i.l.bf16 %v5740_v21  ;;  %v6049_v44 = vpop.eup %6048  ;;  %v804_v15 = vmul.f32 %v6047_v27, %v6703_v54  ;;  %v657_v49 = vmul.f32 %v649_v18, %v6377_v30 }
 0x3ec   : > { %1079 = vrot.lane.b32.xlu0 %v810_v17, %s6240_s21  ;;  %1073 = vrot.lane.b32.xlu1 %v807_v20, %s6240_s21  ;;  %v6051_v38 = vpop.eup %6050  ;;  %v660_v48 = vmul.f32 %v652_v11, %v6417_v34  ;;  %v579_v46 = vmul.f32 %v6049_v44, %v6349_v26  ;;  %v6941_v17 = vpack.i.bf16 %v6417_v34, %v6349_v26  ;;  %v467_v20 = vmax.f32 %v6806_v25, 1e-24 }
 0x3ed   : > { %v5489_v47 = vpack.c.bf16 %v5742_v0, %v5741_v4  ;;  %v6053_v37 = vpop.eup %6052  ;;  %v580_v51 = vmul.f32 %v6051_v38, %v6417_v34  ;;  %v812_v43 = vmul.f32 %v804_v15, %v6417_v34  ;;  %v468_v0 = vmax.f32 %v6851_v35, 1e-24 }
 0x3ee   : > { %v6055_v14 = vpop.eup %6054  ;;  %6064 = vrsqrt.f32 %v467_v20 }
 0x3ef   : > { %5491 = vmatprep.subr.msk.bf16.mxu0 %vm6770_vm2, %v5489_v47  ;;  %v956_v9 = vmul.f32 %v6055_v14, %v6703_v54  ;;  %v5788_v41 = vpack.i.bf16 %v580_v51, %v579_v46  ;;  %v6057_v45 = vpop.eup %6056  ;;  %6066 = vrsqrt.f32 %v468_v0 }
 0x3f0   : > { %5494 = vmatpush3.bf16.xpose.msk.msra.mxu0 %vm6770_vm2, %v5489_v47  ;;  %1103 = vrot.lane.b32.xlu0 %v962_v42, %s6241_s22  ;;  %v953_v6 = vmul.f32 %v6057_v45, %v6703_v54  ;;  %v6059_v60 = vpop.eup %6058 }
 0x3f1   : > { %1097 = vrot.lane.b32.xlu1 %v959_v29, %s6241_s22  ;;  %v964_v50 = vmul.f32 %v956_v9, %v6417_v34  ;;  %v651_v59 = vmul.f32 %v6059_v60, %v6703_v54 }
 0x3f2   : > { %v961_v3 = vmul.f32 %v953_v6, %v6377_v30 }
 0x3f3   : > { %v659_v1 = vmul.f32 %v651_v59, %v6349_v26 }
 0x3f4   : > { %5804 = vrot.lane.b32.xlu0 %v5730_v62, %s6242_s23  ;;  %v6061_v62 = vpop.eup %6060 }
 0x3f5   : > { %5779 = vrot.lane.b32.xlu1 %v5705_v58, %s6242_s23  ;;  %v801_v58 = vmul.f32 %v6053_v37, %v6703_v54  ;;  %v803_v33 = vmul.f32 %v6061_v62, %v6703_v54  ;;  %v6063_v56 = vpop.eup %6062 }
 0x3f6   : > { %v955_v21 = vmul.f32 %v6063_v56, %v6703_v54 }
 0x3f7   : > { %v809_v61 = vmul.f32 %v801_v58, %v6377_v30 }
 0x3f8   : > { %1059 = vrot.lane.b32.xlu0 %v660_v48, %s6243_s25  ;;  %v963_v57 = vmul.f32 %v955_v21, %v6349_v26  ;;  %v6065_v7 = vpop.eup %6064 }
 0x3f9   : > { %1053 = vrot.lane.b32.xlu1 %v657_v49, %s6243_s25  ;;  %v487_v55 = vmul.f32 %v6065_v7, %v6703_v54  ;;  %v6067_v18 = vpop.eup %6066 }
 0x3fa   : > { %v488_v37 = vmul.f32 %v6067_v18, %v6703_v54  ;;  %v7032_v18 = vld [vmem:[%s7770_s6] sm:$0xff] }
 0x3fc   : > { %1083 = vrot.lane.b32.xlu0 %v812_v43, %s6240_s21  ;;  %v496_v14 = vmul.f32 %v488_v37, %v6399_v32 }
 0x3fd   : > { %5789 = vrot.lane.b32.xlu1 %v5788_v41, %s6242_s23 }
 0x400   : > { %1107 = vrot.lane.b32.xlu0 %v964_v50, %s6241_s22 }
 0x401   : > { %1077 = vrot.lane.b32.xlu1 %v809_v61, %s6240_s21 }
 0x404   : > { %5814 = vrot.lane.b32.xlu0 %v6906_v63, %s6240_s21 }
 0x405   : > { %1101 = vrot.lane.b32.xlu1 %v961_v3, %s6241_s22 }
 0x406   : > { %v6912_v24 = vpop.xlane.xlu0 %457 }
 0x407   : > { %v470_v50 = vmax.f32 %v6912_v24, 1e-24 }
 0x408   : > { %5824 = vrot.lane.b32.xlu0 %v6916_v53, %s6243_s25 }
 0x409   : > { %5799 = vrot.lane.b32.xlu1 %v6810_v23, %s6242_s23  ;;  %v811_v23 = vmul.f32 %v803_v33, %v6349_v26 }
 0x40a   : > { %v5750_v16 = vpop.permute.xlu0 %5749 }
 0x40b   : > { %v5752_v28 = vunpack.i.h.bf16 %v5750_v16  ;;  %v5751_v31 = vunpack.i.l.bf16 %v5750_v16 }
 0x40c   : > { %5834 = vrot.lane.b32.xlu0 %v6916_v53, %s6241_s22 }
 0x40d   : > { %v5501_v39 = vpack.c.bf16 %v5752_v28, %v5751_v31  ;;  %1057 = vrot.lane.b32.xlu1 %v659_v1, %s6243_s25 }
 0x40e   : > { %v1072_v4 = vpop.permute.xlu0 %1071 }
 0x40f   : > { %5503 = vmatprep.subr.msk.bf16.mxu0 %vm6770_vm2, %v5501_v39 }
 0x410   : > { %5844 = vrot.lane.b32.xlu0 %v6930_v5, %s6240_s21 }
 0x411   : > { %1081 = vrot.lane.b32.xlu1 %v811_v23, %s6240_s21 }
 0x412   : > { %v1096_v47 = vpop.permute.xlu0 %1095 }
 0x414   : > { %5854 = vrot.lane.b32.xlu0 %v6941_v17, %s6243_s25 }
 0x415   : > { %1105 = vrot.lane.b32.xlu1 %v963_v57, %s6241_s22 }
 0x416   : > { %v5765_v29 = vpop.permute.xlu0 %5764 }
 0x417   : > { %v5767_v44 = vunpack.i.h.bf16 %v5765_v29  ;;  %v5766_v38 = vunpack.i.l.bf16 %v5765_v29 }
 0x418   : > { %5864 = vrot.lane.b32.xlu0 %v6941_v17, %s6241_s22 }
 0x419   : > { %5809 = vrot.lane.b32.xlu1 %v6906_v63, %s6243_s25  ;;  %v5519_v48 = vpack.c.bf16 %v5767_v44, %v5766_v38 }
 0x41a   : > { %v1050_v15 = vpop.permute.xlu0 %1049 }
 0x41b   : > { %v455_v12 = vpop.xlane.xlu1 %454 }
 0x41c   : > { %v469_v45 = vmax.f32 %v455_v12, 1e-24 }
 0x41d   : > { %5819 = vrot.lane.b32.xlu1 %v6906_v63, %s6241_s22 }
 0x41e   : > { %6068 = vrsqrt.f32 %v469_v45 }
 0x41f   : > { %v1048_v25 = vpop.permute.xlu1 %1047  ;;  %6070 = vrsqrt.f32 %v470_v50 }
 0x420   : > { %5237 = vmatmul.mubr.msk.f32.vlgmr.msra.gmra.mrb[6].mxu1 %vm440_vm1, %v1048_v25 }
 0x421   : > { %5500 = vmatpush3.bf16.xpose.msk.msra.mxu1 %vm6770_vm2, %v6828_v10  ;;  %5829 = vrot.lane.b32.xlu1 %v6916_v53, %s6240_s21  ;;  %v495_v10 = vmul.f32 %v487_v55, %v6431_v36 }
 0x423   : > { %v5755_v19 = vpop.permute.xlu1 %5754 }
 0x424   : > { %v5757_v35 = vunpack.i.h.bf16 %v5755_v19  ;;  %v5756_v42 = vunpack.i.l.bf16 %v5755_v19  ;;  %v7025_v19 = vld [vmem:[%s7770_s6 + $0x8] sm:$0xff] }
 0x425   : > { %5839 = vrot.lane.b32.xlu1 %v6930_v5, %s6243_s25 }
 0x426   : > { %v5507_v11 = vpack.c.bf16 %v5757_v35, %v5756_v42 }
 0x427   : > { %v1070_v27 = vpop.permute.xlu1 %1069 }
 0x428   : > { %5243 = vmatprep.mubr.msk.f32.mxu0 %vm440_vm1, %v1070_v27  ;;  %5509 = vmatprep.subr.msk.bf16.mxu1 %vm6770_vm2, %v5507_v11  ;;  %v6069_v60 = vpop.eup %6068 }
 0x429   : > { %5849 = vrot.lane.b32.xlu1 %v6930_v5, %s6241_s22  ;;  %5244 = vmatmul.mubr.msk.f32.vlgmr.msra.gmra.mrb[4].mxu0 %vm440_vm1, %v1072_v4  ;;  %v489_v31 = vmul.f32 %v6069_v60, %v6703_v54  ;;  %v6071_v24 = vpop.eup %6070  ;;  %s6245_s22 = smov 8  }
 0x42a   : > { %5506 = vmatpush3.bf16.xpose.msk.msra.mxu0 %vm6770_vm2, %v5501_v39  ;;  %5257 = vmatprep.mubr.msk.f32.mxu0 %vm440_vm1, %v495_v10  ;;  %v490_v57 = vmul.f32 %v6071_v24, %v6703_v54 }
 0x42b   : > { %v1094_v2 = vpop.permute.xlu1 %1093  ;;  %v497_v23 = vmul.f32 %v489_v31, %v6377_v30  ;;  %v7011_v30 = vld [vmem:[%s7769_s5 + $0x8] sm:$0xff] }
 0x42c   : > { %5250 = vmatprep.mubr.msk.f32.mxu1 %vm440_vm1, %v1094_v2  ;;  %v498_v42 = vmul.f32 %v490_v57, %v6347_v22 }
 0x42d   : > { %5859 = vrot.lane.b32.xlu1 %v6941_v17, %s6240_s21  ;;  %5251 = vmatmul.mubr.msk.f32.vlgmr.msra.gmra.mrb[8].mxu1 %vm440_vm1, %v1096_v47  ;;  %v7018_v47 = vld [vmem:[%s7769_s5] sm:$0xff]  ;;  %s6244_s21 = smov 64  }
 0x42e   : > { %5512 = vmatpush3.bf16.xpose.msk.msra.mxu1 %vm6770_vm2, %v5507_v11  ;;  %5264 = vmatprep.mubr.msk.f32.mxu1 %vm440_vm1, %v1050_v15 }
 0x42f   : > { %5521 = vmatprep.subr.msk.bf16.mxu1 %vm6770_vm2, %v5519_v48  ;;  %v5760_v36 = vpop.permute.xlu1 %5759 }
 0x430   : > { %v5762_v49 = vunpack.i.h.bf16 %v5760_v36  ;;  %v5761_v46 = vunpack.i.l.bf16 %v5760_v36 }
 0x431   : > { %5258 = vmatmul.mubr.msk.f32.vlgmr.msra.gmra.mrb[6].mxu0 %vm440_vm1, %v496_v14 }
 0x432   : > { %v5513_v51 = vpack.c.bf16 %v5762_v49, %v5761_v46 }
 0x434   : > { %5515 = vmatprep.subr.msk.bf16.mxu0 %vm6770_vm2, %v5513_v51 }
 0x435   : > { %5518 = vmatpush3.bf16.xpose.msk.msra.mxu0 %vm6770_vm2, %v5513_v51 }
 0x44b   : > { %v464_v52 = vpop.xlane.xlu0 %463 }
 0x44c   : > { %v472_v12 = vmax.f32 %v464_v52, 1e-24 }
 0x44f   : > { %v5770_v43 = vpop.permute.xlu0 %5769 }
 0x450   : > { %v5772_v9 = vunpack.i.h.bf16 %v5770_v43  ;;  %v5771_v41 = vunpack.i.l.bf16 %v5770_v43 }
 0x452   : > { %v5525_v58 = vpack.c.bf16 %v5772_v9, %v5771_v41 }
 0x453   : > { %v1076_v32 = vpop.permute.xlu0 %1075 }
 0x454   : > { %5527 = vmatprep.subr.msk.bf16.mxu0 %vm6770_vm2, %v5525_v58 }
 0x457   : > { %v1100_v13 = vpop.permute.xlu0 %1099 }
 0x45b   : > { %v5785_v6 = vpop.permute.xlu0 %5784 }
 0x45c   : > { %v5787_v21 = vunpack.i.h.bf16 %v5785_v6  ;;  %v5786_v20 = vunpack.i.l.bf16 %v5785_v6 }
 0x45e   : > { %v5543_v4 = vpack.c.bf16 %v5787_v21, %v5786_v20 }
 0x45f   : > { %v1056_v59 = vpop.permute.xlu0 %1055 }
 0x460   : > { %v461_v61 = vpop.xlane.xlu1 %460 }
 0x461   : > { %v471_v33 = vmax.f32 %v461_v61, 1e-24 }
 0x463   : > { %v5795_v39 = vpop.permute.xlu0 %5794  ;;  %6072 = vrsqrt.f32 %v471_v33 }
 0x464   : > { %v1052_v3 = vpop.permute.xlu1 %1051  ;;  %v5797_v10 = vunpack.i.h.bf16 %v5795_v39  ;;  %v5796_v44 = vunpack.i.l.bf16 %v5795_v39  ;;  %6074 = vrsqrt.f32 %v472_v12 }
 0x465   : > { %5265 = vmatmul.mubr.msk.f32.vlgmr.msra.gmra.mrb[10].mxu1 %vm440_vm1, %v1052_v3 }
 0x466   : > { %5524 = vmatpush3.bf16.xpose.msk.msra.mxu1 %vm6770_vm2, %v5519_v48  ;;  %v5555_v49 = vpack.c.bf16 %v5797_v10, %v5796_v44 }
 0x467   : > { %v1080_v25 = vpop.permute.xlu0 %1079 }
 0x468   : > { %v5775_v62 = vpop.permute.xlu1 %5774 }
 0x469   : > { %v5777_v16 = vunpack.i.h.bf16 %v5775_v62  ;;  %v5776_v28 = vunpack.i.l.bf16 %v5775_v62 }
 0x46b   : > { %v5531_v1 = vpack.c.bf16 %v5777_v16, %v5776_v28  ;;  %v1104_v15 = vpop.permute.xlu0 %1103 }
 0x46c   : > { %v1074_v56 = vpop.permute.xlu1 %1073 }
 0x46d   : > { %5271 = vmatprep.mubr.msk.f32.mxu0 %vm440_vm1, %v1074_v56  ;;  %5533 = vmatprep.subr.msk.bf16.mxu1 %vm6770_vm2, %v5531_v1  ;;  %v6073_v14 = vpop.eup %6072 }
 0x46e   : > { %5272 = vmatmul.mubr.msk.f32.vlgmr.msra.gmra.mrb[8].mxu0 %vm440_vm1, %v1076_v32  ;;  %v491_v9 = vmul.f32 %v6073_v14, %v6703_v54  ;;  %v6075_v45 = vpop.eup %6074 }
 0x46f   : > { %5530 = vmatpush3.bf16.xpose.msk.msra.mxu0 %vm6770_vm2, %v5525_v58  ;;  %5285 = vmatprep.mubr.msk.f32.mxu0 %vm440_vm1, %v497_v23  ;;  %v5805_v41 = vpop.permute.xlu0 %5804  ;;  %v492_v6 = vmul.f32 %v6075_v45, %v6703_v54  ;;  %v7098_v23 = vld [vmem:[%s7769_s5 + $0x10] sm:$0xff] }
 0x470   : > { %v1098_v0 = vpop.permute.xlu1 %1097  ;;  %v5807_v50 = vunpack.i.h.bf16 %v5805_v41  ;;  %v5806_v61 = vunpack.i.l.bf16 %v5805_v41 }
 0x471   : > { %5278 = vmatprep.mubr.msk.f32.mxu1 %vm440_vm1, %v1098_v0 }
 0x472   : > { %5279 = vmatmul.mubr.msk.f32.vlgmr.msra.gmra.mrb[12].mxu1 %vm440_vm1, %v1100_v13  ;;  %v499_v13 = vmul.f32 %v491_v9, %v6349_v26  ;;  %v5567_v60 = vpack.c.bf16 %v5807_v50, %v5806_v61  ;;  %v2687_v61 = vld [vmem:[%s7770_s6 + $0x10] sm:$0xff] }
 0x473   : > { %5536 = vmatpush3.bf16.xpose.msk.msra.mxu1 %vm6770_vm2, %v5531_v1  ;;  %v1060_v62 = vpop.permute.xlu0 %1059 }
 0x474   : > { %5545 = vmatprep.subr.msk.bf16.mxu1 %vm6770_vm2, %v5543_v4  ;;  %v5231_v7 = vpop.f32.mrb[4].mxu1  ;;  %v5780_v35 = vpop.permute.xlu1 %5779 }
 0x475   : > { %v2654_v55 = vadd.f32 %v5231_v7, %v7011_v30  ;;  %v5782_v29 = vunpack.i.h.bf16 %v5780_v35  ;;  %v5781_v11 = vunpack.i.l.bf16 %v5780_v35  ;;  %v1319_v27 = vpop.f32.mrb[5].mxu1 }
 0x476   : > { %v2653_v38 = vadd.f32 %v7018_v47, %v1319_v27  ;;  %5286 = vmatmul.mubr.msk.f32.vlgmr.msra.gmra.mrb[10].mxu0 %vm440_vm1, %v498_v42 }
 0x477   : > { %v7037_v22 = vadd.f32 %v7025_v19, %v2654_v55  ;;  %v5537_v37 = vpack.c.bf16 %v5782_v29, %v5781_v11  ;;  %v1084_v1 = vpop.permute.xlu0 %1083  ;;  %v7119_v55 = vld [vmem:[%s7769_s5 + $0x28] sm:$0xff]  ;;  %v7124_v29 = vld [vmem:[%s7769_s5 + $0x20] sm:$0xff] }
 0x478   : > { %v7040_v2 = vadd.f32 %v7032_v18, %v2653_v38  ;;  %v1054_v48 = vpop.permute.xlu1 %1053  ;;  %v7131_v38 = vld [vmem:[%s7769_s5 + $0x38] sm:$0xff] }
 0x479   : > { %5292 = vmatprep.mubr.msk.f32.mxu1 %vm440_vm1, %v1054_v48  ;;  %5539 = vmatprep.subr.msk.bf16.mxu0 %vm6770_vm2, %v5537_v37  ;;  %v2729_v36 = vsel %vm2725_vm3, %v7037_v22, -inf }
 0x47a   : > { %2730 = vmax.xlane.f32.xlu0 %v2729_v36  ;;  %5293 = vmatmul.mubr.msk.f32.vlgmr.msra.gmra.mrb[14].mxu1 %vm440_vm1, %v1056_v59  ;;  %v2726_v46 = vsel %vm2725_vm3, %v7040_v2, -inf  ;;  %v500_v59 = vmul.f32 %v492_v6, %v6417_v34 }
 0x47b   : > { %5542 = vmatpush3.bf16.xpose.msk.msra.mxu0 %vm6770_vm2, %v5537_v37  ;;  %5548 = vmatpush3.bf16.xpose.msk.msra.mxu1 %vm6770_vm2, %v5543_v4  ;;  %v1108_v56 = vpop.permute.xlu0 %1107 }
 0x47c   : > { %2727 = vmax.xlane.f32.xlu1 %v2726_v46  ;;  %5557 = vmatprep.subr.msk.bf16.mxu1 %vm6770_vm2, %v5555_v49  ;;  %v5790_v51 = vpop.permute.xlu1 %5789 }
 0x47d   : > { %v5792_v52 = vunpack.i.h.bf16 %v5790_v51  ;;  %v5791_v43 = vunpack.i.l.bf16 %v5790_v51 }
 0x47f   : > { %v5549_v58 = vpack.c.bf16 %v5792_v52, %v5791_v43 }
 0x480   : > { %v1078_v32 = vpop.permute.xlu1 %1077 }
 0x481   : > { %5299 = vmatprep.mubr.msk.f32.mxu0 %vm440_vm1, %v1078_v32  ;;  %5551 = vmatprep.subr.msk.bf16.mxu0 %vm6770_vm2, %v5549_v58  ;;  %v2688_v32 = vld [vmem:[%s7770_s6 + $0x18] sm:$0xff] }
 0x482   : > { %5300 = vmatmul.mubr.msk.f32.vlgmr.msra.gmra.mrb[12].mxu0 %vm440_vm1, %v1080_v25 }
 0x483   : > { %5554 = vmatpush3.bf16.xpose.msk.msra.mxu0 %vm6770_vm2, %v5549_v58  ;;  %5313 = vmatprep.mubr.msk.f32.mxu0 %vm440_vm1, %v499_v13 }
 0x484   : > { %v1102_v3 = vpop.permute.xlu1 %1101 }
 0x485   : > { %5306 = vmatprep.mubr.msk.f32.mxu1 %vm440_vm1, %v1102_v3 }
 0x486   : > { %5307 = vmatmul.mubr.msk.f32.vlgmr.msra.gmra.mrb[16].mxu1 %vm440_vm1, %v1104_v15  ;;  %v7141_v15 = vld [vmem:[%s7769_s5 + $0x30] sm:$0xff] }
 0x487   : > { %5560 = vmatpush3.bf16.xpose.msk.msra.mxu1 %vm6770_vm2, %v5555_v49 }
 0x488   : > { %5569 = vmatprep.subr.msk.bf16.mxu1 %vm6770_vm2, %v5567_v60  ;;  %v5800_v26 = vpop.permute.xlu1 %5799 }
 0x489   : > { %v5802_v16 = vunpack.i.h.bf16 %v5800_v26  ;;  %v5801_v28 = vunpack.i.l.bf16 %v5800_v26 }
 0x48a   : > { %5314 = vmatmul.mubr.msk.f32.vlgmr.msra.gmra.mrb[14].mxu0 %vm440_vm1, %v500_v59 }
 0x48b   : > { %v5561_v54 = vpack.c.bf16 %v5802_v16, %v5801_v28 }
 0x48c   : > { %v1058_v31 = vpop.permute.xlu1 %1057 }
 0x48d   : > { %5320 = vmatprep.mubr.msk.f32.mxu1 %vm440_vm1, %v1058_v31  ;;  %5563 = vmatprep.subr.msk.bf16.mxu0 %vm6770_vm2, %v5561_v54 }
 0x48e   : > { %5321 = vmatmul.mubr.msk.f32.vlgmr.msra.gmra.mrb[18].mxu1 %vm440_vm1, %v1060_v62  ;;  %5566 = vmatpush3.bf16.xpose.msk.msra.mxu0 %vm6770_vm2, %v5561_v54 }
 0x48f   : > { %5572 = vmatpush3.bf16.xpose.msk.msra.mxu1 %vm6770_vm2, %v5567_v60 }
 0x490   : > { %v1082_v34 = vpop.permute.xlu1 %1081 }
 0x491   : > { %5327 = vmatprep.mubr.msk.f32.mxu0 %vm440_vm1, %v1082_v34 }
 0x494   : > { %v1106_v33 = vpop.permute.xlu1 %1105 }
 0x495   : > { %5328 = vmatmul.mubr.msk.f32.vlgmr.msra.gmra.mrb[16].mxu0 %vm440_vm1, %v1084_v1  ;;  %5334 = vmatprep.mubr.msk.f32.mxu1 %vm440_vm1, %v1106_v33 }
 0x496   : > { %5335 = vmatmul.mubr.msk.f32.vlgmr.msra.gmra.mrb[20].mxu1 %vm440_vm1, %v1108_v56 }
 0x498   : > { %v7086_v24 = vpop.permute.xlu1 %5809 }
 0x49c   : > { %v7088_v39 = vpop.permute.xlu1 %5819 }
 0x4a0   : > { %v7100_v21 = vpop.permute.xlu1 %5829 }
 0x4a4   : > { %v7112_v35 = vpop.permute.xlu1 %5839 }
 0x4a8   : > { %v7133_v37 = vpop.permute.xlu1 %5849 }
 0x4ac   : > { %v7161_v45 = vpop.permute.xlu1 %5859 }
 0x4f3   : > { %v5238_v20 = vpop.f32.mrb[6].mxu1 }
 0x4f4   : > { %v2656_v57 = vadd.f32 %v5238_v20, %v7093_v40  ;;  %v1406_v0 = vpop.f32.mrb[7].mxu1 }
 0x4f5   : > { %v2655_v4 = vadd.f32 %v7098_v23, %v1406_v0 }
 0x4f6   : > { %v7105_v12 = vadd.f32 %v7025_v19, %v2656_v57 }
 0x4f7   : > { %v7108_v25 = vadd.f32 %v7032_v18, %v2655_v4 }
 0x4f8   : > { %v2735_v7 = vsel %vm2725_vm3, %v7105_v12, -inf }
 0x4f9   : > { %2736 = vmax.xlane.f32.xlu1 %v2735_v7  ;;  %v2732_v42 = vsel %vm2725_vm3, %v7108_v25, -inf }
 0x4fa   : > { %2733 = vmax.xlane.f32.xlu0 %v2732_v42 }
 0x4fc   : > { %v5245_v11 = vpop.f32.mrb[4].mxu0 }
 0x4fd   : > { %v2658_v27 = vadd.f32 %v5245_v11, %v7119_v55  ;;  %v1493_v10 = vpop.f32.mrb[5].mxu0 }
 0x4fe   : > { %v2657_v44 = vadd.f32 %v7124_v29, %v1493_v10 }
 0x4ff   : > { %v7136_v48 = vadd.f32 %v7025_v19, %v2658_v27 }
 0x500   : > { %v7144_v36 = vadd.f32 %v7032_v18, %v2657_v44  ;;  %v5252_v14 = vpop.f32.mrb[8].mxu1 }
 0x501   : > { %v2660_v49 = vadd.f32 %v5252_v14, %v7131_v38  ;;  %v1580_v46 = vpop.f32.mrb[9].mxu1  ;;  %v2741_v51 = vsel %vm2725_vm3, %v7136_v48, -inf }
 0x502   : > { %v2659_v52 = vadd.f32 %v7141_v15, %v1580_v46  ;;  %2742 = vmax.xlane.f32.xlu1 %v2741_v51  ;;  %v2738_v43 = vsel %vm2725_vm3, %v7144_v36, -inf }
 0x503   : > { %v7153_v9 = vadd.f32 %v7025_v19, %v2660_v49  ;;  %2739 = vmax.xlane.f32.xlu0 %v2738_v43 }
 0x504   : > { %v7156_v41 = vadd.f32 %v7032_v18, %v2659_v52  ;;  %v5259_v58 = vpop.f32.mrb[6].mxu0 }
 0x505   : > { %v2662_v13 = vadd.f32 %v5259_v58, %v7011_v30  ;;  %v1671_v50 = vpop.f32.mrb[7].mxu0  ;;  %v2747_v19 = vsel %vm2725_vm3, %v7153_v9, -inf }
 0x506   : > { %v2661_v18 = vadd.f32 %v7018_v47, %v1671_v50  ;;  %2748 = vmax.xlane.f32.xlu1 %v2747_v19  ;;  %v2744_v6 = vsel %vm2725_vm3, %v7156_v41, -inf }
 0x507   : > { %v7172_v3 = vadd.f32 %v2688_v32, %v2662_v13  ;;  %2745 = vmax.xlane.f32.xlu0 %v2744_v6  ;;  %v2690_v13 = vld [vmem:[%s7770_s6 + $0x28] sm:$0xff] }
 0x508   : > { %v7174_v60 = vadd.f32 %v2687_v61, %v2661_v18  ;;  %v2689_v18 = vld [vmem:[%s7770_s6 + $0x20] sm:$0xff] }
 0x509   : > { %v2728_v26 = vpop.xlane.xlu1 %2727  ;;  %v2753_v59 = vsel %vm2725_vm3, %v7172_v3, -inf }
 0x50a   : > { %v2822_v62 = vsub.f32 %v7040_v2, %v2728_v26  ;;  %2754 = vmax.xlane.f32.xlu1 %v2753_v59  ;;  %v2750_v16 = vsel %vm2725_vm3, %v7174_v60, -inf }
 0x50b   : > { %2751 = vmax.xlane.f32.xlu0 %v2750_v16 }
 0x50c   : > { %v2854_v28 = vmul.f32 1.442695, %v2822_v62 }
 0x50e   : > { %6076 = vpow2.f32 %v2854_v28 }
 0x518   : > { %v7181_v54 = vpop.eup %6076 }
 0x519   : > { %5341 = vmatprep.mubr.msk.f32.mxu0 %vm2725_vm3, %v7181_v54 }
 0x538   : > { %v5266_v31 = vpop.f32.mrb[10].mxu1 }
 0x539   : > { %v2664_v1 = vadd.f32 %v5266_v31, %v7093_v40  ;;  %v1758_v34 = vpop.f32.mrb[11].mxu1 }
 0x53a   : > { %v2663_v33 = vadd.f32 %v7098_v23, %v1758_v34 }
 0x53b   : > { %v7187_v56 = vadd.f32 %v2688_v32, %v2664_v1 }
 0x53c   : > { %v7189_v2 = vadd.f32 %v2687_v61, %v2663_v33 }
 0x53d   : > { %v2759_v20 = vsel %vm2725_vm3, %v7187_v56, -inf }
 0x53e   : > { %2760 = vmax.xlane.f32.xlu1 %v2759_v20  ;;  %v2756_v57 = vsel %vm2725_vm3, %v7189_v2, -inf }
 0x53f   : > { %2757 = vmax.xlane.f32.xlu0 %v2756_v57 }
 0x541   : > { %v5273_v0 = vpop.f32.mrb[8].mxu0 }
 0x542   : > { %v2666_v4 = vadd.f32 %v5273_v0, %v7119_v55  ;;  %v1845_v7 = vpop.f32.mrb[9].mxu0 }
 0x543   : > { %v2665_v42 = vadd.f32 %v7124_v29, %v1845_v7 }
 0x544   : > { %v7197_v11 = vadd.f32 %v2688_v32, %v2666_v4 }
 0x545   : > { %v7199_v27 = vadd.f32 %v2687_v61, %v2665_v42  ;;  %v5280_v10 = vpop.f32.mrb[12].mxu1 }
 0x546   : > { %v2668_v44 = vadd.f32 %v5280_v10, %v7131_v38  ;;  %v1932_v14 = vpop.f32.mrb[13].mxu1  ;;  %v2765_v49 = vsel %vm2725_vm3, %v7197_v11, -inf }
 0x547   : > { %v2667_v46 = vadd.f32 %v7141_v15, %v1932_v14  ;;  %2766 = vmax.xlane.f32.xlu1 %v2765_v49  ;;  %v2762_v51 = vsel %vm2725_vm3, %v7199_v27, -inf }
 0x548   : > { %v7207_v52 = vadd.f32 %v2688_v32, %v2668_v44  ;;  %2763 = vmax.xlane.f32.xlu0 %v2762_v51 }
 0x549   : > { %v7209_v43 = vadd.f32 %v2687_v61, %v2667_v46  ;;  %v5287_v58 = vpop.f32.mrb[10].mxu0 }
 0x54a   : > { %v2670_v50 = vadd.f32 %v5287_v58, %v7011_v30  ;;  %v2023_v19 = vpop.f32.mrb[11].mxu0  ;;  %v2771_v6 = vsel %vm2725_vm3, %v7207_v52, -inf }
 0x54b   : > { %v2669_v32 = vadd.f32 %v7018_v47, %v2023_v19  ;;  %2772 = vmax.xlane.f32.xlu1 %v2771_v6  ;;  %v2768_v61 = vsel %vm2725_vm3, %v7209_v43, -inf }
 0x54c   : > { %v7223_v26 = vadd.f32 %v2690_v13, %v2670_v50  ;;  %2769 = vmax.xlane.f32.xlu0 %v2768_v61 }
 0x54d   : > { %v7225_v59 = vadd.f32 %v2689_v18, %v2669_v32  ;;  %v5294_v62 = vpop.f32.mrb[14].mxu1 }
 0x54e   : > { %v2672_v16 = vadd.f32 %v5294_v62, %v7093_v40  ;;  %v2110_v28 = vpop.f32.mrb[15].mxu1  ;;  %v2777_v31 = vsel %vm2725_vm3, %v7223_v26, -inf }
 0x54f   : > { %v2671_v1 = vadd.f32 %v7098_v23, %v2110_v28  ;;  %2778 = vmax.xlane.f32.xlu1 %v2777_v31  ;;  %v2774_v34 = vsel %vm2725_vm3, %v7225_v59, -inf }
 0x550   : > { %v7233_v33 = vadd.f32 %v2690_v13, %v2672_v16  ;;  %2775 = vmax.xlane.f32.xlu0 %v2774_v34  ;;  %v2691_v16 = vld [vmem:[%s7770_s6 + $0x30] sm:$0xff]  ;;  %v5815_v34 = vpop.permute.xlu0 %5814 }
 0x551   : > { %v7235_v20 = vadd.f32 %v2689_v18, %v2671_v1 }
 0x552   : > { %v2783_v57 = vsel %vm2725_vm3, %v7233_v33, -inf }
 0x553   : > { %2784 = vmax.xlane.f32.xlu1 %v2783_v57  ;;  %v2780_v0 = vsel %vm2725_vm3, %v7235_v20, -inf }
 0x554   : > { %2781 = vmax.xlane.f32.xlu0 %v2780_v0 }
 0x555   : > { %v5301_v4 = vpop.f32.mrb[12].mxu0 }
 0x556   : > { %v2674_v7 = vadd.f32 %v5301_v4, %v7119_v55  ;;  %v2197_v42 = vpop.f32.mrb[13].mxu0 }
 0x557   : > { %v2673_v10 = vadd.f32 %v7124_v29, %v2197_v42  ;;  %v5825_v42 = vpop.permute.xlu0 %5824 }
 0x558   : > { %v7243_v44 = vadd.f32 %v2690_v13, %v2674_v7 }
 0x559   : > { %v7245_v14 = vadd.f32 %v2689_v18, %v2673_v10  ;;  %v5308_v49 = vpop.f32.mrb[16].mxu1 }
 0x55a   : > { %v2676_v46 = vadd.f32 %v5308_v49, %v7131_v38  ;;  %v2284_v51 = vpop.f32.mrb[17].mxu1  ;;  %v2789_v58 = vsel %vm2725_vm3, %v7243_v44, -inf }
 0x55b   : > { %v2675_v50 = vadd.f32 %v7141_v15, %v2284_v51  ;;  %2790 = vmax.xlane.f32.xlu1 %v2789_v58  ;;  %v2786_v19 = vsel %vm2725_vm3, %v7245_v14, -inf }
 0x55c   : > { %v7253_v6 = vadd.f32 %v2690_v13, %v2676_v46  ;;  %2787 = vmax.xlane.f32.xlu0 %v2786_v19 }
 0x55d   : > { %v7255_v32 = vadd.f32 %v2689_v18, %v2675_v50  ;;  %v5315_v61 = vpop.f32.mrb[14].mxu0  ;;  %v2692_v18 = vld [vmem:[%s7770_s6 + $0x38] sm:$0xff] }
 0x55e   : > { %v2375_v62 = vpop.f32.mrb[15].mxu0  ;;  %v2795_v28 = vsel %vm2725_vm3, %v7253_v6, -inf  ;;  %v2678_v31 = vadd.f32 %v5315_v61, %v7011_v30 }
 0x55f   : > { %v2677_v1 = vadd.f32 %v7018_v47, %v2375_v62  ;;  %2796 = vmax.xlane.f32.xlu1 %v2795_v28  ;;  %v2792_v13 = vsel %vm2725_vm3, %v7255_v32, -inf  ;;  %v5835_v28 = vpop.permute.xlu0 %5834 }
 0x560   : > { %2793 = vmax.xlane.f32.xlu0 %v2792_v13  ;;  %v7271_v7 = vadd.f32 %v2692_v18, %v2678_v31 }
 0x561   : > { %v7269_v57 = vadd.f32 %v2691_v16, %v2677_v1  ;;  %v5322_v0 = vpop.f32.mrb[18].mxu1 }
 0x562   : > { %v2462_v4 = vpop.f32.mrb[19].mxu1  ;;  %v2801_v49 = vsel %vm2725_vm3, %v7271_v7, -inf }
 0x563   : > { %v2679_v30 = vadd.f32 %v7098_v23, %v2462_v4  ;;  %v2798_v47 = vsel %vm2725_vm3, %v7269_v57, -inf  ;;  %v5845_v1 = vpop.permute.xlu0 %5844 }
 0x564   : > { %2799 = vmax.xlane.f32.xlu0 %v2798_v47 }
 0x565   : > { %v7276_v10 = vadd.f32 %v2691_v16, %v2679_v30 }
 0x567   : > { %v2804_v23 = vsel %vm2725_vm3, %v7276_v10, -inf  ;;  %v5855_v13 = vpop.permute.xlu0 %5854 }
 0x568   : > { %v5329_v46 = vpop.f32.mrb[16].mxu0  ;;  %2802 = vmax.xlane.f32.xlu0 %v2801_v49  ;;  %v2680_v49 = vadd.f32 %v5322_v0, %v7093_v40 }
 0x569   : > { %v2549_v51 = vpop.f32.mrb[17].mxu0  ;;  %v5336_v58 = vpop.f32.mrb[20].mxu1 }
 0x56a   : > { %v2684_v50 = vadd.f32 %v5336_v58, %v7131_v38  ;;  %v2636_v19 = vpop.f32.mrb[21].mxu1  ;;  %v7296_v58 = vadd.f32 %v2692_v18, %v2680_v49 }
 0x56b   : > { %v2683_v61 = vadd.f32 %v7141_v15, %v2636_v19  ;;  %v5865_v4 = vpop.permute.xlu0 %5864  ;;  %v2682_v19 = vadd.f32 %v5329_v46, %v7119_v55 }
 0x56c   : > { %v7284_v62 = vadd.f32 %v2692_v18, %v2684_v50  ;;  %2805 = vmax.xlane.f32.xlu0 %v2804_v23 }
 0x56d   : > { %v7286_v31 = vadd.f32 %v2691_v16, %v2683_v61  ;;  %v7308_v61 = vadd.f32 %v2692_v18, %v2682_v19 }
 0x56e   : > { %v2819_v55 = vsel %vm2725_vm3, %v7284_v62, -inf }
 0x56f   : > { %v7292_v38 = vpop.xlane.xlu0 %2730  ;;  %v2813_v0 = vsel %vm2725_vm3, %v7308_v61, -inf  ;;  %v2816_v23 = vsel %vm2725_vm3, %v7286_v31, -inf }
 0x570   : > { %5869 = vrot.lane.b32.xlu1 %v6906_v63, %s6244_s21  ;;  %v2807_v63 = vsel %vm2725_vm3, %v7296_v58, -inf }
 0x582   : > { %5874 = vrot.lane.b32.xlu0 %v7086_v24, %s6244_s21  ;;  %v2681_v24 = vadd.f32 %v7124_v29, %v2549_v51 }
 0x586   : > { %v2737_v29 = vpop.xlane.xlu1 %2736 }
 0x587   : > { %v2734_v15 = vpop.xlane.xlu0 %2733  ;;  %v2825_v46 = vsub.f32 %v7105_v12, %v2737_v29 }
 0x588   : > { %v2824_v30 = vsub.f32 %v7108_v25, %v2734_v15  ;;  %v7306_v25 = vadd.f32 %v2691_v16, %v2681_v24 }
 0x58a   : > { %v2858_v47 = vmul.f32 1.442695, %v2824_v30  ;;  %v2810_v40 = vsel %vm2725_vm3, %v7306_v25, -inf }
 0x58c   : > { %6078 = vpow2.f32 %v2858_v47 }
 0x590   : > { %v2740_v16 = vpop.xlane.xlu0 %2739 }
 0x594   : > { %2808 = vmax.xlane.f32.xlu1 %v2807_v63 }
 0x596   : > { %v7300_v50 = vpop.eup %6078 }
 0x597   : > { %5348 = vmatprep.mubr.msk.f32.mxu1 %vm2725_vm3, %v7300_v50 }
 0x5a1   : > { %2811 = vmax.xlane.f32.xlu0 %v2810_v40  ;;  %v2823_v40 = vsub.f32 %v7037_v22, %v7292_v38 }
 0x5a5   : > { %5879 = vrot.lane.b32.xlu1 %v5815_v34, %s6244_s21  ;;  %2814 = vmax.xlane.f32.xlu0 %v2813_v0 }
 0x5a9   : > { %5884 = vrot.lane.b32.xlu1 %v7088_v39, %s6244_s21  ;;  %2817 = vmax.xlane.f32.xlu0 %v2816_v23  ;;  %v2743_v39 = vpop.xlane.xlu1 %2742 }
 0x5ad   : > { %5889 = vrot.lane.b32.xlu1 %v6916_v53, %s6244_s21  ;;  %2820 = vmax.xlane.f32.xlu0 %v2819_v55  ;;  %v2749_v53 = vpop.xlane.xlu1 %2748 }
 0x5ae   : > { %v2829_v30 = vsub.f32 %v7153_v9, %v2749_v53 }
 0x5b0   : > { %v2868_v12 = vmul.f32 1.442695, %v2829_v30 }
 0x5b1   : > { %5899 = vrot.lane.b32.xlu1 %v7100_v21, %s6244_s21  ;;  %v2746_v21 = vpop.xlane.xlu0 %2745 }
 0x5b2   : > { %v2828_v49 = vsub.f32 %v7156_v41, %v2746_v21 }
 0x5b5   : > { %5904 = vrot.lane.b32.xlu1 %v5835_v28, %s6244_s21 }
 0x5b9   : > { %5909 = vrot.lane.b32.xlu1 %v6930_v5, %s6244_s21  ;;  %v7339_v5 = vpop.xlane.xlu1 %2754 }
 0x5bd   : > { %5914 = vrot.lane.b32.xlu1 %v7112_v35, %s6244_s21  ;;  %v7341_v35 = vpop.xlane.xlu0 %2751 }
 0x5c1   : > { %5919 = vrot.lane.b32.xlu1 %v5845_v1, %s6244_s21  ;;  %v2860_v1 = vmul.f32 1.442695, %v2825_v46 }
 0x5c3   : > { %5894 = vrot.lane.b32.xlu0 %v5825_v42, %s6244_s21  ;;  %6080 = vpow2.f32 %v2860_v1 }
 0x5c5   : > { %5929 = vrot.lane.b32.xlu1 %v6941_v17, %s6244_s21 }
 0x5c7   : > { %5924 = vrot.lane.b32.xlu0 %v7133_v37, %s6244_s21  ;;  %v2827_v37 = vsub.f32 %v7136_v48, %v2743_v39  ;;  %v2866_v48 = vmul.f32 1.442695, %v2828_v49  ;;  %v2856_v39 = vmul.f32 1.442695, %v2823_v40 }
 0x5c9   : > { %5939 = vrot.lane.b32.xlu1 %v7161_v45, %s6244_s21  ;;  %v2826_v45 = vsub.f32 %v7144_v36, %v2740_v16  ;;  %v2864_v15 = vmul.f32 1.442695, %v2827_v37 }
 0x5cb   : > { %5934 = vrot.lane.b32.xlu0 %v5855_v13, %s6244_s21  ;;  %v2761_v18 = vpop.xlane.xlu1 %2760  ;;  %6082 = vpow2.f32 %v2864_v15 }
 0x5cc   : > { %v2758_v34 = vpop.xlane.xlu0 %2757  ;;  %v2833_v63 = vsub.f32 %v7187_v56, %v2761_v18 }
 0x5cd   : > { %v2832_v24 = vsub.f32 %v7189_v2, %v2758_v34  ;;  %v7359_v56 = vpop.eup %6080 }
 0x5ce   : > { %v2876_v9 = vmul.f32 1.442695, %v2833_v63  ;;  %v2927_v18 = vsel %vm2725_vm3, %v7359_v56, 0.0 }
 0x5cf   : > { %5944 = vrot.lane.b32.xlu0 %v5865_v4, %s6244_s21  ;;  %v2862_v4 = vmul.f32 1.442695, %v2826_v45  ;;  %v2874_v23 = vmul.f32 1.442695, %v2832_v24 }
 0x5d1   : > { %6084 = vpow2.f32 %v2862_v4 }
 0x5d2   : > { %6086 = vpow2.f32 %v2868_v12 }
 0x5d3   : > { %6088 = vpow2.f32 %v2866_v48 }
 0x5d4   : > { %v2767_v42 = vpop.xlane.xlu1 %2766  ;;  %6090 = vpow2.f32 %v2876_v9 }
 0x5d5   : > { %v2764_v17 = vpop.xlane.xlu0 %2763  ;;  %v2835_v0 = vsub.f32 %v7197_v11, %v2767_v42  ;;  %6092 = vpow2.f32 %v2874_v23  ;;  %v2924_v11 = vsel %vm2725_vm3, %v7300_v50, 0.0  ;;  %v7365_v21 = vpop.eup %6082 }
 0x5d6   : > { %v2834_v41 = vsub.f32 %v7199_v27, %v2764_v17  ;;  %6094 = vpow2.f32 %v2856_v39  ;;  %v2933_v50 = vsel %vm2725_vm3, %v7365_v21, 0.0 }
 0x5d7   : > { %v2880_v2 = vmul.f32 1.442695, %v2835_v0 }
 0x5d8   : > { %v2773_v51 = vpop.xlane.xlu1 %2772  ;;  %v2878_v53 = vmul.f32 1.442695, %v2834_v41 }
 0x5d9   : > { %v2770_v28 = vpop.xlane.xlu0 %2769  ;;  %v2837_v16 = vsub.f32 %v7207_v52, %v2773_v51  ;;  %6096 = vpow2.f32 %v2880_v2 }
 0x5da   : > { %v2836_v22 = vsub.f32 %v7209_v43, %v2770_v28  ;;  %6098 = vpow2.f32 %v2878_v53 }
 0x5db   : > { %v6085_v34 = vpop.eup %6084  ;;  %v2884_v52 = vmul.f32 1.442695, %v2837_v16 }
 0x5dc   : > { %v7347_v13 = vpop.xlane.xlu1 %2778  ;;  %v2882_v43 = vmul.f32 1.442695, %v2836_v22  ;;  %v7373_v51 = vpop.eup %6086  ;;  %v2930_v45 = vsel %vm2725_vm3, %v6085_v34, 0.0 }
 0x5dd   : > { %v7350_v47 = vpop.xlane.xlu0 %2775  ;;  %v7378_v15 = vpop.eup %6088  ;;  %6100 = vpow2.f32 %v2884_v52  ;;  %v2939_v12 = vsel %vm2725_vm3, %v7373_v51, 0.0 }
 0x5de   : > { %6102 = vpow2.f32 %v2882_v43  ;;  %v7384_v63 = vpop.eup %6090  ;;  %v2936_v24 = vsel %vm2725_vm3, %v7378_v15, 0.0 }
 0x5df   : > { %v2951_v0 = vsel %vm2725_vm3, %v7384_v63, 0.0 }
 0x5e0   : > { %v2785_v36 = vpop.xlane.xlu1 %2784 }
 0x5e1   : > { %v2782_v19 = vpop.xlane.xlu0 %2781  ;;  %v2841_v42 = vsub.f32 %v7233_v33, %v2785_v36  ;;  %v7390_v36 = vpop.eup %6092 }
 0x5e2   : > { %v2840_v17 = vsub.f32 %v7235_v20, %v2782_v19  ;;  %v7393_v19 = vpop.eup %6094 }
 0x5e3   : > { %v2892_v33 = vmul.f32 1.442695, %v2841_v42  ;;  %v7398_v23 = vpop.eup %6096 }
 0x5e4   : > { %v2890_v4 = vmul.f32 1.442695, %v2840_v17  ;;  %v2957_v2 = vsel %vm2725_vm3, %v7398_v23, 0.0 }
 0x5e5   : > { %6104 = vpow2.f32 %v2892_v33 }
 0x5e6   : > { %6106 = vpow2.f32 %v2890_v4 }
 0x5e8   : > { %v2791_v55 = vpop.xlane.xlu1 %2790 }
 0x5e9   : > { %v2788_v29 = vpop.xlane.xlu0 %2787  ;;  %v2843_v20 = vsub.f32 %v7243_v44, %v2791_v55  ;;  %v2948_v55 = vsel %vm2725_vm3, %v7390_v36, 0.0 }
 0x5ea   : > { %v2842_v49 = vsub.f32 %v7245_v14, %v2788_v29 }
 0x5eb   : > { %v2896_v44 = vmul.f32 1.442695, %v2843_v20 }
 0x5ec   : > { %v2797_v38 = vpop.xlane.xlu1 %2796  ;;  %v2894_v40 = vmul.f32 1.442695, %v2842_v49  ;;  %v2830_v49 = vsub.f32 %v7174_v60, %v7341_v35 }
 0x5ed   : > { %v2794_v27 = vpop.xlane.xlu0 %2793  ;;  %2925 = vadd.xlane.f32.xlu1 %v2924_v11  ;;  %v2845_v14 = vsub.f32 %v7253_v6, %v2797_v38  ;;  %v7404_v6 = vpop.eup %6098  ;;  %6108 = vpow2.f32 %v2896_v44 }
 0x5ee   : > { %2928 = vadd.xlane.f32.xlu0 %v2927_v18  ;;  %v2844_v9 = vsub.f32 %v7255_v32, %v2794_v27  ;;  %6110 = vpow2.f32 %v2894_v40  ;;  %v7410_v16 = vpop.eup %6100  ;;  %v2954_v22 = vsel %vm2725_vm3, %v7404_v6, 0.0 }
 0x5ef   : > { %v2900_v32 = vmul.f32 1.442695, %v2845_v14  ;;  %v7414_v38 = vpop.eup %6102  ;;  %v2831_v14 = vsub.f32 %v7172_v3, %v7339_v5 }
 0x5f0   : > { %v5870_v46 = vpop.permute.xlu1 %5869  ;;  %v2898_v29 = vmul.f32 1.442695, %v2844_v9  ;;  %v7418_v52 = vpop.eup %6104  ;;  %v2960_v42 = vsel %vm2725_vm3, %v7414_v38, 0.0 }
 0x5f1   : > { %v5872_v28 = vunpack.i.h.bf16 %v5870_v46  ;;  %v5871_v37 = vunpack.i.l.bf16 %v5870_v46  ;;  %v7375_v1 = vpop.xlane.xlu0 %2799  ;;  %2934 = vadd.xlane.f32.xlu1 %v2933_v50  ;;  %6112 = vpow2.f32 %v2900_v32  ;;  %v7422_v43 = vpop.eup %6106  ;;  %v2975_v17 = vsel %vm2725_vm3, %v7418_v52, 0.0 }
 0x5f2   : > { %2931 = vadd.xlane.f32.xlu0 %v2930_v45  ;;  %6114 = vpow2.f32 %v2898_v29  ;;  %v2972_v50 = vsel %vm2725_vm3, %v7422_v43, 0.0  ;;  %v2838_v32 = vsub.f32 %v7225_v59, %v7350_v47 }
 0x5f3   : > { %v5573_v30 = vpack.c.bf16 %v5872_v28, %v5871_v37 }
 0x5f5   : > { %5574 = vmatprep.subr.bf16.mxu0 %v5573_v30  ;;  %v7386_v48 = vpop.xlane.xlu0 %2802  ;;  %2940 = vadd.xlane.f32.xlu1 %v2939_v12  ;;  %v2870_v12 = vmul.f32 1.442695, %v2830_v49 }
 0x5f6   : > { %5576 = vmatpush3.bf16.msra.mxu0 %v5573_v30  ;;  %2937 = vadd.xlane.f32.xlu0 %v2936_v24 }
 0x5f7   : > { %v7426_v46 = vpop.eup %6108 }
 0x5f8   : > { %v7430_v28 = vpop.eup %6110  ;;  %v2981_v37 = vsel %vm2725_vm3, %v7426_v46, 0.0 }
 0x5f9   : > { %5342 = vmatmul.mubr.msk.f32.vlgmr.msra.gmra.mrb[18].mxu0 %vm2725_vm3, %v7393_v19  ;;  %2952 = vadd.xlane.f32.xlu1 %v2951_v0  ;;  %v2806_v41 = vpop.xlane.xlu0 %2805  ;;  %v2978_v33 = vsel %vm2725_vm3, %v7430_v28, 0.0 }
 0x5fa   : > { %5355 = vmatprep.mubr.msk.f32.mxu0 %vm2725_vm3, %v6085_v34  ;;  %2949 = vadd.xlane.f32.xlu0 %v2948_v55  ;;  %v2848_v39 = vsub.f32 %v7276_v10, %v2806_v41  ;;  %v2963_v10 = vsel %vm2725_vm3, %v7410_v16, 0.0  ;;  %v2872_v55 = vmul.f32 1.442695, %v2831_v14 }
 0x5fb   : > { %v7438_v45 = vpop.eup %6112 }
 0x5fc   : > { %v2906_v18 = vmul.f32 1.442695, %v2848_v39  ;;  %v7442_v20 = vpop.eup %6114  ;;  %v2987_v30 = vsel %vm2725_vm3, %v7438_v45, 0.0 }
 0x5fd   : > { %2958 = vadd.xlane.f32.xlu1 %v2957_v2  ;;  %v5875_v53 = vpop.permute.xlu0 %5874 }
 0x5fe   : > { %v5877_v11 = vunpack.i.h.bf16 %v5875_v53  ;;  %v5876_v27 = vunpack.i.l.bf16 %v5875_v53  ;;  %2955 = vadd.xlane.f32.xlu0 %v2954_v22  ;;  %6116 = vpow2.f32 %v2906_v18  ;;  %v2839_v53 = vsub.f32 %v7223_v26, %v7347_v13 }
 0x5ff   : > { %6118 = vpow2.f32 %v2870_v12 }
 0x600   : > { %v5577_v34 = vpack.c.bf16 %v5877_v11, %v5876_v27  ;;  %v2888_v13 = vmul.f32 1.442695, %v2839_v53 }
 0x601   : > { %2964 = vadd.xlane.f32.xlu1 %v2963_v10 }
 0x602   : > { %5578 = vmatprep.subr.bf16.mxu1 %v5577_v34  ;;  %2961 = vadd.xlane.f32.xlu0 %v2960_v42 }
 0x603   : > { %5580 = vmatpush3.bf16.msra.mxu1 %v5577_v34 }
 0x605   : > { %2976 = vadd.xlane.f32.xlu1 %v2975_v17 }
 0x606   : > { %5349 = vmatmul.mubr.msk.f32.vlgmr.msra.gmra.mrb[22].mxu1 %vm2725_vm3, %v7359_v56  ;;  %2973 = vadd.xlane.f32.xlu0 %v2972_v50  ;;  %v2984_v56 = vsel %vm2725_vm3, %v7442_v20, 0.0 }
 0x607   : > { %5362 = vmatprep.mubr.msk.f32.mxu1 %vm2725_vm3, %v7378_v15 }
 0x608   : > { %v7448_v15 = vpop.eup %6116 }
 0x609   : > { %2982 = vadd.xlane.f32.xlu1 %v2981_v37  ;;  %v2996_v4 = vsel %vm2725_vm3, %v7448_v15, 0.0  ;;  %v7459_v5 = vpop.eup %6118 }
 0x60a   : > { %2979 = vadd.xlane.f32.xlu0 %v2978_v33 }
 0x60d   : > { %2988 = vadd.xlane.f32.xlu1 %v2987_v30 }
 0x60e   : > { %2985 = vadd.xlane.f32.xlu0 %v2984_v56 }
 0x612   : > { %2997 = vadd.xlane.f32.xlu0 %v2996_v4 }
 0x621   : > { %v2809_v24 = vpop.xlane.xlu1 %2808 }
 0x622   : > { %v2849_v44 = vsub.f32 %v7296_v58, %v2809_v24  ;;  %v2886_v58 = vmul.f32 1.442695, %v2838_v32 }
 0x624   : > { %v2908_v40 = vmul.f32 1.442695, %v2849_v44 }
 0x625   : > { %v5880_v9 = vpop.permute.xlu1 %5879 }
 0x626   : > { %6120 = vpow2.f32 %v2908_v40  ;;  %v5882_v0 = vunpack.i.h.bf16 %v5880_v9  ;;  %v5881_v41 = vunpack.i.l.bf16 %v5880_v9 }
 0x627   : > { %6122 = vpow2.f32 %v2872_v55 }
 0x628   : > { %v5581_v29 = vpack.c.bf16 %v5882_v0, %v5881_v41  ;;  %6124 = vpow2.f32 %v2886_v58 }
 0x629   : > { %v5885_v39 = vpop.permute.xlu1 %5884 }
 0x62a   : > { %v5887_v60 = vunpack.i.h.bf16 %v5885_v39  ;;  %v5886_v35 = vunpack.i.l.bf16 %v5885_v39  ;;  %5582 = vmatprep.subr.bf16.mxu0 %v5581_v29 }
 0x62b   : > { %5584 = vmatpush3.bf16.msra.mxu0 %v5581_v29 }
 0x62c   : > { %v5585_v2 = vpack.c.bf16 %v5887_v60, %v5886_v35 }
 0x62d   : > { %v5890_v3 = vpop.permute.xlu1 %5889 }
 0x62e   : > { %v5892_v22 = vunpack.i.h.bf16 %v5890_v3  ;;  %v5891_v11 = vunpack.i.l.bf16 %v5890_v3  ;;  %5356 = vmatmul.mubr.msk.f32.vlgmr.msra.gmra.mrb[20].mxu0 %vm2725_vm3, %v7365_v21  ;;  %v2812_v59 = vpop.xlane.xlu0 %2811  ;;  %5586 = vmatprep.subr.bf16.mxu1 %v5585_v2 }
 0x62f   : > { %v2850_v47 = vsub.f32 %v7306_v25, %v2812_v59  ;;  %5588 = vmatpush3.bf16.msra.mxu1 %v5585_v2  ;;  %5369 = vmatprep.mubr.msk.f32.mxu0 %vm2725_vm3, %v7459_v5 }
 0x630   : > { %v7468_v27 = vpop.eup %6120  ;;  %v5589_v18 = vpack.c.bf16 %v5892_v22, %v5891_v11 }
 0x631   : > { %v2910_v34 = vmul.f32 1.442695, %v2850_v47  ;;  %v5900_v10 = vpop.permute.xlu1 %5899  ;;  %v2999_v26 = vsel %vm2725_vm3, %v7468_v27, 0.0  ;;  %v7477_v37 = vpop.eup %6122 }
 0x632   : > { %v5902_v42 = vunpack.i.h.bf16 %v5900_v10  ;;  %v5901_v21 = vunpack.i.l.bf16 %v5900_v10  ;;  %3000 = vadd.xlane.f32.xlu1 %v2999_v26  ;;  %5590 = vmatprep.subr.bf16.mxu0 %v5589_v18  ;;  %v2815_v17 = vpop.xlane.xlu0 %2814  ;;  %v7486_v49 = vpop.eup %6124 }
 0x633   : > { %6126 = vpow2.f32 %v2910_v34  ;;  %v2851_v25 = vsub.f32 %v7308_v61, %v2815_v17  ;;  %5363 = vmatmul.mubr.msk.f32.vlgmr.msra.gmra.mrb[24].mxu1 %vm2725_vm3, %v7373_v51  ;;  %5592 = vmatpush3.bf16.msra.mxu0 %v5589_v18  ;;  %v2846_v51 = vsub.f32 %v7269_v57, %v7375_v1 }
 0x634   : > { %v5597_v50 = vpack.c.bf16 %v5902_v42, %v5901_v21  ;;  %5376 = vmatprep.mubr.msk.f32.mxu1 %vm2725_vm3, %v7390_v36  ;;  %6128 = vpow2.f32 %v2888_v13 }
 0x635   : > { %v2912_v33 = vmul.f32 1.442695, %v2851_v25  ;;  %v5905_v30 = vpop.permute.xlu1 %5904  ;;  %v2902_v57 = vmul.f32 1.442695, %v2846_v51 }
 0x636   : > { %5370 = vmatmul.mubr.msk.f32.vlgmr.msra.gmra.mrb[22].mxu0 %vm2725_vm3, %v7477_v37  ;;  %5598 = vmatprep.subr.bf16.mxu0 %v5597_v50  ;;  %v2818_v56 = vpop.xlane.xlu0 %2817  ;;  %v5907_v55 = vunpack.i.h.bf16 %v5905_v30  ;;  %v5906_v32 = vunpack.i.l.bf16 %v5905_v30 }
 0x637   : > { %6130 = vpow2.f32 %v2912_v33  ;;  %v2852_v61 = vsub.f32 %v7286_v31, %v2818_v56  ;;  %5600 = vmatpush3.bf16.msra.mxu0 %v5597_v50  ;;  %5383 = vmatprep.mubr.msk.f32.mxu0 %vm2725_vm3, %v7404_v6  ;;  %v2847_v31 = vsub.f32 %v7271_v7, %v7386_v48 }
 0x638   : > { %v5601_v53 = vpack.c.bf16 %v5907_v55, %v5906_v32  ;;  %v4594_v55 = vld [vmem:[%s7767_s3 + $0x18] sm:$0xff] }
 0x639   : > { %v2914_v36 = vmul.f32 1.442695, %v2852_v61  ;;  %v5910_v4 = vpop.permute.xlu1 %5909  ;;  %v2904_v41 = vmul.f32 1.442695, %v2847_v31  ;;  %v2918_v61 = vsel %vm2725_vm3, %v7181_v54, 0.0  ;;  %v2942_v54 = vsel %vm2725_vm3, %v7459_v5, 0.0 }
 0x63a   : > { %v5912_v12 = vunpack.i.h.bf16 %v5910_v4  ;;  %v5911_v24 = vunpack.i.l.bf16 %v5910_v4  ;;  %5384 = vmatmul.mubr.msk.f32.vlgmr.msra.gmra.mrb[24].mxu0 %vm2725_vm3, %v7398_v23  ;;  %v2821_v44 = vpop.xlane.xlu0 %2820 }
 0x63b   : > { %6132 = vpow2.f32 %v2914_v36  ;;  %v2853_v14 = vsub.f32 %v7284_v62, %v2821_v44  ;;  %5397 = vmatprep.mubr.msk.f32.mxu0 %vm2725_vm3, %v7486_v49 }
 0x63c   : > { %v5605_v1 = vpack.c.bf16 %v5912_v12, %v5911_v24 }
 0x63d   : > { %v7495_v6 = vpop.eup %6126  ;;  %v2916_v40 = vmul.f32 1.442695, %v2853_v14  ;;  %v5915_v9 = vpop.permute.xlu1 %5914 }
 0x63e   : > { %5606 = vmatprep.subr.bf16.mxu0 %v5605_v1  ;;  %v5895_v0 = vpop.permute.xlu0 %5894  ;;  %v3002_v23 = vsel %vm2725_vm3, %v7495_v6, 0.0  ;;  %v7499_v62 = vpop.eup %6128  ;;  %v5917_v22 = vunpack.i.h.bf16 %v5915_v9  ;;  %v5916_v11 = vunpack.i.l.bf16 %v5915_v9 }
 0x63f   : > { %6134 = vpow2.f32 %v2916_v40  ;;  %v5897_v7 = vunpack.i.h.bf16 %v5895_v0  ;;  %v5896_v48 = vunpack.i.l.bf16 %v5895_v0  ;;  %5608 = vmatpush3.bf16.msra.mxu0 %v5605_v1  ;;  %3003 = vadd.xlane.f32.xlu0 %v3002_v23  ;;  %v4591_v0 = vld [vmem:[%s7767_s3] sm:$0xff]  ;;  %v4592_v23 = vld [vmem:[%s7767_s3 + $0x8] sm:$0xff] }
 0x640   : > { %6136 = vpow2.f32 %v2902_v57 }
 0x641   : > { %v7501_v29 = vpop.eup %6130  ;;  %v5593_v39 = vpack.c.bf16 %v5897_v7, %v5896_v48  ;;  %v5920_v60 = vpop.permute.xlu1 %5919  ;;  %6138 = vpow2.f32 %v2904_v41  ;;  %v5637_v41 = vpack.c.bf16 %v4592_v23, %v4591_v0 }
 0x642   : > { %v5922_v35 = vunpack.i.h.bf16 %v5920_v60  ;;  %v5921_v58 = vunpack.i.l.bf16 %v5920_v60  ;;  %5398 = vmatmul.mubr.msk.f32.vlgmr.msra.gmra.mrb[26].mxu0 %vm2725_vm3, %v7499_v62  ;;  %v3005_v2 = vsel %vm2725_vm3, %v7501_v29, 0.0  ;;  %v5925_v3 = vpop.permute.xlu0 %5924 }
 0x643   : > { %5411 = vmatprep.mubr.msk.f32.mxu0 %vm2725_vm3, %v7430_v28  ;;  %3006 = vadd.xlane.f32.xlu1 %v3005_v2  ;;  %v5609_v28 = vpack.c.bf16 %v5917_v22, %v5916_v11  ;;  %v5927_v21 = vunpack.i.h.bf16 %v5925_v3  ;;  %v5926_v17 = vunpack.i.l.bf16 %v5925_v3 }
 0x644   : > { %v5613_v59 = vpack.c.bf16 %v5922_v35, %v5921_v58  ;;  %5594 = vmatprep.subr.bf16.mxu1 %v5593_v39 }
 0x645   : > { %v7509_v47 = vpop.eup %6132  ;;  %5596 = vmatpush3.bf16.msra.mxu1 %v5593_v39  ;;  %v5930_v18 = vpop.permute.xlu1 %5929  ;;  %v5617_v36 = vpack.c.bf16 %v5927_v21, %v5926_v17 }
 0x646   : > { %v5932_v34 = vunpack.i.h.bf16 %v5930_v18  ;;  %v5931_v10 = vunpack.i.l.bf16 %v5930_v18  ;;  %5602 = vmatprep.subr.bf16.mxu1 %v5601_v53  ;;  %5614 = vmatprep.subr.bf16.mxu0 %v5613_v59  ;;  %v3008_v26 = vsel %vm2725_vm3, %v7509_v47, 0.0  ;;  %v5935_v25 = vpop.permute.xlu0 %5934 }
 0x647   : > { %5616 = vmatpush3.bf16.msra.mxu0 %v5613_v59  ;;  %3009 = vadd.xlane.f32.xlu0 %v3008_v26  ;;  %v5937_v4 = vunpack.i.h.bf16 %v5935_v25 }
 0x648   : > { %v5621_v13 = vpack.c.bf16 %v5932_v34, %v5931_v10  ;;  %5377 = vmatmul.mubr.msk.f32.vlgmr.msra.gmra.mrb[26].mxu1 %vm2725_vm3, %v7384_v63 }
 0x649   : > { %v7515_v42 = vpop.eup %6134  ;;  %5604 = vmatpush3.bf16.msra.mxu1 %v5601_v53  ;;  %5390 = vmatprep.mubr.msk.f32.mxu1 %vm2725_vm3, %v7414_v38  ;;  %v5940_v50 = vpop.permute.xlu1 %5939 }
 0x64a   : > { %v6137_v33 = vpop.eup %6136  ;;  %v5942_v30 = vunpack.i.h.bf16 %v5940_v50  ;;  %v5941_v56 = vunpack.i.l.bf16 %v5940_v50  ;;  %5610 = vmatprep.subr.bf16.mxu1 %v5609_v28  ;;  %5412 = vmatmul.mubr.msk.f32.vlgmr.msra.gmra.mrb[28].mxu0 %vm2725_vm3, %v7426_v46  ;;  %v3011_v63 = vsel %vm2725_vm3, %v7515_v42, 0.0  ;;  %v5936_v46 = vunpack.i.l.bf16 %v5935_v25  ;;  %v5945_v12 = vpop.permute.xlu0 %5944 }
 0x64b   : > { %5622 = vmatprep.subr.bf16.mxu0 %v5621_v13  ;;  %5425 = vmatprep.mubr.msk.f32.mxu0 %vm2725_vm3, %v6137_v33  ;;  %v6139_v38 = vpop.eup %6138  ;;  %v5947_v44 = vunpack.i.h.bf16 %v5945_v12  ;;  %v5946_v31 = vunpack.i.l.bf16 %v5945_v12 }
 0x64c   : > { %v5629_v51 = vpack.c.bf16 %v5942_v30, %v5941_v56  ;;  %5624 = vmatpush3.bf16.msra.mxu0 %v5621_v13  ;;  %2919 = vadd.xlane.f32.xlu0 %v2918_v61  ;;  %v5625_v24 = vpack.c.bf16 %v5937_v4, %v5936_v46 }
 0x64d   : > { %3012 = vadd.xlane.f32.xlu1 %v3011_v63  ;;  %5391 = vmatmul.mubr.msk.f32.vlgmr.msra.gmra.mrb[28].mxu1 %vm2725_vm3, %v7410_v16  ;;  %v2921_v16 = vsel %vm2725_vm3, %v7393_v19, 0.0  ;;  %v2945_v19 = vsel %vm2725_vm3, %v7477_v37, 0.0  ;;  %v5633_v5 = vpack.c.bf16 %v5947_v44, %v5946_v31 }
 0x64e   : > { %5612 = vmatpush3.bf16.msra.mxu1 %v5609_v28  ;;  %5404 = vmatprep.mubr.msk.f32.mxu1 %vm2725_vm3, %v7422_v43  ;;  %v2966_v43 = vsel %vm2725_vm3, %v7486_v49, 0.0 }
 0x64f   : > { %5618 = vmatprep.subr.bf16.mxu1 %v5617_v36  ;;  %5426 = vmatmul.mubr.msk.f32.vlgmr.msra.gmra.mrb[30].mxu0 %vm2725_vm3, %v6139_v38 }
 0x650   : > { %5630 = vmatprep.subr.bf16.mxu0 %v5629_v51  ;;  %5439 = vmatprep.mubr.msk.f32.mxu0 %vm2725_vm3, %v7495_v6 }
 0x651   : > { %5632 = vmatpush3.bf16.msra.mxu0 %v5629_v51  ;;  %2943 = vadd.xlane.f32.xlu0 %v2942_v54 }
 0x652   : > { %2922 = vadd.xlane.f32.xlu1 %v2921_v16  ;;  %5405 = vmatmul.mubr.msk.f32.vlgmr.msra.gmra.mrb[30].mxu1 %vm2725_vm3, %v7418_v52  ;;  %v2990_v52 = vsel %vm2725_vm3, %v6137_v33, 0.0 }
 0x653   : > { %5620 = vmatpush3.bf16.msra.mxu1 %v5617_v36  ;;  %5418 = vmatprep.mubr.msk.f32.mxu1 %vm2725_vm3, %v7442_v20  ;;  %v2969_v20 = vsel %vm2725_vm3, %v7499_v62, 0.0  ;;  %v4593_v62 = vld [vmem:[%s7767_s3 + $0x10] sm:$0xff] }
 0x654   : > { %5626 = vmatprep.subr.bf16.mxu1 %v5625_v24  ;;  %5440 = vmatmul.mubr.msk.f32.vlgmr.msra.gmra.mrb[32].mxu0 %vm2725_vm3, %v7501_v29  ;;  %v5641_v32 = vpack.c.bf16 %v4594_v55, %v4593_v62 }
 0x655   : > { %2967 = vadd.xlane.f32.xlu0 %v2966_v43  ;;  %5638 = vmatprep.subr.bf16.mxu0 %v5637_v41 }
 0x656   : > { %2946 = vadd.xlane.f32.xlu1 %v2945_v19  ;;  %5419 = vmatmul.mubr.msk.f32.vlgmr.msra.gmra.mrb[32].mxu1 %vm2725_vm3, %v7438_v45  ;;  %v2993_v45 = vsel %vm2725_vm3, %v6139_v38, 0.0 }
 0x657   : > { %5628 = vmatpush3.bf16.msra.mxu1 %v5625_v24  ;;  %5432 = vmatprep.mubr.msk.f32.mxu1 %vm2725_vm3, %v7448_v15 }
 0x658   : > { %5634 = vmatprep.subr.bf16.mxu1 %v5633_v5  ;;  %5640 = vmatpush3.bf16.msra.mxu0 %v5637_v41 }
 0x659   : > { %2991 = vadd.xlane.f32.xlu0 %v2990_v52  ;;  %5642 = vmatprep.subr.bf16.mxu0 %v5641_v32 }
 0x65a   : > { %2970 = vadd.xlane.f32.xlu1 %v2969_v20  ;;  %5433 = vmatmul.mubr.msk.f32.vlgmr.msra.gmra.mrb[34].mxu1 %vm2725_vm3, %v7468_v27 }
 0x65b   : > { %5636 = vmatpush3.bf16.msra.mxu1 %v5633_v5  ;;  %5446 = vmatprep.mubr.msk.f32.mxu1 %vm2725_vm3, %v7509_v47 }
 0x65c   : > { %5644 = vmatpush3.bf16.msra.mxu0 %v5641_v32 }
 0x65e   : > { %2994 = vadd.xlane.f32.xlu1 %v2993_v45  ;;  %5447 = vmatmul.mubr.msk.f32.vlgmr.msra.gmra.mrb[36].mxu1 %vm2725_vm3, %v7515_v42 }
 0x67a   : > { %v2926_v6 = vpop.xlane.xlu1 %2925 }
 0x67b   : > { %v2929_v15 = vpop.xlane.xlu0 %2928 }
 0x67c   : > { %6140 = vrcp.f32 %v2929_v15 }
 0x67e   : > { %v2935_v40 = vpop.xlane.xlu1 %2934 }
 0x67f   : > { %v2932_v9 = vpop.xlane.xlu0 %2931  ;;  %6142 = vrcp.f32 %v2935_v40 }
 0x680   : > { %6144 = vrcp.f32 %v2932_v9 }
 0x681   : > { %6146 = vrcp.f32 %v2926_v6 }
 0x682   : > { %v2941_v48 = vpop.xlane.xlu1 %2940 }
 0x683   : > { %v2938_v7 = vpop.xlane.xlu0 %2937 }
 0x684   : > { %6148 = vrcp.f32 %v2938_v7 }
 0x685   : > { %6150 = vrcp.f32 %v2941_v48 }
 0x686   : > { %v6141_v14 = vpop.eup %6140  ;;  %v2953_v53 = vpop.xlane.xlu1 %2952 }
 0x687   : > { %v2950_v2 = vpop.xlane.xlu0 %2949  ;;  %6152 = vrcp.f32 %v2953_v53 }
 0x688   : > { %6154 = vrcp.f32 %v2950_v2 }
 0x689   : > { %v6143_v29 = vpop.eup %6142 }
 0x68a   : > { %v6145_v60 = vpop.eup %6144  ;;  %v2959_v13 = vpop.xlane.xlu1 %2958 }
 0x68b   : > { %v6147_v22 = vpop.eup %6146  ;;  %v2956_v26 = vpop.xlane.xlu0 %2955  ;;  %6156 = vrcp.f32 %v2959_v13 }
 0x68c   : > { %6158 = vrcp.f32 %v2956_v26 }
 0x68e   : > { %v6149_v47 = vpop.eup %6148  ;;  %v2965_v33 = vpop.xlane.xlu1 %2964 }
 0x68f   : > { %v6151_v10 = vpop.eup %6150  ;;  %v2962_v50 = vpop.xlane.xlu0 %2961  ;;  %6160 = vrcp.f32 %v2965_v33 }
 0x690   : > { %6162 = vrcp.f32 %v2962_v50 }
 0x691   : > { %v6153_v51 = vpop.eup %6152 }
 0x692   : > { %v2977_v63 = vpop.xlane.xlu1 %2976  ;;  %v6155_v4 = vpop.eup %6154 }
 0x693   : > { %v2974_v30 = vpop.xlane.xlu0 %2973  ;;  %6164 = vrcp.f32 %v2977_v63 }
 0x694   : > { %6166 = vrcp.f32 %v2974_v30 }
 0x695   : > { %v6157_v31 = vpop.eup %6156 }
 0x696   : > { %v2983_v46 = vpop.xlane.xlu1 %2982  ;;  %v6159_v43 = vpop.eup %6158 }
 0x697   : > { %v2980_v38 = vpop.xlane.xlu0 %2979  ;;  %6168 = vrcp.f32 %v2983_v46 }
 0x698   : > { %6170 = vrcp.f32 %v2980_v38 }
 0x69a   : > { %v2989_v15 = vpop.xlane.xlu1 %2988 }
 0x69b   : > { %v2986_v52 = vpop.xlane.xlu0 %2985  ;;  %6172 = vrcp.f32 %v2989_v15 }
 0x69c   : > { %6174 = vrcp.f32 %v2986_v52 }
 0x69f   : > { %v2998_v7 = vpop.xlane.xlu0 %2997 }
 0x6bf   : > { %v3001_v0 = vpop.xlane.xlu1 %3000 }
 0x6c0   : > { %6176 = vrcp.f32 %v3001_v0 }
 0x6c1   : > { %6178 = vrcp.f32 %v2998_v7 }
 0x6cc   : > { %v7561_v37 = vpop.f32.mrb[18].mxu0  ;;  %v3004_v2 = vpop.xlane.xlu0 %3003 }
 0x6cd   : > { %v7563_v49 = vpop.f32.mrb[19].mxu0 }
 0x6d9   : > { %v5350_v57 = vpop.f32.mrb[22].mxu1 }
 0x6da   : > { %v4441_v1 = vmul.f32 %v6141_v14, %v5350_v57  ;;  %v3179_v27 = vpop.f32.mrb[23].mxu1  ;;  %v6161_v57 = vpop.eup %6160 }
 0x6db   : > { %v4440_v11 = vmul.f32 %v6147_v22, %v3179_v27  ;;  %v6163_v27 = vpop.eup %6162 }
 0x6dc   : > { %4480 = vrot.lane.b32.xlu1 %v4441_v1, %s6245_s22  ;;  %v6165_v41 = vpop.eup %6164 }
 0x6dd   : > { %v6167_v62 = vpop.eup %6166 }
 0x701   : > { %v5357_v39 = vpop.f32.mrb[20].mxu0 }
 0x702   : > { %v4443_v35 = vmul.f32 %v6143_v29, %v5357_v39  ;;  %v3266_v58 = vpop.f32.mrb[21].mxu0 }
 0x703   : > { %v4442_v3 = vmul.f32 %v6145_v60, %v3266_v58  ;;  %v3007_v60 = vpop.xlane.xlu1 %3006  ;;  %v6169_v58 = vpop.eup %6168 }
 0x704   : > { %4512 = vrot.lane.b32.xlu0 %v4443_v35, %s6246_s10  ;;  %6180 = vrcp.f32 %v3007_v60 }
 0x705   : > { %4510 = vrot.lane.b32.xlu1 %v4442_v3, %s6246_s10  ;;  %v6171_v3 = vpop.eup %6170  ;;  %6182 = vrcp.f32 %v3004_v2 }
 0x706   : > { %v5364_v59 = vpop.f32.mrb[24].mxu1 }
 0x707   : > { %v3353_v18 = vpop.f32.mrb[25].mxu1  ;;  %v4445_v42 = vmul.f32 %v6151_v10, %v5364_v59  ;;  %v3013_v59 = vpop.xlane.xlu1 %3012 }
 0x708   : > { %v4444_v34 = vmul.f32 %v6149_v47, %v3353_v18  ;;  %4478 = vrot.lane.b32.xlu0 %v4440_v11, %s6245_s22  ;;  %v6173_v18 = vpop.eup %6172  ;;  %6184 = vrcp.f32 %v3013_v59 }
 0x709   : > { %v7581_v28 = vpop.f32.mrb[22].mxu0  ;;  %v6175_v10 = vpop.eup %6174 }
 0x70a   : > { %4542 = vrot.lane.b32.xlu1 %v4444_v34, %s6247_s11  ;;  %v7584_v21 = vpop.f32.mrb[23].mxu0  ;;  %v3010_v34 = vpop.xlane.xlu0 %3009 }
 0x70b   : > { %6186 = vrcp.f32 %v3010_v34 }
 0x70c   : > { %4544 = vrot.lane.b32.xlu0 %v4445_v42, %s6247_s11 }
 0x70d   : > { %v5385_v17 = vpop.f32.mrb[24].mxu0 }
 0x70e   : > { %v3614_v25 = vpop.f32.mrb[25].mxu0  ;;  %v4451_v19 = vmul.f32 %v6157_v31, %v5385_v17 }
 0x70f   : > { %v4450_v20 = vmul.f32 %v6159_v43, %v3614_v25  ;;  %v6177_v25 = vpop.eup %6176 }
 0x710   : > { %v6179_v50 = vpop.eup %6178 }
 0x711   : > { %v6181_v63 = vpop.eup %6180 }
 0x715   : > { %v7587_v56 = vpop.f32.mrb[26].mxu0 }
 0x716   : > { %v7589_v61 = vpop.f32.mrb[27].mxu0 }
 0x71b   : > { %v5378_v36 = vpop.f32.mrb[26].mxu1 }
 0x71c   : > { %v4449_v12 = vmul.f32 %v6153_v51, %v5378_v36  ;;  %v3527_v54 = vpop.f32.mrb[27].mxu1  ;;  %v6183_v51 = vpop.eup %6182 }
 0x71d   : > { %v4448_v16 = vmul.f32 %v6155_v4, %v3527_v54  ;;  %v5413_v24 = vpop.f32.mrb[28].mxu0  ;;  %v6185_v4 = vpop.eup %6184 }
 0x71e   : > { %4484 = vrot.lane.b32.xlu0 %v4449_v12, %s6245_s22  ;;  %v3962_v44 = vpop.f32.mrb[29].mxu0  ;;  %v4459_v53 = vmul.f32 %v6169_v58, %v5413_v24  ;;  %v6187_v46 = vpop.eup %6186 }
 0x71f   : > { %4482 = vrot.lane.b32.xlu1 %v4448_v16, %s6245_s22  ;;  %v4458_v22 = vmul.f32 %v6171_v3, %v3962_v44  ;;  %v2923_v16 = vpop.xlane.xlu1 %2922  ;;  %v2920_v24 = vpop.xlane.xlu0 %2919 }
 0x720   : > { %v5392_v5 = vpop.f32.mrb[28].mxu1  ;;  %6188 = vrcp.f32 %v2920_v24 }
 0x721   : > { %v3701_v45 = vpop.f32.mrb[29].mxu1  ;;  %v4453_v6 = vmul.f32 %v6161_v57, %v5392_v5  ;;  %6190 = vrcp.f32 %v2923_v16 }
 0x722   : > { %v7593_v14 = vpop.f32.mrb[30].mxu0  ;;  %4516 = vrot.lane.b32.xlu0 %v4451_v19, %s6246_s10  ;;  %v4452_v40 = vmul.f32 %v6163_v27, %v3701_v45 }
 0x723   : > { %v7596_v1 = vpop.f32.mrb[31].mxu0  ;;  %4514 = vrot.lane.b32.xlu1 %v4450_v20, %s6246_s10  ;;  %v2947_v44 = vpop.xlane.xlu1 %2946 }
 0x724   : > { %v2944_v31 = vpop.xlane.xlu0 %2943 }
 0x725   : > { %v5406_v9 = vpop.f32.mrb[30].mxu1  ;;  %6192 = vrcp.f32 %v2944_v31 }
 0x726   : > { %v3875_v23 = vpop.f32.mrb[31].mxu1  ;;  %4548 = vrot.lane.b32.xlu0 %v4453_v6, %s6247_s11  ;;  %v4457_v55 = vmul.f32 %v6165_v41, %v5406_v9  ;;  %6194 = vrcp.f32 %v2947_v44 }
 0x727   : > { %v5441_v48 = vpop.f32.mrb[32].mxu0  ;;  %4546 = vrot.lane.b32.xlu1 %v4452_v40, %s6247_s11  ;;  %v4456_v29 = vmul.f32 %v6167_v62, %v3875_v23  ;;  %v2971_v43 = vpop.xlane.xlu1 %2970 }
 0x728   : > { %v4310_v32 = vpop.f32.mrb[33].mxu0  ;;  %v4467_v38 = vmul.f32 %v6181_v63, %v5441_v48  ;;  %v2968_v19 = vpop.xlane.xlu0 %2967 }
 0x729   : > { %v5420_v39 = vpop.f32.mrb[32].mxu1  ;;  %v4466_v36 = vmul.f32 %v6183_v51, %v4310_v32  ;;  %6196 = vrcp.f32 %v2968_v19 }
 0x72a   : > { %v4049_v35 = vpop.f32.mrb[33].mxu1  ;;  %4488 = vrot.lane.b32.xlu0 %v4457_v55, %s6245_s22  ;;  %v4461_v26 = vmul.f32 %v6173_v18, %v5420_v39  ;;  %v6189_v45 = vpop.eup %6188  ;;  %6198 = vrcp.f32 %v2971_v43 }
 0x72b   : > { %4486 = vrot.lane.b32.xlu1 %v4456_v29, %s6245_s22  ;;  %v4460_v13 = vmul.f32 %v6175_v10, %v4049_v35  ;;  %v2995_v5 = vpop.xlane.xlu1 %2994  ;;  %v6191_v27 = vpop.eup %6190  ;;  %v4438_v6 = vmul.f32 %v6189_v45, %v7563_v49 }
 0x72c   : > { %v2992_v52 = vpop.xlane.xlu0 %2991  ;;  %v4439_v9 = vmul.f32 %v6191_v27, %v7561_v37 }
 0x72d   : > { %v5434_v11 = vpop.f32.mrb[34].mxu1  ;;  %6200 = vrcp.f32 %v2992_v52 }
 0x72e   : > { %v4223_v47 = vpop.f32.mrb[35].mxu1  ;;  %4520 = vrot.lane.b32.xlu0 %v4459_v53, %s6246_s10  ;;  %v4465_v33 = vmul.f32 %v6177_v25, %v5434_v11  ;;  %6202 = vrcp.f32 %v2995_v5 }
 0x72f   : > { %4518 = vrot.lane.b32.xlu1 %v4458_v22, %s6246_s10  ;;  %v4464_v30 = vmul.f32 %v6179_v50, %v4223_v47  ;;  %v6193_v39 = vpop.eup %6192 }
 0x730   : > { %v6195_v35 = vpop.eup %6194  ;;  %v4446_v58 = vmul.f32 %v6193_v39, %v7584_v21 }
 0x731   : > { %v5448_v42 = vpop.f32.mrb[36].mxu1  ;;  %v4447_v2 = vmul.f32 %v6195_v35, %v7581_v28 }
 0x732   : > { %v4397_v17 = vpop.f32.mrb[37].mxu1  ;;  %4552 = vrot.lane.b32.xlu0 %v4461_v26, %s6247_s11  ;;  %v4469_v12 = vmul.f32 %v6185_v4, %v5448_v42 }
 0x733   : > { %4550 = vrot.lane.b32.xlu1 %v4460_v13, %s6247_s11  ;;  %v4468_v54 = vmul.f32 %v6187_v46, %v4397_v17  ;;  %v6197_v26 = vpop.eup %6196 }
 0x734   : > { %v6199_v42 = vpop.eup %6198  ;;  %v4454_v17 = vmul.f32 %v6197_v26, %v7589_v61 }
 0x735   : > { %v4455_v25 = vmul.f32 %v6199_v42, %v7587_v56 }
 0x736   : > { %4492 = vrot.lane.b32.xlu0 %v4465_v33, %s6245_s22 }
 0x737   : > { %4490 = vrot.lane.b32.xlu1 %v4464_v30, %s6245_s22 }
 0x73a   : > { %4524 = vrot.lane.b32.xlu0 %v4467_v38, %s6246_s10 }
 0x73b   : > { %4522 = vrot.lane.b32.xlu1 %v4466_v36, %s6246_s10 }
 0x73e   : > { %4556 = vrot.lane.b32.xlu0 %v4469_v12, %s6247_s11  ;;  %v6201_v12 = vpop.eup %6200 }
 0x73f   : > { %4554 = vrot.lane.b32.xlu1 %v4468_v54, %s6247_s11  ;;  %v6203_v16 = vpop.eup %6202  ;;  %v4462_v24 = vmul.f32 %v6201_v12, %v7596_v1  ;;  %v7657_v1 = vld [vmem:[%s7768_s4] sm:$0xff] }
 0x740   : > { %v4463_v44 = vmul.f32 %v6203_v16, %v7593_v14  ;;  %v4597_v14 = vsub.s32 1, %v6694_v8 }
 0x74e   : > { %v4481_v20 = vpop.permute.xlu1 %4480 }
 0x74f   : > { %v4567_v7 = vsel %vm440_vm1, %v4439_v9, %v4481_v20 }
 0x776   : > { %v4513_v15 = vpop.permute.xlu0 %4512 }
 0x777   : > { %v4511_v57 = vpop.permute.xlu1 %4510  ;;  %v4575_v62 = vsel %vm2725_vm3, %v4567_v7, %v4513_v15 }
 0x77a   : > { %v4479_v40 = vpop.permute.xlu0 %4478 }
 0x77b   : > { %v4566_v0 = vsel %vm440_vm1, %v4438_v6, %v4479_v40 }
 0x77c   : > { %v4543_v23 = vpop.permute.xlu1 %4542  ;;  %v4574_v41 = vsel %vm2725_vm3, %v4566_v0, %v4511_v57  ;;  %v4598_v57 = vrot.slane %v7657_v1, %v4597_v14 }
 0x77d   : > { %v4583_v48 = vsel %vm4582_vm4, %v4574_v41, %v4543_v23 }
 0x77e   : > { %5457 = vmatprep.mubr.msk.f32.mxu0 %vm301_vm0, %v4583_v48  ;;  %v4545_v55 = vpop.permute.xlu0 %4544 }
 0x77f   : > { %v4584_v49 = vsel %vm4582_vm4, %v4575_v62, %v4545_v55 }
 0x780   : > { %5458 = vmatmul.mubr.msk.f32.vlgmr.msra.gmra.mrb[34].mxu0 %vm301_vm0, %v4584_v49 }
 0x790   : > { %v4485_v37 = vpop.permute.xlu0 %4484 }
 0x791   : > { %v4483_v32 = vpop.permute.xlu1 %4482  ;;  %v4569_v22 = vsel %vm440_vm1, %v4447_v2, %v4485_v37 }
 0x792   : > { %v4568_v3 = vsel %vm440_vm1, %v4446_v58, %v4483_v32 }
 0x794   : > { %v4517_v29 = vpop.permute.xlu0 %4516 }
 0x795   : > { %v4515_v60 = vpop.permute.xlu1 %4514  ;;  %v4577_v47 = vsel %vm2725_vm3, %v4569_v22, %v4517_v29 }
 0x796   : > { %v4576_v11 = vsel %vm2725_vm3, %v4568_v3, %v4515_v60 }
 0x798   : > { %v4549_v53 = vpop.permute.xlu0 %4548 }
 0x799   : > { %v4547_v59 = vpop.permute.xlu1 %4546  ;;  %v4586_v34 = vsel %vm4582_vm4, %v4577_v47, %v4549_v53 }
 0x79a   : > { %v4585_v18 = vsel %vm4582_vm4, %v4576_v11, %v4547_v59 }
 0x79b   : > { %5460 = vmatprep.mubr.msk.f32.mxu0 %vm301_vm0, %v4585_v18 }
 0x79c   : > { %5461 = vmatmul.mubr.msk.f32.gmra.mrb[36].mxu0 %vm301_vm0, %v4586_v34  ;;  %v4489_v28 = vpop.permute.xlu0 %4488 }
 0x79d   : > { %v4487_v21 = vpop.permute.xlu1 %4486  ;;  %v4571_v30 = vsel %vm440_vm1, %v4455_v25, %v4489_v28 }
 0x79e   : > { %v4570_v50 = vsel %vm440_vm1, %v4454_v17, %v4487_v21 }
 0x7a0   : > { %v4521_v10 = vpop.permute.xlu0 %4520 }
 0x7a1   : > { %v4519_v13 = vpop.permute.xlu1 %4518  ;;  %v4579_v38 = vsel %vm2725_vm3, %v4571_v30, %v4521_v10 }
 0x7a2   : > { %v4578_v63 = vsel %vm2725_vm3, %v4570_v50, %v4519_v13 }
 0x7a4   : > { %v4553_v33 = vpop.permute.xlu0 %4552 }
 0x7a5   : > { %v4551_v51 = vpop.permute.xlu1 %4550  ;;  %v4588_v4 = vsel %vm4582_vm4, %v4579_v38, %v4553_v33 }
 0x7a6   : > { %v4587_v36 = vsel %vm4582_vm4, %v4578_v63, %v4551_v51 }
 0x7a7   : > { %5463 = vmatprep.mubr.msk.f32.mxu0 %vm301_vm0, %v4587_v36 }
 0x7a8   : > { %5464 = vmatmul.mubr.msk.f32.gmra.mrb[38].mxu0 %vm301_vm0, %v4588_v4  ;;  %v4493_v56 = vpop.permute.xlu0 %4492 }
 0x7a9   : > { %v4491_v61 = vpop.permute.xlu1 %4490  ;;  %v4573_v19 = vsel %vm440_vm1, %v4463_v44, %v4493_v56 }
 0x7aa   : > { %v4572_v31 = vsel %vm440_vm1, %v4462_v24, %v4491_v61 }
 0x7ac   : > { %v4525_v46 = vpop.permute.xlu0 %4524 }
 0x7ad   : > { %v4523_v54 = vpop.permute.xlu1 %4522  ;;  %v4581_v20 = vsel %vm2725_vm3, %v4573_v19, %v4525_v46 }
 0x7ae   : > { %v4580_v5 = vsel %vm2725_vm3, %v4572_v31, %v4523_v54 }
 0x7b0   : > { %v4557_v43 = vpop.permute.xlu0 %4556 }
 0x7b1   : > { %v4555_v52 = vpop.permute.xlu1 %4554  ;;  %v4590_v15 = vsel %vm4582_vm4, %v4581_v20, %v4557_v43 }
 0x7b2   : > { %v4589_v45 = vsel %vm4582_vm4, %v4580_v5, %v4555_v52 }
 0x7b3   : > { %5466 = vmatprep.mubr.msk.f32.mxu0 %vm301_vm0, %v4589_v45 }
 0x7b4   : > { %5467 = vmatmul.mubr.msk.f32.gmra.mrb[40].mxu0 %vm301_vm0, %v4590_v15 }
 0x853   : > { %v5459_v27 = vpop.f32.mrb[34].mxu0 }
 0x854   : > { %v4695_v6 = vadd.f32 %v5459_v27, %v4598_v57  ;;  %v4689_v40 = vpop.f32.mrb[35].mxu0 }
 0x855   : > { %v4690_v9 = vadd.f32 %v4689_v40, %v4598_v57 }
 0x856   : > { %v4731_v0 = vsel %vm301_vm0, %v4695_v6, 0.0 }
 0x857   : > { %4732 = vadd.xlane.f32.xlu0 %v4731_v0  ;;  %v4728_v23 = vsel %vm301_vm0, %v4690_v9, 0.0 }
 0x858   : > { %4729 = vadd.xlane.f32.xlu1 %v4728_v23 }
 0x86f   : > { %v5462_v41 = vpop.f32.mrb[36].mxu0 }
 0x870   : > { %v4705_v7 = vadd.f32 %v5462_v41, %v4598_v57  ;;  %v4699_v48 = vpop.f32.mrb[37].mxu0 }
 0x871   : > { %v4700_v62 = vadd.f32 %v4699_v48, %v4598_v57  ;;  %v4835_v48 = vsub.s32 2, %v6694_v8 }
 0x872   : > { %v4737_v55 = vsel %vm301_vm0, %v4705_v7, 0.0 }
 0x873   : > { %4738 = vadd.xlane.f32.xlu1 %v4737_v55  ;;  %v4734_v49 = vsel %vm301_vm0, %v4700_v62, 0.0  ;;  %v7703_v55 = vrot.slane %v7657_v1, %v4835_v48 }
 0x874   : > { %4735 = vadd.xlane.f32.xlu0 %v4734_v49 }
 0x87b   : > { %v5465_v37 = vpop.f32.mrb[38].mxu0 }
 0x87c   : > { %v4715_v32 = vadd.f32 %v5465_v37, %v4598_v57  ;;  %v4709_v29 = vpop.f32.mrb[39].mxu0 }
 0x87d   : > { %v4710_v39 = vadd.f32 %v4709_v29, %v4598_v57 }
 0x87e   : > { %v4743_v60 = vsel %vm301_vm0, %v4715_v32, 0.0 }
 0x87f   : > { %4744 = vadd.xlane.f32.xlu1 %v4743_v60  ;;  %v4740_v35 = vsel %vm301_vm0, %v4710_v39, 0.0 }
 0x880   : > { %4741 = vadd.xlane.f32.xlu0 %v4740_v35 }
 0x887   : > { %v5468_v58 = vpop.f32.mrb[40].mxu0 }
 0x888   : > { %v4725_v2 = vadd.f32 %v5468_v58, %v4598_v57  ;;  %v4719_v3 = vpop.f32.mrb[41].mxu0 }
 0x889   : > { %v4720_v53 = vadd.f32 %v4719_v3, %v4598_v57  ;;  %v6222_v3 = vld [vmem:[%s6316_s15] sm:$0xff] }
 0x88a   : > { %v4749_v22 = vsel %vm301_vm0, %v4725_v2, 0.0 }
 0x88b   : > { %4750 = vadd.xlane.f32.xlu1 %v4749_v22  ;;  %v4746_v11 = vsel %vm301_vm0, %v4720_v53, 0.0 }
 0x88c   : > { %4747 = vadd.xlane.f32.xlu0 %v4746_v11 }
 0x8e4   : > { %v4733_v59 = vpop.xlane.xlu0 %4732 }
 0x8e5   : > { %v4754_v47 = vmul.f32 0.03125, %v4733_v59  ;;  %v4730_v18 = vpop.xlane.xlu1 %4729 }
 0x8e6   : > { %v4753_v34 = vmul.f32 0.03125, %v4730_v18 }
 0x8e7   : > { %v4762_v28 = vsub.f32 %v4695_v6, %v4754_v47 }
 0x8e8   : > { %v4761_v21 = vsub.f32 %v4690_v9, %v4753_v34 }
 0x8e9   : > { %v4770_v10 = vmul.f32 %v4762_v28, %v4762_v28 }
 0x8ea   : > { %v4769_v26 = vmul.f32 %v4761_v21, %v4761_v21 }
 0x8eb   : > { %v4780_v13 = vsel %vm301_vm0, %v4770_v10, 0.0 }
 0x8ec   : > { %4781 = vadd.xlane.f32.xlu1 %v4780_v13  ;;  %v4777_v42 = vsel %vm301_vm0, %v4769_v26, 0.0 }
 0x8ed   : > { %4778 = vadd.xlane.f32.xlu0 %v4777_v42 }
 0x900   : > { %v4739_v17 = vpop.xlane.xlu1 %4738 }
 0x901   : > { %v4756_v25 = vmul.f32 0.03125, %v4739_v17  ;;  %v4736_v50 = vpop.xlane.xlu0 %4735 }
 0x902   : > { %v4755_v33 = vmul.f32 0.03125, %v4736_v50 }
 0x903   : > { %v7670_v30 = vsub.f32 %v4705_v7, %v4756_v25 }
 0x904   : > { %v7672_v63 = vsub.f32 %v4700_v62, %v4755_v33  ;;  %v4847_v62 = vsub.s32 3, %v6694_v8 }
 0x905   : > { %v4772_v51 = vmul.f32 %v7670_v30, %v7670_v30 }
 0x906   : > { %v4771_v38 = vmul.f32 %v7672_v63, %v7672_v63 }
 0x907   : > { %v4786_v36 = vsel %vm301_vm0, %v4772_v51, 0.0 }
 0x908   : > { %4787 = vadd.xlane.f32.xlu1 %v4786_v36  ;;  %v4783_v4 = vsel %vm301_vm0, %v4771_v38, 0.0 }
 0x909   : > { %4784 = vadd.xlane.f32.xlu0 %v4783_v4 }
 0x90c   : > { %v4745_v56 = vpop.xlane.xlu1 %4744 }
 0x90d   : > { %v4758_v61 = vmul.f32 0.03125, %v4745_v56  ;;  %v4742_v46 = vpop.xlane.xlu0 %4741  ;;  %v6223_v56 = vld [vmem:[%s6316_s15 + $0x18] sm:$0xff] }
 0x90e   : > { %v4757_v12 = vmul.f32 0.03125, %v4742_v46  ;;  %v6224_v46 = vld [vmem:[%s6316_s15 + $0x10] sm:$0xff] }
 0x90f   : > { %v7680_v54 = vsub.f32 %v4715_v32, %v4758_v61  ;;  %v7706_v32 = vrot.slane %v7657_v1, %v4847_v62  ;;  %v6221_v1 = vld [vmem:[%s6316_s15 + $0x8] sm:$0xff] }
 0x910   : > { %v7682_v16 = vsub.f32 %v4710_v39, %v4757_v12 }
 0x911   : > { %v4774_v24 = vmul.f32 %v7680_v54, %v7680_v54 }
 0x912   : > { %v4773_v44 = vmul.f32 %v7682_v16, %v7682_v16 }
 0x913   : > { %v4792_v31 = vsel %vm301_vm0, %v4774_v24, 0.0 }
 0x914   : > { %4793 = vadd.xlane.f32.xlu1 %v4792_v31  ;;  %v4789_v43 = vsel %vm301_vm0, %v4773_v44, 0.0 }
 0x915   : > { %4790 = vadd.xlane.f32.xlu0 %v4789_v43 }
 0x918   : > { %v4751_v19 = vpop.xlane.xlu1 %4750 }
 0x919   : > { %v4760_v5 = vmul.f32 0.03125, %v4751_v19  ;;  %v4748_v52 = vpop.xlane.xlu0 %4747 }
 0x91a   : > { %v4759_v20 = vmul.f32 0.03125, %v4748_v52 }
 0x91b   : > { %v7690_v45 = vsub.f32 %v4725_v2, %v4760_v5 }
 0x91c   : > { %v7692_v15 = vsub.f32 %v4720_v53, %v4759_v20 }
 0x91d   : > { %v4776_v14 = vmul.f32 %v7690_v45, %v7690_v45 }
 0x91e   : > { %v4775_v57 = vmul.f32 %v7692_v15, %v7692_v15 }
 0x91f   : > { %v4798_v27 = vsel %vm301_vm0, %v4776_v14, 0.0 }
 0x920   : > { %4799 = vadd.xlane.f32.xlu1 %v4798_v27  ;;  %v4795_v6 = vsel %vm301_vm0, %v4775_v57, 0.0 }
 0x921   : > { %4796 = vadd.xlane.f32.xlu0 %v4795_v6 }
 0x979   : > { %v4782_v40 = vpop.xlane.xlu1 %4781 }
 0x97a   : > { %v4802_v9 = vmul.f32 0.03125, %v4782_v40  ;;  %v4779_v0 = vpop.xlane.xlu0 %4778  ;;  %v6225_v40 = vld [vmem:[%s6316_s15 + $0x28] sm:$0xff] }
 0x97b   : > { %v4801_v23 = vmul.f32 0.03125, %v4779_v0  ;;  %v6226_v0 = vld [vmem:[%s6316_s15 + $0x20] sm:$0xff] }
 0x97c   : > { %v4810_v41 = vadd.f32 1e-05, %v4802_v9 }
 0x97d   : > { %v4809_v7 = vadd.f32 1e-05, %v4801_v23 }
 0x97e   : > { %6204 = vrsqrt.f32 %v4810_v41 }
 0x97f   : > { %6206 = vrsqrt.f32 %v4809_v7 }
 0x988   : > { %v6205_v49 = vpop.eup %6204 }
 0x989   : > { %v6207_v37 = vpop.eup %6206  ;;  %v4826_v29 = vmul.f32 %v6205_v49, %v4762_v28 }
 0x98a   : > { %v4825_v39 = vmul.f32 %v6207_v37, %v4761_v21 }
 0x98b   : > { %v4838_v60 = vmul.f32 %v7703_v55, %v4826_v29  ;;  %v6227_v29 = vld [vmem:[%s6316_s15 + $0x38] sm:$0xff] }
 0x98c   : > { %v4837_v35 = vmul.f32 %v7703_v55, %v4825_v39 }
 0x98d   : > { %v4850_v58 = vadd.f32 %v7706_v32, %v4838_v60  ;;  %v6228_v60 = vld [vmem:[%s6316_s15 + $0x30] sm:$0xff] }
 0x98e   : > { %v4849_v8 = vadd.f32 %v7706_v32, %v4837_v35 }
 0x98f   : > { %v4858_v2 = vadd.f32 %v6221_v1, %v4850_v58 }
 0x990   : > { %v4857_v53 = vadd.f32 %v6222_v3, %v4849_v8 }
 0x991   : > { %4866 = vst.msk [vmem:[%s7716_s18 + $0x8] sm:$0xff] %vm301_vm0, %v4858_v2 }
 0x992   : > { %4865 = vst.msk [vmem:[%s7716_s18] sm:$0xff] %vm301_vm0, %v4857_v53 }
 0x995   : > { %v4788_v22 = vpop.xlane.xlu1 %4787 }
 0x996   : > { %v4804_v11 = vmul.f32 0.03125, %v4788_v22  ;;  %v4785_v59 = vpop.xlane.xlu0 %4784 }
 0x997   : > { %v4803_v47 = vmul.f32 0.03125, %v4785_v59 }
 0x998   : > { %v4812_v18 = vadd.f32 1e-05, %v4804_v11 }
 0x999   : > { %v4811_v34 = vadd.f32 1e-05, %v4803_v47 }
 0x99a   : > { %6208 = vrsqrt.f32 %v4812_v18 }
 0x99b   : > { %6210 = vrsqrt.f32 %v4811_v34 }
 0x9a1   : > { %v4794_v28 = vpop.xlane.xlu1 %4793 }
 0x9a2   : > { %v4806_v21 = vmul.f32 0.03125, %v4794_v28  ;;  %v4791_v10 = vpop.xlane.xlu0 %4790 }
 0x9a3   : > { %v4805_v26 = vmul.f32 0.03125, %v4791_v10 }
 0x9a4   : > { %v6209_v13 = vpop.eup %6208  ;;  %v4814_v42 = vadd.f32 1e-05, %v4806_v21 }
 0x9a5   : > { %v6211_v17 = vpop.eup %6210  ;;  %v4828_v25 = vmul.f32 %v6209_v13, %v7670_v30  ;;  %v4813_v50 = vadd.f32 1e-05, %v4805_v26 }
 0x9a6   : > { %v4827_v33 = vmul.f32 %v6211_v17, %v7672_v63  ;;  %6212 = vrsqrt.f32 %v4814_v42 }
 0x9a7   : > { %v4840_v51 = vmul.f32 %v7703_v55, %v4828_v25  ;;  %6214 = vrsqrt.f32 %v4813_v50 }
 0x9a8   : > { %v4839_v38 = vmul.f32 %v7703_v55, %v4827_v33 }
 0x9a9   : > { %v4852_v36 = vadd.f32 %v7706_v32, %v4840_v51 }
 0x9aa   : > { %v4851_v4 = vadd.f32 %v7706_v32, %v4839_v38 }
 0x9ab   : > { %v4860_v61 = vadd.f32 %v6223_v56, %v4852_v36 }
 0x9ac   : > { %v4859_v12 = vadd.f32 %v6224_v46, %v4851_v4 }
 0x9ad   : > { %4868 = vst.msk [vmem:[%s7716_s18 + $0x18] sm:$0xff] %vm301_vm0, %v4860_v61  ;;  %v4800_v30 = vpop.xlane.xlu1 %4799 }
 0x9ae   : > { %4867 = vst.msk [vmem:[%s7716_s18 + $0x10] sm:$0xff] %vm301_vm0, %v4859_v12  ;;  %v4808_v63 = vmul.f32 0.03125, %v4800_v30  ;;  %v4797_v24 = vpop.xlane.xlu0 %4796 }
 0x9af   : > { %v4807_v44 = vmul.f32 0.03125, %v4797_v24 }
 0x9b0   : > { %v6213_v31 = vpop.eup %6212  ;;  %v4816_v43 = vadd.f32 1e-05, %v4808_v63 }
 0x9b1   : > { %v6215_v19 = vpop.eup %6214  ;;  %v4830_v5 = vmul.f32 %v6213_v31, %v7680_v54  ;;  %v4815_v52 = vadd.f32 1e-05, %v4807_v44 }
 0x9b2   : > { %v4829_v20 = vmul.f32 %v6215_v19, %v7682_v16  ;;  %6216 = vrsqrt.f32 %v4816_v43 }
 0x9b3   : > { %v4842_v14 = vmul.f32 %v7703_v55, %v4830_v5  ;;  %6218 = vrsqrt.f32 %v4815_v52 }
 0x9b4   : > { %v4841_v57 = vmul.f32 %v7703_v55, %v4829_v20 }
 0x9b5   : > { %v4854_v27 = vadd.f32 %v7706_v32, %v4842_v14 }
 0x9b6   : > { %v4853_v6 = vadd.f32 %v7706_v32, %v4841_v57 }
 0x9b7   : > { %v4862_v9 = vadd.f32 %v6225_v40, %v4854_v27 }
 0x9b8   : > { %v4861_v54 = vadd.f32 %v6226_v0, %v4853_v6 }
 0x9b9   : > { %4870 = vst.msk [vmem:[%s7716_s18 + $0x28] sm:$0xff] %vm301_vm0, %v4862_v9 }
 0x9ba   : > { %4869 = vst.msk [vmem:[%s7716_s18 + $0x20] sm:$0xff] %vm301_vm0, %v4861_v54 }
 0x9bc   : > { %v6217_v16 = vpop.eup %6216 }
 0x9bd   : > { %v6219_v23 = vpop.eup %6218  ;;  %v4832_v41 = vmul.f32 %v6217_v16, %v7690_v45 }
 0x9be   : > { %v4831_v7 = vmul.f32 %v6219_v23, %v7692_v15 }
 0x9bf   : > { %v4844_v48 = vmul.f32 %v7703_v55, %v4832_v41 }
 0x9c0   : > { %v4843_v62 = vmul.f32 %v7703_v55, %v4831_v7 }
 0x9c1   : > { %v4856_v49 = vadd.f32 %v7706_v32, %v4844_v48 }
 0x9c2   : > { %v4855_v37 = vadd.f32 %v7706_v32, %v4843_v62 }
 0x9c3   : > { %v4864_v39 = vadd.f32 %v6227_v29, %v4856_v49 }
 0x9c4   : > { %v4863_v35 = vadd.f32 %v6228_v60, %v4855_v37 }
 0x9c5   : > { %4872 = vst.msk [vmem:[%s7716_s18 + $0x38] sm:$0xff] %vm301_vm0, %v4864_v39 }
 0x9c6   : > { %4871 = vst.msk [vmem:[%s7716_s18 + $0x30] sm:$0xff] %vm301_vm0, %v4863_v35 }
 0x9c7 PF: > { %s17_s24 = sadd.s32 1, %s6235_s24  }
 0x9c8   : > { %p14_p4 = scmp.ge.s32.totalorder %s17_s24, 4  }
 0x9ca   :  { %16 = sbr.rel (!%p14_p4) target bundleno = 1 (0x1), region = 78 }

</bundles_post_ra>
